<compile_context>
chip_gen: v6e
topology: v6e:2x2x1
jax: 0.10.0
libtpu: 0.0.40
codegen_flags: <defaults>
</compile_context>

<pallas_src>
import functools

import jax
import jax.numpy as jnp
from jax.experimental import pallas as pl
from jax.experimental.pallas import tpu as pltpu

NC_PAD = 128    # lane-padded class dimension (real num_classes lanes are masked)
K13_PAD = 256   # 7*7*5 = 245 -> 256  (shared 7x7 im2col reduced dim, (kh,kw,c) order)
K2_PAD = 64     # 3*3*5 = 45  -> 64   (3x3 im2col reduced dim)
B_TILE = 8      # samples per grid step (multiple of 8 -> sublane-aligned output block)


# ----------------------------------------------------------------------------
# The single fused kernel (one grid step == B_TILE samples)
# ----------------------------------------------------------------------------
def _ensemble_kernel(a13_ref, a2_ref, w13_ref, w2_ref, h2_ref, gout_ref,
                     bias_ref, o_ref, *, num_classes, p13_real, p2_real):
    f32, bf16 = jnp.float32, jnp.bfloat16
    B, P13, K13 = a13_ref.shape
    _, P2, K2 = a2_ref.shape

    bias = bias_ref[...]                    # [3, NC_PAD] f32
    b2c = bias[0:1, :64]                    # squeezenet conv0 bias
    b2h = bias[1:2, :]                      # squeezenet classifier bias
    bo = bias[2:3, :]                       # output bias (+ m1/m3 fc biases folded through head)

    # ---- m1 + m3: shared 7x7/stride2 conv as ONE MXU pass over all B*P13 pixels
    # (lanes 0:64 = resnet18.conv1 channels, lanes 64:128 = densenet121.conv0).
    a13 = a13_ref[...].reshape(B * P13, K13)
    conv13 = jnp.dot(a13, w13_ref[...], preferred_element_type=f32)   # [B*P13, 128]
    # TODO(synk): resnet18 bn1/relu/maxpool/layer1-4 and densenet121 dense blocks
    # are not translated; stand-in is global-avg-pool + folded linear heads.
    # Padded pixel rows are all-zero and the conv has no bias -> sum/p13_real is exact.
    pooled = jnp.sum(conv13.reshape(B, P13, 128), axis=1) * (1.0 / p13_real)  # [B, 128]

    # ---- m2: 3x3/stride2 conv (+bias, ReLU) -> folded bridge+classifier (+bias, ReLU)
    a2 = a2_ref[...].reshape(B * P2, K2)
    conv2 = jnp.dot(a2, w2_ref[...], preferred_element_type=f32) + b2c      # [B*P2, 64]
    conv2 = jnp.maximum(conv2, 0.0)
    # TODO(synk): squeezenet fire modules / maxpools are not translated; the
    # per-pixel stand-in projection is folded into the classifier 1x1 conv.
    z2 = jnp.dot(conv2.astype(bf16), h2_ref[...], preferred_element_type=f32) + b2h
    z2 = jnp.maximum(z2, 0.0).reshape(B, P2, NC_PAD)
    # Padded pixel rows produce ReLU(bias) != 0 -> mask them before the mean.
    row = jax.lax.broadcasted_iota(jnp.int32, z2.shape, dimension=1)
    z2 = jnp.where(row < p2_real, z2, 0.0)
    logits2 = jnp.sum(z2, axis=1) * (1.0 / p2_real)                          # [B, NC_PAD]

    # ---- output head: [pooled | logits2] @ G + b (m1/m3 post-pool chains folded
    # into G's top 128 rows), masked softmax over the real classes.
    feat = jnp.concatenate([pooled, logits2], axis=1).astype(bf16)           # [B, 256]
    z = jnp.dot(feat, gout_ref[...], preferred_element_type=f32) + bo        # [B, NC_PAD]
    lane = jax.lax.broadcasted_iota(jnp.int32, z.shape, dimension=1)
    valid = lane < num_classes
    z = jnp.where(valid, z, -1e30)                                           # mask padded lanes
    z = z - jnp.max(z, axis=-1, keepdims=True)
    e = jnp.where(valid, jnp.exp(z), 0.0)
    o_ref[...] = e / jnp.sum(e, axis=-1, keepdims=True)


# ----------------------------------------------------------------------------
# Host-side channels-last im2col (layout glue only, no full-size transpose)
# ----------------------------------------------------------------------------
def _im2col_cl(x, kh, kw, stride, pad, k_pad):
    """x [N,C,H,W] -> (patches [N, P_pad, k_pad], P_real, P_pad).

    Reduced dim ordered (kh, kw, c); built by stacking shifted channels-last
    slices along trailing axes so only the tiny raw-input NCHW->NHWC transpose
    is materialized (no transpose of the expanded patch matrix)."""
    # TODO(synk): patch extraction is still host-side XLA glue; an in-kernel
    # shifted-slice / gather formulation from the raw [5,H,W] tile would remove
    # the remaining HBM read amplification at real 224x224 sizes.
    N, C, H, W = x.shape
    xc = jnp.transpose(x, (0, 2, 3, 1))                      # small raw-input transpose
    xc = jnp.pad(xc, ((0, 0), (pad, pad), (pad, pad), (0, 0)))
    OH = (H + 2 * pad - kh) // stride + 1
    OW = (W + 2 * pad - kw) // stride + 1
    cols = []
    for i in range(kh):
        for j in range(kw):
            cols.append(xc[:, i:i + stride * OH:stride, j:j + stride * OW:stride, :])
    patches = jnp.stack(cols, axis=3)                        # [N, OH, OW, KH*KW, C]
    patches = patches.reshape(N, OH * OW, kh * kw * C)       # contiguous merge, no transpose
    P = OH * OW
    P_pad = ((P + 15) // 16) * 16                            # bf16 sublane-pack alignment
    patches = jnp.pad(patches, ((0, 0), (0, P_pad - P), (0, k_pad - kh * kw * C)))
    return patches, P, P_pad


# ----------------------------------------------------------------------------
# Parameters (deterministic, synthetic) incl. the 5-channel weight surgery
# ----------------------------------------------------------------------------
def _make_5ch_weight(w3):
    """Channels 3 and 4 = mean of the RGB channels (as in the PyTorch module)."""
    mean = (w3[:, 0:1] + w3[:, 1:2] + w3[:, 2:3]) / 3.0
    return jnp.concatenate([w3, mean, mean], axis=1)         # [OC, 5, KH, KW]


def init_params(key, num_classes):
    ks = jax.random.split(key, 14)
    n = lambda k, s, sc=0.05: sc * jax.random.normal(k, s, dtype=jnp.float32)
    return {
        "m1": {  # resnet18-like branch
            "conv1_w": _make_5ch_weight(n(ks[0], (64, 3, 7, 7))),
            "bridge_w": n(ks[1], (64, 512)),
            "fc_w": n(ks[2], (num_classes, 512)),
            "fc_b": n(ks[3], (num_classes,)),
        },
        "m2": {  # squeezenet1_1-like branch
            "conv0_w": _make_5ch_weight(n(ks[4], (64, 3, 3, 3))),
            "conv0_b": n(ks[5], (64,)),
            "bridge_w": n(ks[6], (64, 512)),
            "cls_w": n(ks[7], (num_classes, 512)),
            "cls_b": n(ks[8], (num_classes,)),
        },
        "m3": {  # densenet121-like branch
            "conv0_w": _make_5ch_weight(n(ks[9], (64, 3, 7, 7))),
            "bridge_w": n(ks[10], (64, 1024)),
            "fc_w": n(ks[11], (num_classes, 1024)),
            "fc_b": n(ks[12], (num_classes,)),
        },
        "out": {
            "w": n(ks[13], (num_classes, num_classes * 3)),
            "b": jnp.zeros((num_classes,), jnp.float32),
        },
    }


def _conv_to_mat(w, k_pad):
    """[OC, C, KH, KW] -> [k_pad, OC] with row order (kh, kw, c) matching the
    channels-last im2col; padded rows are zero."""
    oc = w.shape[0]
    m = jnp.transpose(w, (2, 3, 1, 0)).reshape(-1, oc)
    return jnp.pad(m, ((0, k_pad - m.shape[0]), (0, 0)))


def prepare_weights(params, num_classes):
    """One-time fold / pad / bf16-cast of all weights into kernel-ready form."""
    nc = num_classes
    f32, bf16 = jnp.float32, jnp.bfloat16

    def pad_cols(w):
        return jnp.pad(w, ((0, 0), (0, NC_PAD - w.shape[1])))

    def pad_row(v):
        v = v.reshape(1, -1)
        return jnp.pad(v, ((0, 0), (0, NC_PAD - v.shape[1])))

    # Shared 7x7 conv weight: m1 -> lanes [0,64), m3 -> lanes [64,128); K 245->256.
    w13 = jnp.concatenate([_conv_to_mat(params["m1"]["conv1_w"], K13_PAD),
                           _conv_to_mat(params["m3"]["conv0_w"], K13_PAD)],
                          axis=1).astype(bf16)                          # [256, 128]

    # m2 3x3 conv weight: K 45->64.
    w2 = _conv_to_mat(params["m2"]["conv0_w"], K2_PAD).astype(bf16)     # [64, 64]

    # Folded branch heads (backbone-bridge @ classifier); exact, the ReLU (m2)
    # comes after and nothing nonlinear sits in between for m1/m3 stand-ins.
    h1 = params["m1"]["bridge_w"] @ params["m1"]["fc_w"].T              # [64, nc]
    h2 = params["m2"]["bridge_w"] @ params["m2"]["cls_w"].T             # [64, nc]
    h3 = params["m3"]["bridge_w"] @ params["m3"]["fc_w"].T              # [64, nc]

    # Output head split along the concat order [x1 | x2 | x3].
    wo_t = params["out"]["w"].T                                         # [3*nc, nc]
    wo1, wo2, wo3 = wo_t[:nc], wo_t[nc:2 * nc], wo_t[2 * nc:]

    # m1/m3 post-pool chains folded through the output head:
    # pooled @ g13 == x1 @ wo1 + x3 @ wo3 (minus fc biases, folded into bo below).
    g13 = jnp.concatenate([h1 @ wo1, h3 @ wo3], axis=0)                 # [128, nc]
    wo2p = jnp.pad(wo2, ((0, NC_PAD - nc), (0, 0)))                     # [128, nc]
    gout = pad_cols(jnp.concatenate([g13, wo2p], axis=0)).astype(bf16)  # [256, 128]

    h2m = pad_cols(h2).astype(bf16)                                     # [64, 128]

    bo = (params["out"]["b"]
          + params["m1"]["fc_b"] @ wo1
          + params["m3"]["fc_b"] @ wo3)                                 # [nc]
    biases = jnp.concatenate([pad_row(params["m2"]["conv0_b"]),         # row 0: conv0 bias (first 64 lanes)
                              pad_row(params["m2"]["cls_b"]),           # row 1: classifier bias
                              pad_row(bo)],                             # row 2: folded output bias
                             axis=0).astype(f32)                        # [3, 128]

    return dict(w13=w13, w2=w2, h2=h2m, gout=gout, biases=biases)


# ----------------------------------------------------------------------------
# Forward
# ----------------------------------------------------------------------------
def ensemble_forward(x, kp, num_classes, b_tile=B_TILE):
    N = x.shape[0]
    n_pad = ((N + b_tile - 1) // b_tile) * b_tile
    if n_pad != N:
        x = jnp.pad(x, ((0, n_pad - N), (0, 0), (0, 0), (0, 0)))

    a13, p13, p13_pad = _im2col_cl(x, 7, 7, stride=2, pad=3, k_pad=K13_PAD)
    a2, p2, p2_pad = _im2col_cl(x, 3, 3, stride=2, pad=0, k_pad=K2_PAD)
    a13 = a13.astype(jnp.bfloat16)
    a2 = a2.astype(jnp.bfloat16)

    full2d = lambda r, c: pl.BlockSpec((r, c), lambda i: (0, 0))

    # TODO(synk): at real input sizes (224x224) add an "arbitrary" grid axis over
    # the pixel dim with VMEM accumulators for the pooled sums (smaller pixel
    # tiles on v7x); at these toy shapes one B_TILE-sample block fits VMEM easily.
    out = pl.pallas_call(
        functools.partial(_ensemble_kernel, num_classes=num_classes,
                          p13_real=p13, p2_real=p2),
        out_shape=jax.ShapeDtypeStruct((n_pad, NC_PAD), jnp.float32),
        grid=(n_pad // b_tile,),
        in_specs=[
            pl.BlockSpec((b_tile, p13_pad, K13_PAD), lambda i: (i, 0, 0)),  # a13
            pl.BlockSpec((b_tile, p2_pad, K2_PAD), lambda i: (i, 0, 0)),    # a2
            full2d(K13_PAD, 128),          # w13  (m1 | m3 concat)
            full2d(K2_PAD, 64),            # w2
            full2d(64, NC_PAD),            # h2   (folded squeezenet bridge+classifier)
            full2d(2 * NC_PAD, NC_PAD),    # gout (folded m1/m3 chain | wo2)
            full2d(3, NC_PAD),             # biases (conv0 / classifier / folded output)
        ],
        out_specs=pl.BlockSpec((b_tile, NC_PAD), lambda i: (i, 0)),
        compiler_params=pltpu.CompilerParams(
            dimension_semantics=("parallel",),
            vmem_limit_bytes=32 * 1024 * 1024,
        ),
    )(a13, a2, kp["w13"], kp["w2"], kp["h2"], kp["gout"], kp["biases"])

    return out[:N, :num_classes]


# ----------------------------------------------------------------------------
if __name__ == "__main__":
    num_classes = 10
    key = jax.random.PRNGKey(0)
    pkey, xkey = jax.random.split(key)

    params = init_params(pkey, num_classes)
    kparams = prepare_weights(params, num_classes)   # fold + pad + bf16, once

    # 5-channel input (the module rewires the first convs for 5 channels);
    # batch 16 -> 2 grid steps of B_TILE=8 samples (keeps both v7x TCs busy).
    x = jax.random.normal(xkey, (16, 5, 32, 32), dtype=jnp.float32)

    fwd = jax.jit(functools.partial(ensemble_forward, num_classes=num_classes))
    out = jax.block_until_ready(fwd(x, kparams))

    assert out.shape == (16, num_classes), out.shape
    assert out.dtype == jnp.float32
    # softmax rows must sum to 1
    assert bool(jnp.allclose(jnp.sum(out, axis=1), 1.0, atol=1e-5))
    print("KERNEL_OK")
</pallas_src>

<mosaic_0001>
module attributes {stable_mosaic.version = 11 : i64} {
  func.func @_ensemble_kernel(%arg0: i32, %arg1: memref<8x256x256xbf16, #tpu.memory_space<vmem>>, %arg2: memref<8x240x64xbf16, #tpu.memory_space<vmem>>, %arg3: memref<256x128xbf16, #tpu.memory_space<vmem>>, %arg4: memref<64x64xbf16, #tpu.memory_space<vmem>>, %arg5: memref<64x128xbf16, #tpu.memory_space<vmem>>, %arg6: memref<256x128xbf16, #tpu.memory_space<vmem>>, %arg7: memref<3x128xf32, #tpu.memory_space<vmem>>, %arg8: memref<8x128xf32, #tpu.memory_space<vmem>>) attributes {dimension_semantics = [#tpu.dimension_semantics<parallel>], iteration_bounds = array<i64: 2>, scalar_prefetch = 0 : i64, scratch_operands = 0 : i64, tpu.core_type = #tpu.core_type<tc>, window_params = [{transform_indices = @transform_0, window_bounds = array<i64: 8, 256, 256>}, {transform_indices = @transform_1, window_bounds = array<i64: 8, 240, 64>}, {pipeline_mode = #tpu.pipeline_mode<synchronous>, transform_indices = @transform_2, window_bounds = array<i64: 256, 128>}, {pipeline_mode = #tpu.pipeline_mode<synchronous>, transform_indices = @transform_3, window_bounds = array<i64: 64, 64>}, {pipeline_mode = #tpu.pipeline_mode<synchronous>, transform_indices = @transform_4, window_bounds = array<i64: 64, 128>}, {pipeline_mode = #tpu.pipeline_mode<synchronous>, transform_indices = @transform_5, window_bounds = array<i64: 256, 128>}, {pipeline_mode = #tpu.pipeline_mode<synchronous>, transform_indices = @transform_6, window_bounds = array<i64: 3, 128>}, {transform_indices = @transform_7, window_bounds = array<i64: 8, 128>}]} {
    %c0 = arith.constant 0 : index
    %c0_0 = arith.constant 0 : index
    %0 = vector.load %arg7[%c0, %c0_0] : memref<3x128xf32, #tpu.memory_space<vmem>>, vector<3x128xf32>
    %1 = vector.extract_strided_slice %0 {offsets = [0, 0], sizes = [1, 64], strides = [1, 1]} : vector<3x128xf32> to vector<1x64xf32>
    %2 = vector.extract_strided_slice %0 {offsets = [1, 0], sizes = [1, 128], strides = [1, 1]} : vector<3x128xf32> to vector<1x128xf32>
    %3 = vector.extract_strided_slice %0 {offsets = [2, 0], sizes = [1, 128], strides = [1, 1]} : vector<3x128xf32> to vector<1x128xf32>
    %c0_1 = arith.constant 0 : index
    %c0_2 = arith.constant 0 : index
    %c0_3 = arith.constant 0 : index
    %4 = vector.load %arg1[%c0_1, %c0_2, %c0_3] : memref<8x256x256xbf16, #tpu.memory_space<vmem>>, vector<8x256x256xbf16>
    %5 = vector.shape_cast %4 : vector<8x256x256xbf16> to vector<2048x256xbf16>
    %c0_4 = arith.constant 0 : index
    %c0_5 = arith.constant 0 : index
    %6 = vector.load %arg3[%c0_4, %c0_5] : memref<256x128xbf16, #tpu.memory_space<vmem>>, vector<256x128xbf16>
    %cst = arith.constant dense<0.000000e+00> : vector<2048x128xf32>
    %7 = tpu.matmul %5, %6, %cst {dimension_numbers = #tpu.dot_dimension_numbers<[1], [0], [0], [1], [0, 0, 1, 1], [], []>} : vector<2048x256xbf16>, vector<256x128xbf16>, vector<2048x128xf32> -> vector<2048x128xf32>
    %8 = vector.shape_cast %7 : vector<2048x128xf32> to vector<8x256x128xf32>
    %cst_6 = arith.constant dense<0.000000e+00> : vector<8x128xf32>
    %9 = vector.multi_reduction <add>, %8, %cst_6 [1] : vector<8x256x128xf32> to vector<8x128xf32>
    %cst_7 = arith.constant 3.906250e-03 : f32
    %10 = vector.broadcast %cst_7 : f32 to vector<8x128xf32>
    %11 = arith.mulf %9, %10 : vector<8x128xf32>
    %c0_8 = arith.constant 0 : index
    %c0_9 = arith.constant 0 : index
    %c0_10 = arith.constant 0 : index
    %12 = vector.load %arg2[%c0_8, %c0_9, %c0_10] : memref<8x240x64xbf16, #tpu.memory_space<vmem>>, vector<8x240x64xbf16>
    %13 = vector.shape_cast %12 : vector<8x240x64xbf16> to vector<1920x64xbf16>
    %c0_11 = arith.constant 0 : index
    %c0_12 = arith.constant 0 : index
    %14 = vector.load %arg4[%c0_11, %c0_12] : memref<64x64xbf16, #tpu.memory_space<vmem>>, vector<64x64xbf16>
    %cst_13 = arith.constant dense<0.000000e+00> : vector<1920x64xf32>
    %15 = tpu.matmul %13, %14, %cst_13 {dimension_numbers = #tpu.dot_dimension_numbers<[1], [0], [0], [1], [0, 0, 1, 1], [], []>} : vector<1920x64xbf16>, vector<64x64xbf16>, vector<1920x64xf32> -> vector<1920x64xf32>
    %16 = vector.broadcast %1 : vector<1x64xf32> to vector<1920x64xf32>
    %17 = arith.addf %15, %16 : vector<1920x64xf32>
    %cst_14 = arith.constant 0.000000e+00 : f32
    %18 = vector.broadcast %cst_14 : f32 to vector<1920x64xf32>
    %19 = arith.maximumf %17, %18 : vector<1920x64xf32>
    %20 = arith.truncf %19 : vector<1920x64xf32> to vector<1920x64xbf16>
    %c0_15 = arith.constant 0 : index
    %c0_16 = arith.constant 0 : index
    %21 = vector.load %arg5[%c0_15, %c0_16] : memref<64x128xbf16, #tpu.memory_space<vmem>>, vector<64x128xbf16>
    %cst_17 = arith.constant dense<0.000000e+00> : vector<1920x128xf32>
    %22 = tpu.matmul %20, %21, %cst_17 {dimension_numbers = #tpu.dot_dimension_numbers<[1], [0], [0], [1], [0, 0, 1, 1], [], []>} : vector<1920x64xbf16>, vector<64x128xbf16>, vector<1920x128xf32> -> vector<1920x128xf32>
    %23 = vector.broadcast %2 : vector<1x128xf32> to vector<1920x128xf32>
    %24 = arith.addf %22, %23 : vector<1920x128xf32>
    %cst_18 = arith.constant 0.000000e+00 : f32
    %25 = vector.broadcast %cst_18 : f32 to vector<1920x128xf32>
    %26 = arith.maximumf %24, %25 : vector<1920x128xf32>
    %27 = vector.shape_cast %26 : vector<1920x128xf32> to vector<8x240x128xf32>
    %28 = tpu.iota {dimensions = array<i32: 1>} : vector<8x240x128xi32>
    %c225_i32 = arith.constant 225 : i32
    %29 = vector.broadcast %c225_i32 : i32 to vector<8x240x128xi32>
    %30 = arith.cmpi slt, %28, %29 : vector<8x240x128xi32>
    %cst_19 = arith.constant 0.000000e+00 : f32
    %31 = vector.broadcast %cst_19 : f32 to vector<8x240x128xf32>
    %32 = arith.select %30, %27, %31 : vector<8x240x128xi1>, vector<8x240x128xf32>
    %cst_20 = arith.constant dense<0.000000e+00> : vector<8x128xf32>
    %33 = vector.multi_reduction <add>, %32, %cst_20 [1] : vector<8x240x128xf32> to vector<8x128xf32>
    %cst_21 = arith.constant 0.00444444455 : f32
    %34 = vector.broadcast %cst_21 : f32 to vector<8x128xf32>
    %35 = arith.mulf %33, %34 : vector<8x128xf32>
    %36 = tpu.concatenate %11, %35 in 1 : vector<8x128xf32>, vector<8x128xf32> -> vector<8x256xf32>
    %37 = arith.truncf %36 : vector<8x256xf32> to vector<8x256xbf16>
    %c0_22 = arith.constant 0 : index
    %c0_23 = arith.constant 0 : index
    %38 = vector.load %arg6[%c0_22, %c0_23] : memref<256x128xbf16, #tpu.memory_space<vmem>>, vector<256x128xbf16>
    %cst_24 = arith.constant dense<0.000000e+00> : vector<8x128xf32>
    %39 = tpu.matmul %37, %38, %cst_24 {dimension_numbers = #tpu.dot_dimension_numbers<[1], [0], [0], [1], [0, 0, 1, 1], [], []>} : vector<8x256xbf16>, vector<256x128xbf16>, vector<8x128xf32> -> vector<8x128xf32>
    %40 = vector.broadcast %3 : vector<1x128xf32> to vector<8x128xf32>
    %41 = arith.addf %39, %40 : vector<8x128xf32>
    %42 = tpu.iota {dimensions = array<i32: 1>} : vector<8x128xi32>
    %c10_i32 = arith.constant 10 : i32
    %43 = vector.broadcast %c10_i32 : i32 to vector<8x128xi32>
    %44 = arith.cmpi slt, %42, %43 : vector<8x128xi32>
    %cst_25 = arith.constant -1.000000e+30 : f32
    %45 = vector.broadcast %cst_25 : f32 to vector<8x128xf32>
    %46 = arith.select %44, %41, %45 : vector<8x128xi1>, vector<8x128xf32>
    %cst_26 = arith.constant dense<0xFF800000> : vector<8xf32>
    %47 = vector.multi_reduction <maximumf>, %46, %cst_26 [1] : vector<8x128xf32> to vector<8xf32>
    %48 = vector.shape_cast %47 : vector<8xf32> to vector<8x1xf32>
    %49 = vector.broadcast %48 : vector<8x1xf32> to vector<8x128xf32>
    %50 = arith.subf %46, %49 : vector<8x128xf32>
    %51 = math.exp %50 : vector<8x128xf32>
    %cst_27 = arith.constant 0.000000e+00 : f32
    %52 = vector.broadcast %cst_27 : f32 to vector<8x128xf32>
    %53 = arith.select %44, %51, %52 : vector<8x128xi1>, vector<8x128xf32>
    %cst_28 = arith.constant dense<0.000000e+00> : vector<8xf32>
    %54 = vector.multi_reduction <add>, %53, %cst_28 [1] : vector<8x128xf32> to vector<8xf32>
    %55 = vector.shape_cast %54 : vector<8xf32> to vector<8x1xf32>
    %56 = vector.broadcast %55 : vector<8x1xf32> to vector<8x128xf32>
    %57 = arith.divf %53, %56 : vector<8x128xf32>
    %c0_29 = arith.constant 0 : index
    %c0_30 = arith.constant 0 : index
    %58 = vector.load %arg8[%c0_29, %c0_30] : memref<8x128xf32, #tpu.memory_space<vmem>>, vector<8x128xf32>
    tpu.vector_store %arg8[%c0_29, %c0_30], %57 {strides = array<i32>} : memref<8x128xf32, #tpu.memory_space<vmem>>, vector<8x128xf32>,
    return
  }
  func.func @transform_0(%arg0: i32) -> (i32, i32, i32) {
    %c0_i32 = arith.constant 0 : i32
    %c0_i32_0 = arith.constant 0 : i32
    %c0_i32_1 = arith.constant 0 : i32
    return %arg0, %c0_i32, %c0_i32_0 : i32, i32, i32
  }
  func.func @transform_1(%arg0: i32) -> (i32, i32, i32) {
    %c0_i32 = arith.constant 0 : i32
    %c0_i32_0 = arith.constant 0 : i32
    %c0_i32_1 = arith.constant 0 : i32
    return %arg0, %c0_i32, %c0_i32_0 : i32, i32, i32
  }
  func.func @transform_2(%arg0: i32) -> (i32, i32) {
    %c0_i32 = arith.constant 0 : i32
    %c0_i32_0 = arith.constant 0 : i32
    %c0_i32_1 = arith.constant 0 : i32
    return %c0_i32, %c0_i32_0 : i32, i32
  }
  func.func @transform_3(%arg0: i32) -> (i32, i32) {
    %c0_i32 = arith.constant 0 : i32
    %c0_i32_0 = arith.constant 0 : i32
    %c0_i32_1 = arith.constant 0 : i32
    return %c0_i32, %c0_i32_0 : i32, i32
  }
  func.func @transform_4(%arg0: i32) -> (i32, i32) {
    %c0_i32 = arith.constant 0 : i32
    %c0_i32_0 = arith.constant 0 : i32
    %c0_i32_1 = arith.constant 0 : i32
    return %c0_i32, %c0_i32_0 : i32, i32
  }
  func.func @transform_5(%arg0: i32) -> (i32, i32) {
    %c0_i32 = arith.constant 0 : i32
    %c0_i32_0 = arith.constant 0 : i32
    %c0_i32_1 = arith.constant 0 : i32
    return %c0_i32, %c0_i32_0 : i32, i32
  }
  func.func @transform_6(%arg0: i32) -> (i32, i32) {
    %c0_i32 = arith.constant 0 : i32
    %c0_i32_0 = arith.constant 0 : i32
    %c0_i32_1 = arith.constant 0 : i32
    return %c0_i32, %c0_i32_0 : i32, i32
  }
  func.func @transform_7(%arg0: i32) -> (i32, i32) {
    %c0_i32 = arith.constant 0 : i32
    %c0_i32_0 = arith.constant 0 : i32
    return %arg0, %c0_i32 : i32, i32
  }
}

</mosaic_0001>

<bundles_post_ra>
// kernel: ensemble_forward.1
= control target key start
LH: loop header
LB: loop body
LE: loop exit
PB: predicated region body
PF: predicated region fallthrough
CT: control target
= control target key end

     0   :  { %12 = vsyncpa [#allocation3], 0  ;;  %s12477_s0 = inlined_call_operand.vmem [shape: bf16[16,256,256], index: 0, kind: input, shape index: {}]   ;;  %s12478_s1 = inlined_call_operand.vmem [shape: bf16[16,240,64], index: 1, kind: input, shape index: {}]   ;;  %s12479_s2 = inlined_call_operand.vmem [shape: bf16[256,128], index: 2, kind: input, shape index: {}]   ;;  %s12480_s3 = inlined_call_operand.vmem [shape: bf16[64,64], index: 3, kind: input, shape index: {}]   ;;  %s12481_s4 = inlined_call_operand.vmem [shape: bf16[64,128], index: 4, kind: input, shape index: {}]   ;;  %s12482_s5 = inlined_call_operand.vmem [shape: bf16[256,128], index: 5, kind: input, shape index: {}]   ;;  %s12483_s6 = inlined_call_operand.vmem [shape: f32[3,128], index: 6, kind: input, shape index: {}]   ;;  %s12484_s7 = inlined_call_operand.hbm [shape: f32[16,128], index: 7, kind: output, shape index: {}]  }
   0x1   :  { %14 = vsyncpa [#allocation3 + $0x1], 0  ;;  %s10619_s24 = smov 0   ;;  %s10621_s25 = smov 0  }
   0x2   :  { %s10623_s26 = smov 0   ;;  %s10625_s27 = smov 0  }
   0x3 LB: > { %s10640_s28 = sadd.s32 4294967295, %s10575_s27   ;;  %s8455_s29 = sadd.s32 4294967294, %s10575_s27   ;;  %s10575_s27 = sphi %s10625_s27, %s12606_s27   ;;  %s10571_s26 = sphi %s10623_s26, %s12605_s26   ;;  %s10567_s25 = sphi %s10621_s25, %s12604_s25   ;;  %s10563_s24 = sphi %s10619_s24, %s12603_s24  }
   0x4   : > { %s10644_s30 = sadd.s32 1, %s10575_s27   ;;  %s184_s8 = sadd.s32 1, %s10571_s26 }
   0x5   : > { %s181_s9 = ssub.s32 %s10575_s27, %s10644_s30  ;;  %p194_p0 = scmp.ne.s32.totalorder %s10571_s26, %s10567_s25 }
   0x6   : > { %p182_p1 = scmp.eq.s32.totalorder %s181_s9, 0  ;;  %p195_p2 = scmp.eq.s32.totalorder %s10640_s28, 1 }
   0x7   : > { %p200_p3 = scmp.ne.s32.totalorder %s10567_s25, %s10563_s24  ;;  %p201_p4 = scmp.eq.s32.totalorder %s8455_s29, 1 }
   0x8   : > { %s10655_s10 = scalar_select %p182_p1, %s10571_s26, %s184_s8  }
   0x9   : > { %p10657_p5 = por %p195_p2, %p194_p0  ;;  %p10661_p6 = por %p201_p4, %p200_p3 }
   0xa   : > { %p8458_p7 = scmp.ge.s32.totalorder %s10575_s27, 1  ;;  %p254_p8 = scmp.lt.s32.totalorder %s10575_s27, 3 }
   0xc   : > { %p255_p9 = pnand %p8458_p7, %p254_p8 }
   0xe   : > { %258 = sbr.rel (%p255_p9) target bundleno = 1828 (0x724), region = 48 }
  0x13   : > { %v9965_v0 = vld [vmem:[%s12479_s2 + $0x38] sm:$0xff]   ;;  %v10577_v1 = vmov 0   ;;  %s8460_s15 = sshll.u32 %s10640_s28, 3  ;;  %v9966_v2 = vld [vmem:[%s12479_s2 + $0x30] sm:$0xff]   ;;  %v9967_v3 = vld [vmem:[%s12479_s2 + $0x28] sm:$0xff]   ;;  %vm4210_vm0 = vcmask 523264  }
  0x14   : > { %1973 = vmatprep.subr.bf16.mxu0 %v10577_v1  ;;  %9892 = vmatprep.subr.bf16.mxu1 %v10577_v1  ;;  %p294_p10 = scmp.lt.s32.totalorder %s8460_s15, 15  ;;  %v9968_v4 = vld [vmem:[%s12479_s2 + $0x20] sm:$0xff]   ;;  %v9969_v5 = vld [vmem:[%s12479_s2 + $0x18] sm:$0xff]   ;;  %v9970_v7 = vld [vmem:[%s12479_s2 + $0x10] sm:$0xff]   ;;  %vm8150_vm1 = vcmask 1041409   ;;  %vm8152_vm2 = vcmask 1042434  }
  0x15   : > { %1974 = vmatpush1.bf16.msra.mxu0 %v9965_v0  ;;  %9908 = vmatpush1.bf16.msra.mxu1 %v9965_v0  ;;  %v9971_v9 = vld [vmem:[%s12479_s2 + $0x8] sm:$0xff]   ;;  %v9972_v10 = vld [vmem:[%s12479_s2] sm:$0xff]   ;;  %v9973_v11 = vld [vmem:[%s12479_s2 + $0x78] sm:$0xff]   ;;  %vm8154_vm3 = vcmask 1043459   ;;  %vm8156_vm5 = vcmask 1044484   ;;  %vm8158_vm6 = vcmask 1045509  }
  0x16   : > { %1975 = vmatprep.subr.bf16.mxu0 %v10577_v1  ;;  %9893 = vmatprep.subr.bf16.mxu1 %v10577_v1  ;;  %s12608_s15 = smov (!%p294_p10, %s8460_s15), 15  ;;  %v9974_v12 = vld [vmem:[%s12479_s2 + $0x70] sm:$0xff]   ;;  %v9975_v13 = vld [vmem:[%s12479_s2 + $0x68] sm:$0xff]   ;;  %v9976_v14 = vld [vmem:[%s12479_s2 + $0x60] sm:$0xff]   ;;  %vm8160_vm7 = vcmask 1046534   ;;  %vm8162_vm8 = vcmask 1047559  }
  0x17   : > { %s9125_s22 = sshll.u32 %s12608_s15, 8  ;;  %s9924_s19 = smul.u32 120, %s12608_s15  ;;  %v9977_v15 = vld [vmem:[%s12479_s2 + $0x58] sm:$0xff]   ;;  %v9978_v16 = vld [vmem:[%s12479_s2 + $0x50] sm:$0xff]   ;;  %v9979_v17 = vld [vmem:[%s12479_s2 + $0x48] sm:$0xff]  }
  0x18   : > { %s10697_s13 = scalar_lea.vmem %s12477_s0, %s9125_s22  ;;  %v9980_v18 = vld [vmem:[%s12479_s2 + $0x40] sm:$0xff]   ;;  %v9993_v20 = vld [vmem:[%s12480_s3 + $0x18] sm:$0xff]   ;;  %v9994_v24 = vld [vmem:[%s12480_s3 + $0x10] sm:$0xff]   ;;  %s290_s18 = sand.u32 1, %s10567_s25  }
  0x19   : > { %1976 = vmatpush1.bf16.msra.mxu0 %v9966_v2  ;;  %9909 = vmatpush1.bf16.msra.mxu1 %v9966_v2  ;;  %v9983_v6 = vld [vmem:[%s10697_s13 + $0x4] ss:$8 sps:$4 sm:$0xff]   ;;  %v9986_v8 = vld [vmem:[%s10697_s13 + $0x7d4] ss:$8 sps:$4 sm:$0xff]   ;;  %s10722_s29 = scalar_lea.vmem %s12478_s1, %s9924_s19  ;;  %v9981_v19 = vld [vmem:[%s10697_s13] ss:$8 sps:$4 sm:$0xff]  }
  0x1a   : > { %1977 = vmatprep.subr.bf16.mxu0 %v10577_v1  ;;  %9894 = vmatprep.subr.bf16.mxu1 %v10577_v1  ;;  %v9984_v21 = vld [vmem:[%s10697_s13 + $0x7d0] ss:$8 sps:$4 sm:$0xff]   ;;  %v9987_v22 = vld [vmem:[%s10697_s13 + $0x14] ss:$8 sps:$4 sm:$0xff]   ;;  %v9989_v23 = vld [vmem:[%s10697_s13 + $0x7e4] ss:$8 sps:$4 sm:$0xff]  }
  0x1b   : > { %2005 = vmatprep.mubr.bf16.mxu0 %v9983_v6  ;;  %3005 = vmatprep.mubr.bf16.mxu1 %v9986_v8  ;;  %v9991_v25 = vld [vmem:[%s10697_s13 + $0x10] ss:$8 sps:$4 sm:$0xff]   ;;  %v9992_v26 = vld [vmem:[%s10697_s13 + $0x7e0] ss:$8 sps:$4 sm:$0xff]   ;;  %v9995_v28 = vld [vmem:[%s10697_s13 + $0x24] ss:$8 sps:$4 sm:$0xff]  }
  0x1c   : > { %v10001_v27 = vld [vmem:[%s12480_s3 + $0x8] sm:$0xff]   ;;  %v9997_v29 = vld [vmem:[%s10697_s13 + $0x7f4] ss:$8 sps:$4 sm:$0xff]   ;;  %v10002_v30 = vld [vmem:[%s12480_s3] sm:$0xff]   ;;  %s8459_s19 = sshll.u32 %s290_s18, 3  ;;  %s9122_s20 = sshll.u32 %s10640_s28, 7 }
  0x1d   : > { %1978 = vmatpush1.bf16.msra.mxu0 %v9967_v3  ;;  %9910 = vmatpush1.bf16.msra.mxu1 %v9967_v3  ;;  %v9999_v31 = vld [vmem:[%s10697_s13 + $0x20] ss:$8 sps:$4 sm:$0xff]   ;;  %v10018_v32 = vld [vmem:[%s12481_s4 + $0x18] sm:$0xff]   ;;  %v10008_v38 = vld [vmem:[%s10697_s13 + $0x44] ss:$8 sps:$4 sm:$0xff]   ;;  %s292_s21 = scalar_lea.vmem [#allocation2], %s8459_s19  ;;  %s8382_s8 = scalar_lea.hbm %s12484_s7, %s9122_s20 }
  0x1e   : > { %1979 = vmatprep.subr.bf16.mxu0 %v10577_v1  ;;  %9895 = vmatprep.subr.bf16.mxu1 %v10577_v1  ;;  %v10000_v33 = vld [vmem:[%s10697_s13 + $0x7f0] ss:$8 sps:$4 sm:$0xff]   ;;  %v10003_v34 = vld [vmem:[%s10697_s13 + $0x34] ss:$8 sps:$4 sm:$0xff]   ;;  %v10005_v35 = vld [vmem:[%s10722_s29] sm:$0xff]   ;;  %s10578_s15 = smov [#allocation2]  }
  0x1f   : > { %v10006_v36 = vld [vmem:[%s10697_s13 + $0x30] ss:$8 sps:$4 sm:$0xff]   ;;  %v10007_v37 = vld [vmem:[%s10722_s29 + $0x8] sm:$0xff]   ;;  %v10013_v42 = vld [vmem:[%s10697_s13 + $0x54] ss:$8 sps:$4 sm:$0xff]   ;;  %s10519_s14 = sshll.u32 %s10578_s15, 4  ;;  %s10520_s14 = int_to_ptr.vmem [resolvable:$false] %s10519_s14 }
  0x20   : > { %v10010_v39 = vld [vmem:[%s10722_s29 + $0x10] sm:$0xff]   ;;  %v10011_v40 = vld [vmem:[%s10697_s13 + $0x40] ss:$8 sps:$4 sm:$0xff]   ;;  %v10012_v41 = vld [vmem:[%s10722_s29 + $0x18] sm:$0xff]   ;;  %s10521_s28 = scalar_lea.vmem %s10520_s14, 256 }
  0x21   : > { %1980 = vmatpush1.bf16.msra.mxu0 %v9968_v4  ;;  %9911 = vmatpush1.bf16.msra.mxu1 %v9968_v4  ;;  %v10015_v43 = vld [vmem:[%s10722_s29 + $0x20] sm:$0xff]   ;;  %v10094_v44 = vld [vmem:[%s12481_s4 + $0x10] sm:$0xff]   ;;  %v10017_v46 = vld [vmem:[%s10722_s29 + $0x28] sm:$0xff]  }
  0x22   : > { %1981 = vmatprep.subr.bf16.mxu0 %v10577_v1  ;;  %9896 = vmatprep.subr.bf16.mxu1 %v10577_v1  ;;  %v10016_v45 = vld [vmem:[%s10697_s13 + $0x50] ss:$8 sps:$4 sm:$0xff]   ;;  %v10019_v47 = vld [vmem:[%s10697_s13 + $0x64] ss:$8 sps:$4 sm:$0xff]   ;;  %v10022_v49 = vld [vmem:[%s10697_s13 + $0x60] ss:$8 sps:$4 sm:$0xff]  }
  0x23   : > { %v10021_v48 = vld [vmem:[%s10722_s29 + $0x30] sm:$0xff]   ;;  %v10023_v50 = vld [vmem:[%s10722_s29 + $0x38] sm:$0xff]   ;;  %v10026_v52 = vld [vmem:[%s10722_s29 + $0x40] sm:$0xff]  }
  0x24   : > { %v10024_v51 = vld [vmem:[%s10697_s13 + $0x74] ss:$8 sps:$4 sm:$0xff]   ;;  %v10027_v53 = vld [vmem:[%s10697_s13 + $0x70] ss:$8 sps:$4 sm:$0xff]   ;;  %v10028_v54 = vld [vmem:[%s10722_s29 + $0x48] sm:$0xff]  }
  0x25   : > { %1982 = vmatpush1.bf16.msra.mxu0 %v9969_v5  ;;  %9912 = vmatpush1.bf16.msra.mxu1 %v9969_v5  ;;  %v10029_v55 = vld [vmem:[%s10697_s13 + $0x84] ss:$8 sps:$4 sm:$0xff]   ;;  %v10031_v56 = vld [vmem:[%s10722_s29 + $0x50] sm:$0xff]   ;;  %v10032_v57 = vld [vmem:[%s10697_s13 + $0x80] ss:$8 sps:$4 sm:$0xff]  }
  0x26   : > { %1983 = vmatprep.subr.bf16.mxu0 %v10577_v1  ;;  %9897 = vmatprep.subr.bf16.mxu1 %v10577_v1  ;;  %v10033_v58 = vld [vmem:[%s10722_s29 + $0x58] sm:$0xff]   ;;  %v10036_v60 = vld [vmem:[%s10722_s29 + $0x60] sm:$0xff]   ;;  %v10038_v62 = vld [vmem:[%s10722_s29 + $0x68] sm:$0xff]  }
  0x27   : > { %v10034_v59 = vld [vmem:[%s10697_s13 + $0x94] ss:$8 sps:$4 sm:$0xff]   ;;  %v10037_v61 = vld [vmem:[%s10697_s13 + $0x90] ss:$8 sps:$4 sm:$0xff]   ;;  %v10039_v63 = vld [vmem:[%s10697_s13 + $0xa4] ss:$8 sps:$4 sm:$0xff]  }
  0x28   : > { %v10041_v0 = vld [vmem:[%s10722_s29 + $0x70] sm:$0xff]   ;;  %v10043_v2 = vld [vmem:[%s10722_s29 + $0x78] sm:$0xff]   ;;  %v10046_v4 = vld [vmem:[%s10722_s29 + $0x80] sm:$0xff]  }
  0x29   : > { %1984 = vmatpush1.bf16.msra.mxu0 %v9970_v7  ;;  %9913 = vmatpush1.bf16.msra.mxu1 %v9970_v7  ;;  %v10044_v3 = vld [vmem:[%s10697_s13 + $0xb4] ss:$8 sps:$4 sm:$0xff]   ;;  %v10047_v5 = vld [vmem:[%s10697_s13 + $0xb0] ss:$8 sps:$4 sm:$0xff]   ;;  %v10048_v6 = vld [vmem:[%s10722_s29 + $0x88] sm:$0xff]  }
  0x2a   : > { %1985 = vmatprep.subr.bf16.mxu0 %v10577_v1  ;;  %9898 = vmatprep.subr.bf16.mxu1 %v10577_v1  ;;  %v10049_v7 = vld [vmem:[%s10697_s13 + $0xc4] ss:$8 sps:$4 sm:$0xff]   ;;  %v10051_v8 = vld [vmem:[%s10722_s29 + $0x90] sm:$0xff]  }
  0x2d   : > { %1986 = vmatpush1.bf16.msra.mxu0 %v9971_v9  ;;  %9914 = vmatpush1.bf16.msra.mxu1 %v9971_v9  ;;  %v10052_v9 = vld [vmem:[%s10697_s13 + $0xc0] ss:$8 sps:$4 sm:$0xff]  }
  0x2e   : > { %1987 = vmatprep.subr.bf16.mxu0 %v10577_v1  ;;  %9899 = vmatprep.subr.bf16.mxu1 %v10577_v1 }
  0x31   : > { %1988 = vmatpush1.bf16.msra.mxu0 %v9972_v10  ;;  %9915 = vmatpush1.bf16.msra.mxu1 %v9972_v10  ;;  %v10053_v10 = vld [vmem:[%s10722_s29 + $0x98] sm:$0xff]  }
  0x32   : > { %1989 = vmatprep.subr.bf16.mxu0 %v10577_v1  ;;  %9900 = vmatprep.subr.bf16.mxu1 %v10577_v1 }
  0x35   : > { %1990 = vmatpush2.bf16.msra.mxu0 %v9973_v11  ;;  %9916 = vmatpush2.bf16.msra.mxu1 %v9973_v11  ;;  %v10054_v11 = vld [vmem:[%s10697_s13 + $0xd4] ss:$8 sps:$4 sm:$0xff]  }
  0x36   : > { %1991 = vmatprep.subr.bf16.mxu0 %v10577_v1  ;;  %9901 = vmatprep.subr.bf16.mxu1 %v10577_v1 }
  0x39   : > { %1992 = vmatpush2.bf16.msra.mxu0 %v9974_v12  ;;  %9917 = vmatpush2.bf16.msra.mxu1 %v9974_v12  ;;  %v10056_v12 = vld [vmem:[%s10722_s29 + $0xa0] sm:$0xff]  }
  0x3a   : > { %1993 = vmatprep.subr.bf16.mxu0 %v10577_v1  ;;  %9902 = vmatprep.subr.bf16.mxu1 %v10577_v1 }
  0x3d   : > { %1994 = vmatpush2.bf16.msra.mxu0 %v9975_v13  ;;  %9918 = vmatpush2.bf16.msra.mxu1 %v9975_v13  ;;  %v10057_v13 = vld [vmem:[%s10697_s13 + $0xd0] ss:$8 sps:$4 sm:$0xff]  }
  0x3e   : > { %1995 = vmatprep.subr.bf16.mxu0 %v10577_v1  ;;  %9903 = vmatprep.subr.bf16.mxu1 %v10577_v1 }
  0x41   : > { %1996 = vmatpush2.bf16.msra.mxu0 %v9976_v14  ;;  %9919 = vmatpush2.bf16.msra.mxu1 %v9976_v14  ;;  %v10058_v14 = vld [vmem:[%s10722_s29 + $0xa8] sm:$0xff]  }
  0x42   : > { %1997 = vmatprep.subr.bf16.mxu0 %v10577_v1  ;;  %9904 = vmatprep.subr.bf16.mxu1 %v10577_v1 }
  0x45   : > { %1998 = vmatpush2.bf16.msra.mxu0 %v9977_v15  ;;  %9920 = vmatpush2.bf16.msra.mxu1 %v9977_v15  ;;  %v10059_v15 = vld [vmem:[%s10697_s13 + $0xe4] ss:$8 sps:$4 sm:$0xff]  }
  0x46   : > { %1999 = vmatprep.subr.bf16.mxu0 %v10577_v1  ;;  %9905 = vmatprep.subr.bf16.mxu1 %v10577_v1 }
  0x49   : > { %2000 = vmatpush2.bf16.msra.mxu0 %v9978_v16  ;;  %9921 = vmatpush2.bf16.msra.mxu1 %v9978_v16  ;;  %v10061_v16 = vld [vmem:[%s10722_s29 + $0xb0] sm:$0xff]  }
  0x4a   : > { %2001 = vmatprep.subr.bf16.mxu0 %v10577_v1  ;;  %9906 = vmatprep.subr.bf16.mxu1 %v10577_v1 }
  0x4d   : > { %2002 = vmatpush2.bf16.msra.mxu0 %v9979_v17  ;;  %9922 = vmatpush2.bf16.msra.mxu1 %v9979_v17  ;;  %v10062_v17 = vld [vmem:[%s10697_s13 + $0xe0] ss:$8 sps:$4 sm:$0xff]  }
  0x4e   : > { %2003 = vmatprep.subr.bf16.mxu0 %v10577_v1  ;;  %9907 = vmatprep.subr.bf16.mxu1 %v10577_v1  ;;  %v10042_v1 = vld [vmem:[%s10697_s13 + $0xa0] ss:$8 sps:$4 sm:$0xff]  }
  0x51   : > { %2004 = vmatpush2.bf16.msra.mxu0 %v9980_v18  ;;  %9923 = vmatpush2.bf16.msra.mxu1 %v9980_v18  ;;  %v10063_v18 = vld [vmem:[%s10722_s29 + $0xb8] sm:$0xff]  }
  0x52   : > { %9396 = vmatprep.subr.bf16.mxu1 %v9993_v20 }
  0x54   : > { %2006 = vmatmul.mubr.bf16.vlgmr.msra.gmra.mxu0 %v9981_v19  ;;  %3006 = vmatmul.mubr.bf16.vlgmr.msra.gmra.mxu1 %v9984_v21  ;;  %v10064_v19 = vld [vmem:[%s10697_s13 + $0xf4] ss:$8 sps:$4 sm:$0xff]   ;;  %v10067_v21 = vld [vmem:[%s10697_s13 + $0xf0] ss:$8 sps:$4 sm:$0xff]  }
  0x55   : > { %2013 = vmatprep.mubr.bf16.mxu0 %v9987_v22  ;;  %3013 = vmatprep.mubr.bf16.mxu1 %v9989_v23  ;;  %v10068_v22 = vld [vmem:[%s10722_s29 + $0xc8] sm:$0xff]  }
  0x56   : > { %9397 = vmatpush3.bf16.msra.mxu1 %v9993_v20  ;;  %v10066_v20 = vld [vmem:[%s10722_s29 + $0xc0] sm:$0xff]  }
  0x57   : > { %9398 = vmatprep.subr.bf16.mxu1 %v9994_v24  ;;  %v10069_v23 = vld [vmem:[%s10697_s13 + $0x104] ss:$8 sps:$4 sm:$0xff]  }
  0x5a   : > { %9399 = vmatpush3.bf16.msra.mxu1 %v9994_v24  ;;  %v10071_v24 = vld [vmem:[%s10722_s29 + $0xd0] sm:$0xff]  }
  0x5b   : > { %9400 = vmatprep.subr.bf16.mxu1 %v10001_v27 }
  0x5c   : > { %2014 = vmatmul.mubr.bf16.gmra.mxu0 %v9991_v25  ;;  %3014 = vmatmul.mubr.bf16.gmra.mxu1 %v9992_v26  ;;  %v10072_v25 = vld [vmem:[%s10697_s13 + $0x100] ss:$8 sps:$4 sm:$0xff]   ;;  %v10073_v26 = vld [vmem:[%s10722_s29 + $0xd8] sm:$0xff]  }
  0x5d   : > { %2021 = vmatprep.mubr.bf16.mxu0 %v9995_v28  ;;  %3021 = vmatprep.mubr.bf16.mxu1 %v9997_v29  ;;  %v10076_v28 = vld [vmem:[%s10722_s29 + $0xe0] sm:$0xff]   ;;  %v10077_v29 = vld [vmem:[%s10697_s13 + $0x110] ss:$8 sps:$4 sm:$0xff]  }
  0x5e   : > { %9401 = vmatpush3.bf16.msra.mxu1 %v10001_v27  ;;  %v10074_v27 = vld [vmem:[%s10697_s13 + $0x114] ss:$8 sps:$4 sm:$0xff]  }
  0x5f   : > { %9402 = vmatprep.subr.bf16.mxu1 %v10002_v30 }
  0x62   : > { %9403 = vmatpush3.bf16.msra.mxu1 %v10002_v30  ;;  %v10078_v30 = vld [vmem:[%s10722_s29 + $0xe8] sm:$0xff]  }
  0x63   : > { %9644 = vmatprep.subr.bf16.mxu1 %v10018_v32 }
  0x64   : > { %2022 = vmatmul.mubr.bf16.gmra.mxu0 %v9999_v31  ;;  %3022 = vmatmul.mubr.bf16.gmra.mxu1 %v10000_v33  ;;  %v10079_v31 = vld [vmem:[%s10697_s13 + $0x124] ss:$8 sps:$4 sm:$0xff]   ;;  %v10082_v33 = vld [vmem:[%s10697_s13 + $0x120] ss:$8 sps:$4 sm:$0xff]  }
  0x65   : > { %2029 = vmatprep.mubr.bf16.mxu0 %v10003_v34  ;;  %9404 = vmatprep.mubr.msk.bf16.mxu1 %vm4210_vm0, %v10005_v35  ;;  %v10083_v34 = vld [vmem:[%s10722_s29 + $0xf8] sm:$0xff]  }
  0x66   : > { %v10084_v35 = vld [vmem:[%s10697_s13 + $0x134] ss:$8 sps:$4 sm:$0xff]  }
  0x6c   : > { %2030 = vmatmul.mubr.bf16.gmra.mxu0 %v10006_v36  ;;  %9405 = vmatmul.mubr.msk.bf16.vlgmr.msra.gmra.mxu1 %vm4210_vm0, %v10007_v37  ;;  %v10086_v36 = vld [vmem:[%s10722_s29 + $0x100] sm:$0xff]   ;;  %v10087_v37 = vld [vmem:[%s10697_s13 + $0x130] ss:$8 sps:$4 sm:$0xff]  }
  0x6d   : > { %2037 = vmatprep.mubr.bf16.mxu0 %v10008_v38  ;;  %9408 = vmatprep.mubr.msk.bf16.mxu1 %vm4210_vm0, %v10010_v39  ;;  %v10088_v38 = vld [vmem:[%s10722_s29 + $0x108] sm:$0xff]  }
  0x6e   : > { %9645 = vmatpush3.bf16.msra.mxu1 %v10018_v32  ;;  %v10081_v32 = vld [vmem:[%s10722_s29 + $0xf0] sm:$0xff]   ;;  %v10089_v39 = vld [vmem:[%s10697_s13 + $0x144] ss:$8 sps:$4 sm:$0xff]  }
  0x6f   : > { %9646 = vmatprep.subr.bf16.mxu1 %v10094_v44 }
  0x72   : > { %9647 = vmatpush3.bf16.msra.mxu1 %v10094_v44  ;;  %v10097_v44 = vld [vmem:[%s10722_s29 + $0x120] sm:$0xff]  }
  0x74   : > { %2038 = vmatmul.mubr.bf16.gmra.mxu0 %v10011_v40  ;;  %9409 = vmatmul.mubr.msk.bf16.gmra.mxu1 %vm4210_vm0, %v10012_v41  ;;  %v10091_v40 = vld [vmem:[%s10722_s29 + $0x110] sm:$0xff]   ;;  %v10092_v41 = vld [vmem:[%s10697_s13 + $0x140] ss:$8 sps:$4 sm:$0xff]  }
  0x75   : > { %2045 = vmatprep.mubr.bf16.mxu0 %v10013_v42  ;;  %9412 = vmatprep.mubr.msk.bf16.mxu1 %vm4210_vm0, %v10015_v43  ;;  %v10093_v42 = vld [vmem:[%s10722_s29 + $0x118] sm:$0xff]  }
  0x76   : > { %v10095_v43 = vld [vmem:[%s10697_s13 + $0x154] ss:$8 sps:$4 sm:$0xff]  }
  0x7c   : > { %2046 = vmatmul.mubr.bf16.gmra.mxu0 %v10016_v45  ;;  %9413 = vmatmul.mubr.msk.bf16.gmra.mxu1 %vm4210_vm0, %v10017_v46  ;;  %v10170_v45 = vld [vmem:[%s12481_s4 + $0x8] sm:$0xff]   ;;  %v10098_v46 = vld [vmem:[%s10697_s13 + $0x150] ss:$8 sps:$4 sm:$0xff]  }
  0x7d   : > { %2053 = vmatprep.mubr.bf16.mxu0 %v10019_v47  ;;  %9416 = vmatprep.mubr.msk.bf16.mxu1 %vm4210_vm0, %v10021_v48  ;;  %v10099_v47 = vld [vmem:[%s10722_s29 + $0x128] sm:$0xff]  }
  0x7e   : > { %9648 = vmatprep.subr.bf16.mxu1 %v10170_v45  ;;  %v10100_v48 = vld [vmem:[%s10697_s13 + $0x164] ss:$8 sps:$4 sm:$0xff]  }
  0x7f   : > { %9649 = vmatpush3.bf16.msra.mxu1 %v10170_v45 }
  0x84   : > { %2054 = vmatmul.mubr.bf16.gmra.mxu0 %v10022_v49  ;;  %9417 = vmatmul.mubr.msk.bf16.gmra.mxu1 %vm4210_vm0, %v10023_v50  ;;  %v10102_v49 = vld [vmem:[%s10722_s29 + $0x130] sm:$0xff]   ;;  %v10103_v50 = vld [vmem:[%s10697_s13 + $0x160] ss:$8 sps:$4 sm:$0xff]  }
  0x85   : > { %2061 = vmatprep.mubr.bf16.mxu0 %v10024_v51  ;;  %9420 = vmatprep.mubr.msk.bf16.mxu1 %vm4210_vm0, %v10026_v52  ;;  %v10104_v51 = vld [vmem:[%s10722_s29 + $0x138] sm:$0xff]  }
  0x86   : > { %v10105_v52 = vld [vmem:[%s10697_s13 + $0x174] ss:$8 sps:$4 sm:$0xff]  }
  0x8c   : > { %2062 = vmatmul.mubr.bf16.gmra.mxu0 %v10027_v53  ;;  %9421 = vmatmul.mubr.msk.bf16.gmra.mxu1 %vm4210_vm0, %v10028_v54  ;;  %v10107_v53 = vld [vmem:[%s10722_s29 + $0x140] sm:$0xff]   ;;  %v10108_v54 = vld [vmem:[%s10697_s13 + $0x170] ss:$8 sps:$4 sm:$0xff]  }
  0x8d   : > { %2069 = vmatprep.mubr.bf16.mxu0 %v10029_v55  ;;  %9424 = vmatprep.mubr.msk.bf16.mxu1 %vm4210_vm0, %v10031_v56  ;;  %v10109_v55 = vld [vmem:[%s10722_s29 + $0x148] sm:$0xff]  }
  0x8e   : > { %v10110_v56 = vld [vmem:[%s10697_s13 + $0x184] ss:$8 sps:$4 sm:$0xff]  }
  0x94   : > { %2070 = vmatmul.mubr.bf16.gmra.mxu0 %v10032_v57  ;;  %9425 = vmatmul.mubr.msk.bf16.gmra.mxu1 %vm4210_vm0, %v10033_v58  ;;  %v10112_v57 = vld [vmem:[%s10722_s29 + $0x150] sm:$0xff]   ;;  %v10113_v58 = vld [vmem:[%s10697_s13 + $0x180] ss:$8 sps:$4 sm:$0xff]  }
  0x95   : > { %2077 = vmatprep.mubr.bf16.mxu0 %v10034_v59  ;;  %9428 = vmatprep.mubr.msk.bf16.mxu1 %vm4210_vm0, %v10036_v60  ;;  %v10114_v59 = vld [vmem:[%s10722_s29 + $0x158] sm:$0xff]  }
  0x96   : > { %v10115_v60 = vld [vmem:[%s10697_s13 + $0x194] ss:$8 sps:$4 sm:$0xff]  }
  0x9c   : > { %2078 = vmatmul.mubr.bf16.gmra.mxu0 %v10037_v61  ;;  %9429 = vmatmul.mubr.msk.bf16.gmra.mxu1 %vm4210_vm0, %v10038_v62  ;;  %v10117_v61 = vld [vmem:[%s10722_s29 + $0x160] sm:$0xff]  }
  0x9d   : > { %2085 = vmatprep.mubr.bf16.mxu0 %v10039_v63  ;;  %9432 = vmatprep.mubr.msk.bf16.mxu1 %vm4210_vm0, %v10041_v0 }
  0xa4   : > { %2086 = vmatmul.mubr.bf16.gmra.mxu0 %v10042_v1  ;;  %9433 = vmatmul.mubr.msk.bf16.gmra.mxu1 %vm4210_vm0, %v10043_v2 }
  0xa5   : > { %2093 = vmatprep.mubr.bf16.mxu0 %v10044_v3  ;;  %9436 = vmatprep.mubr.msk.bf16.mxu1 %vm4210_vm0, %v10046_v4  ;;  %v10118_v4 = vld [vmem:[%s10697_s13 + $0x190] ss:$8 sps:$4 sm:$0xff]  }
  0xac   : > { %2094 = vmatmul.mubr.bf16.gmra.mxu0 %v10047_v5  ;;  %9437 = vmatmul.mubr.msk.bf16.gmra.mxu1 %vm4210_vm0, %v10048_v6  ;;  %v10119_v5 = vld [vmem:[%s10722_s29 + $0x168] sm:$0xff]  }
  0xad   : > { %2101 = vmatprep.mubr.bf16.mxu0 %v10049_v7  ;;  %9440 = vmatprep.mubr.msk.bf16.mxu1 %vm4210_vm0, %v10051_v8  ;;  %v10120_v7 = vld [vmem:[%s10697_s13 + $0x1a4] ss:$8 sps:$4 sm:$0xff]   ;;  %v10122_v8 = vld [vmem:[%s10722_s29 + $0x170] sm:$0xff]  }
  0xb4   : > { %2102 = vmatmul.mubr.bf16.gmra.mxu0 %v10052_v9  ;;  %9441 = vmatmul.mubr.msk.bf16.gmra.mxu1 %vm4210_vm0, %v10053_v10 }
  0xb5   : > { %2109 = vmatprep.mubr.bf16.mxu0 %v10054_v11  ;;  %9444 = vmatprep.mubr.msk.bf16.mxu1 %vm4210_vm0, %v10056_v12 }
  0xbc   : > { %2110 = vmatmul.mubr.bf16.gmra.mxu0 %v10057_v13  ;;  %9445 = vmatmul.mubr.msk.bf16.gmra.mxu1 %vm4210_vm0, %v10058_v14  ;;  %v12485_v14 = vlaneseq }
  0xbd   : > { %2117 = vmatprep.mubr.bf16.mxu0 %v10059_v15  ;;  %9448 = vmatprep.mubr.msk.bf16.mxu1 %vm4210_vm0, %v10061_v16 }
  0xc4   : > { %2118 = vmatmul.mubr.bf16.gmra.mxu0 %v10062_v17  ;;  %9449 = vmatmul.mubr.msk.bf16.gmra.mxu1 %vm4210_vm0, %v10063_v18 }
  0xc5   : > { %2125 = vmatprep.mubr.bf16.mxu0 %v10064_v19  ;;  %9452 = vmatprep.mubr.msk.bf16.mxu1 %vm4210_vm0, %v10066_v20  ;;  %v10123_v19 = vld [vmem:[%s10697_s13 + $0x1a0] ss:$8 sps:$4 sm:$0xff]   ;;  %v10124_v20 = vld [vmem:[%s10722_s29 + $0x178] sm:$0xff]  }
  0xcc   : > { %2126 = vmatmul.mubr.bf16.gmra.mxu0 %v10067_v21  ;;  %9453 = vmatmul.mubr.msk.bf16.gmra.mxu1 %vm4210_vm0, %v10068_v22  ;;  %v10125_v22 = vld [vmem:[%s10697_s13 + $0x1b4] ss:$8 sps:$4 sm:$0xff]  }
  0xcd   : > { %2133 = vmatprep.mubr.bf16.mxu0 %v10069_v23  ;;  %9456 = vmatprep.mubr.msk.bf16.mxu1 %vm4210_vm0, %v10071_v24  ;;  %v10127_v23 = vld [vmem:[%s10722_s29 + $0x180] sm:$0xff]   ;;  %v10949_v24 = vshrl.u32 %v12485_v14, 7 }
  0xce   : > { %v10229_v14 = vld [vmem:[%s10722_s29 + $0x2c0] sm:$0xff]  }
  0xcf   : > { %12494 = vst [vmem:[#allocation9_spill] sm:$0xff] %v10949_v24 }
  0xd4   : > { %2134 = vmatmul.mubr.bf16.gmra.mxu0 %v10072_v25  ;;  %9457 = vmatmul.mubr.msk.bf16.gmra.mxu1 %vm4210_vm0, %v10073_v26 }
  0xd5   : > { %2141 = vmatprep.mubr.bf16.mxu0 %v10074_v27  ;;  %9460 = vmatprep.mubr.msk.bf16.mxu1 %vm4210_vm0, %v10076_v28 }
  0xdc   : > { %2142 = vmatmul.mubr.bf16.gmra.mxu0 %v10077_v29  ;;  %9461 = vmatmul.mubr.msk.bf16.gmra.mxu1 %vm4210_vm0, %v10078_v30  ;;  %v3584_v30 = vsub.s32 0, %v10949_v24 }
  0xdd   : > { %2149 = vmatprep.mubr.bf16.mxu0 %v10079_v31  ;;  %9464 = vmatprep.mubr.msk.bf16.mxu1 %vm4210_vm0, %v10081_v32 }
  0xe4   : > { %2150 = vmatmul.mubr.bf16.gmra.mxu0 %v10082_v33  ;;  %9465 = vmatmul.mubr.msk.bf16.gmra.mxu1 %vm4210_vm0, %v10083_v34  ;;  %v308_v33 = vld [vmem:[%s12483_s6] sm:$0x7] }
  0xe5   : > { %2157 = vmatprep.mubr.bf16.mxu0 %v10084_v35  ;;  %9468 = vmatprep.mubr.msk.bf16.mxu1 %vm4210_vm0, %v10086_v36  ;;  %v10128_v36 = vld [vmem:[%s10697_s13 + $0x1b0] ss:$8 sps:$4 sm:$0xff]  }
  0xec   : > { %2158 = vmatmul.mubr.bf16.gmra.mxu0 %v10087_v37  ;;  %9469 = vmatmul.mubr.msk.bf16.gmra.mxu1 %vm4210_vm0, %v10088_v38  ;;  %v10129_v37 = vld [vmem:[%s10722_s29 + $0x188] sm:$0xff]  }
  0xed   : > { %2165 = vmatprep.mubr.bf16.mxu0 %v10089_v39  ;;  %9472 = vmatprep.mubr.msk.bf16.mxu1 %vm4210_vm0, %v10091_v40  ;;  %v10963_v39 = vrot.slane %v308_v33, %v3584_v30  ;;  %v10132_v40 = vld [vmem:[%s10697_s13 + $0x1c4] ss:$8 sps:$4 sm:$0xff]  }
  0xf4   : > { %2166 = vmatmul.mubr.bf16.gmra.mxu0 %v10092_v41  ;;  %9473 = vmatmul.mubr.msk.bf16.gmra.mxu1 %vm4210_vm0, %v10093_v42  ;;  %v10133_v41 = vld [vmem:[%s10722_s29 + $0x190] sm:$0xff]  }
  0xf5   : > { %2173 = vmatprep.mubr.bf16.mxu0 %v10095_v43  ;;  %9476 = vmatprep.mubr.msk.bf16.mxu1 %vm4210_vm0, %v10097_v44 }
  0xfc   : > { %2174 = vmatmul.mubr.bf16.gmra.mxu0 %v10098_v46  ;;  %9477 = vmatmul.mubr.msk.bf16.gmra.mxu1 %vm4210_vm0, %v10099_v47 }
  0xfd   : > { %2181 = vmatprep.mubr.bf16.mxu0 %v10100_v48  ;;  %9480 = vmatprep.mubr.msk.bf16.mxu1 %vm4210_vm0, %v10102_v49 }
 0x104   : > { %2182 = vmatmul.mubr.bf16.gmra.mxu0 %v10103_v50  ;;  %9481 = vmatmul.mubr.msk.bf16.gmra.mxu1 %vm4210_vm0, %v10104_v51 }
 0x105   : > { %2189 = vmatprep.mubr.bf16.mxu0 %v10105_v52  ;;  %9484 = vmatprep.mubr.msk.bf16.mxu1 %vm4210_vm0, %v10107_v53  ;;  %v10130_v53 = vld [vmem:[%s10697_s13 + $0x1c0] ss:$8 sps:$4 sm:$0xff]  }
 0x10c   : > { %2190 = vmatmul.mubr.bf16.gmra.mxu0 %v10108_v54  ;;  %9485 = vmatmul.mubr.msk.bf16.gmra.mxu1 %vm4210_vm0, %v10109_v55  ;;  %v10134_v54 = vld [vmem:[%s10722_s29 + $0x198] sm:$0xff]  }
 0x10d   : > { %2197 = vmatprep.mubr.bf16.mxu0 %v10110_v56  ;;  %9488 = vmatprep.mubr.msk.bf16.mxu1 %vm4210_vm0, %v10112_v57 }
 0x114   : > { %v2007_v62 = vpop.f32.mrf.mxu0  ;;  %2198 = vmatmul.mubr.bf16.gmra.mxu0 %v10113_v58  ;;  %v10928_v63 = vpop.f32.mrf.mxu1  ;;  %9489 = vmatmul.mubr.msk.bf16.gmra.mxu1 %vm4210_vm0, %v10114_v59  ;;  %v10137_v58 = vld [vmem:[%s10697_s13 + $0x1d4] ss:$8 sps:$4 sm:$0xff]   ;;  %v10138_v59 = vld [vmem:[%s10722_s29 + $0x1a0] sm:$0xff]  }
 0x115   : > { %12490 = vst [vmem:[#allocation5_spill] sm:$0xff] %v10928_v63  ;;  %2205 = vmatprep.mubr.bf16.mxu0 %v10115_v60  ;;  %9492 = vmatprep.mubr.msk.bf16.mxu1 %vm4210_vm0, %v10117_v61  ;;  %v10244_v63 = vld [vmem:[%s10722_s29 + $0x2f0] sm:$0xff]  }
 0x116   : > { %v2009_v0 = vpop.f32.mrf.mxu0  ;;  %v3009_v1 = vpop.f32.mrf.mxu1 }
 0x118   : > { %v2010_v2 = vpop.f32.mrf.mxu0  ;;  %v10932_v3 = vpop.f32.mrf.mxu1 }
 0x119   : > { %12491 = vst [vmem:[#allocation6_spill] sm:$0xff] %v10932_v3  ;;  %v3030_v6 = vadd.f32 %v2010_v2, %v2007_v62 }
 0x11a   : > { %v2012_v9 = vpop.f32.mrf.mxu0  ;;  %v3012_v10 = vpop.f32.mrf.mxu1 }
 0x11c   : > { %v2015_v11 = vpop.f32.mrf.mxu0  ;;  %2206 = vmatmul.mubr.bf16.gmra.mxu0 %v10118_v4  ;;  %v10938_v12 = vpop.f32.mrf.mxu1  ;;  %9493 = vmatmul.mubr.msk.bf16.gmra.mxu1 %vm4210_vm0, %v10119_v5 }
 0x11d   : > { %12492 = vst [vmem:[#allocation7_spill] sm:$0xff] %v10938_v12  ;;  %v3031_v13 = vadd.f32 %v3030_v6, %v2015_v11  ;;  %2213 = vmatprep.mubr.bf16.mxu0 %v10120_v7  ;;  %9496 = vmatprep.mubr.msk.bf16.mxu1 %vm4210_vm0, %v10122_v8  ;;  %v10239_v12 = vld [vmem:[%s10722_s29 + $0x2e0] sm:$0xff]  }
 0x11e   : > { %v2017_v15 = vpop.f32.mrf.mxu0  ;;  %v3017_v16 = vpop.f32.mrf.mxu1 }
 0x120   : > { %v2018_v17 = vpop.f32.mrf.mxu0  ;;  %v10942_v18 = vpop.f32.mrf.mxu1 }
 0x121   : > { %12493 = vst [vmem:[#allocation8_spill] sm:$0xff] %v10942_v18  ;;  %v3032_v21 = vadd.f32 %v3031_v13, %v2018_v17  ;;  %v10135_v17 = vld [vmem:[%s10697_s13 + $0x1d0] ss:$8 sps:$4 sm:$0xff]  }
 0x122   : > { %v2020_v25 = vpop.f32.mrf.mxu0  ;;  %v3020_v26 = vpop.f32.mrf.mxu1 }
 0x123   : > { %v10143_v25 = vld [vmem:[%s10722_s29 + $0x1b0] sm:$0xff]  }
 0x124   : > { %v2023_v27 = vpop.f32.mrf.mxu0  ;;  %2214 = vmatmul.mubr.bf16.gmra.mxu0 %v10123_v19  ;;  %v10951_v28 = vpop.f32.mrf.mxu1  ;;  %9497 = vmatmul.mubr.msk.bf16.gmra.mxu1 %vm4210_vm0, %v10124_v20  ;;  %v10139_v19 = vld [vmem:[%s10722_s29 + $0x1a8] sm:$0xff]  }
 0x125   : > { %12495 = vst [vmem:[#allocation10_spill] sm:$0xff] %v10951_v28  ;;  %v3033_v29 = vadd.f32 %v3032_v21, %v2023_v27  ;;  %2221 = vmatprep.mubr.bf16.mxu0 %v10125_v22  ;;  %9500 = vmatprep.mubr.msk.bf16.mxu1 %vm4210_vm0, %v10127_v23  ;;  %v10142_v23 = vld [vmem:[%s10697_s13 + $0x1e4] ss:$8 sps:$4 sm:$0xff]   ;;  %v10234_v28 = vld [vmem:[%s10722_s29 + $0x2d0] sm:$0xff]  }
 0x126   : > { %v2025_v31 = vpop.f32.mrf.mxu0  ;;  %v3025_v32 = vpop.f32.mrf.mxu1 }
 0x128   : > { %v2026_v34 = vpop.f32.mrf.mxu0  ;;  %v10959_v35 = vpop.f32.mrf.mxu1 }
 0x129   : > { %12496 = vst [vmem:[#allocation11_spill] sm:$0xff] %v10959_v35  ;;  %v3034_v38 = vadd.f32 %v3033_v29, %v2026_v34 }
 0x12a   : > { %v2028_v42 = vpop.f32.mrf.mxu0  ;;  %v3028_v43 = vpop.f32.mrf.mxu1 }
 0x12c   : > { %v2031_v44 = vpop.f32.mrf.mxu0  ;;  %2222 = vmatmul.mubr.bf16.gmra.mxu0 %v10128_v36  ;;  %v9406_v45 = vpop.f32.mrf.mxu1  ;;  %9501 = vmatmul.mubr.msk.bf16.gmra.mxu1 %vm4210_vm0, %v10129_v37 }
 0x12d   : > { %v3035_v46 = vadd.f32 %v3034_v38, %v2031_v44  ;;  %v4614_v47 = vadd.f32 %v9406_v45, %v10963_v39  ;;  %2229 = vmatprep.mubr.bf16.mxu0 %v10132_v40  ;;  %9504 = vmatprep.mubr.msk.bf16.mxu1 %vm4210_vm0, %v10133_v41 }
 0x12e   : > { %v2033_v48 = vpop.f32.mrf.mxu0  ;;  %v4605_v49 = vpop.f32.mrf.mxu1 }
 0x12f   : > { %v4606_v50 = vadd.f32 %v4605_v49, %v10963_v39  ;;  %v5566_v55 = vmax.f32 %v4614_v47, 0.0  ;;  %v10144_v47 = vld [vmem:[%s10722_s29 + $0x1b8] sm:$0xff]  }
 0x130   : > { %v2034_v51 = vpop.f32.mrf.mxu0  ;;  %v9407_v52 = vpop.f32.mrf.mxu1 }
 0x131   : > { %v3036_v56 = vadd.f32 %v3035_v46, %v2034_v51  ;;  %v4617_v57 = vadd.f32 %v9407_v52, %v10963_v39  ;;  %v5564_v62 = vmax.f32 %v4606_v50, 0.0  ;;  %v10140_v46 = vld [vmem:[%s10697_s13 + $0x1e0] ss:$8 sps:$4 sm:$0xff]   ;;  %v10147_v51 = vld [vmem:[%s10697_s13 + $0x1f4] ss:$8 sps:$4 sm:$0xff]  }
 0x132   : > { %v2036_v60 = vpop.f32.mrf.mxu0  ;;  %v4608_v61 = vpop.f32.mrf.mxu1  ;;  %v10148_v52 = vld [vmem:[%s10722_s29 + $0x1c0] sm:$0xff]  }
 0x133   : > { %v5567_v0 = vmax.f32 %v4617_v57, 0.0  ;;  %v4609_v1 = vadd.f32 %v4608_v61, %v10963_v39 }
 0x134   : > { %v2039_v2 = vpop.f32.mrf.mxu0  ;;  %2230 = vmatmul.mubr.bf16.gmra.mxu0 %v10130_v53  ;;  %v9410_v4 = vpop.f32.mrf.mxu1  ;;  %9505 = vmatmul.mubr.msk.bf16.gmra.mxu1 %vm4210_vm0, %v10134_v54 }
 0x135   : > { %v10978_v5 = vpack.c.bf16 %v5567_v0, %v5566_v55  ;;  %v5565_v6 = vmax.f32 %v4609_v1, 0.0  ;;  %v3037_v7 = vadd.f32 %v3036_v56, %v2039_v2  ;;  %v4630_v8 = vadd.f32 %v9410_v4, %v10963_v39  ;;  %2237 = vmatprep.mubr.bf16.mxu0 %v10137_v58  ;;  %9508 = vmatprep.mubr.msk.bf16.mxu1 %vm4210_vm0, %v10138_v59 }
 0x136   : > { %v2041_v9 = vpop.f32.mrf.mxu0  ;;  %v4621_v10 = vpop.f32.mrf.mxu1 }
 0x137   : > { %v10982_v11 = vpack.c.bf16 %v5565_v6, %v5564_v62  ;;  %v4622_v13 = vadd.f32 %v4621_v10, %v10963_v39  ;;  %v5570_v20 = vmax.f32 %v4630_v8, 0.0  ;;  %v10145_v9 = vld [vmem:[%s10697_s13 + $0x1f0] ss:$8 sps:$4 sm:$0xff]   ;;  %v10149_v10 = vld [vmem:[%s10722_s29 + $0x1c8] sm:$0xff]  }
 0x138   : > { %v2042_v15 = vpop.f32.mrf.mxu0  ;;  %v9411_v16 = vpop.f32.mrf.mxu1 }
 0x139   : > { %v3038_v21 = vadd.f32 %v3037_v7, %v2042_v15  ;;  %v4633_v22 = vadd.f32 %v9411_v16, %v10963_v39  ;;  %v5568_v29 = vmax.f32 %v4622_v13, 0.0 }
 0x13a   : > { %v2044_v26 = vpop.f32.mrf.mxu0  ;;  %v4624_v27 = vpop.f32.mrf.mxu1 }
 0x13b   : > { %v5571_v30 = vmax.f32 %v4633_v22, 0.0  ;;  %v4625_v31 = vadd.f32 %v4624_v27, %v10963_v39 }
 0x13c   : > { %v2047_v32 = vpop.f32.mrf.mxu0  ;;  %2238 = vmatmul.mubr.bf16.gmra.mxu0 %v10135_v17  ;;  %v9414_v33 = vpop.f32.mrf.mxu1  ;;  %9509 = vmatmul.mubr.msk.bf16.gmra.mxu1 %vm4210_vm0, %v10139_v19  ;;  %v10152_v17 = vld [vmem:[%s10697_s13 + $0x204] ss:$8 sps:$4 sm:$0xff]   ;;  %v10153_v19 = vld [vmem:[%s10722_s29 + $0x1d0] sm:$0xff]  }
 0x13d   : > { %v10992_v34 = vpack.c.bf16 %v5571_v30, %v5570_v20  ;;  %v5569_v36 = vmax.f32 %v4625_v31, 0.0  ;;  %v3039_v37 = vadd.f32 %v3038_v21, %v2047_v32  ;;  %v4646_v38 = vadd.f32 %v9414_v33, %v10963_v39  ;;  %2245 = vmatprep.mubr.bf16.mxu0 %v10142_v23  ;;  %9512 = vmatprep.mubr.msk.bf16.mxu1 %vm4210_vm0, %v10143_v25 }
 0x13e   : > { %v2049_v40 = vpop.f32.mrf.mxu0  ;;  %v4637_v41 = vpop.f32.mrf.mxu1 }
 0x13f   : > { %v10996_v42 = vpack.c.bf16 %v5569_v36, %v5568_v29  ;;  %v4638_v43 = vadd.f32 %v4637_v41, %v10963_v39  ;;  %v5574_v48 = vmax.f32 %v4646_v38, 0.0 }
 0x140   : > { %v2050_v44 = vpop.f32.mrf.mxu0  ;;  %v9415_v45 = vpop.f32.mrf.mxu1 }
 0x141   : > { %v3040_v49 = vadd.f32 %v3039_v37, %v2050_v44  ;;  %v4649_v50 = vadd.f32 %v9415_v45, %v10963_v39  ;;  %v5572_v55 = vmax.f32 %v4638_v43, 0.0  ;;  %v10150_v43 = vld [vmem:[%s10697_s13 + $0x200] ss:$8 sps:$4 sm:$0xff]   ;;  %v10154_v44 = vld [vmem:[%s10722_s29 + $0x1d8] sm:$0xff]  }
 0x142   : > { %v2052_v53 = vpop.f32.mrf.mxu0  ;;  %v4640_v54 = vpop.f32.mrf.mxu1 }
 0x143   : > { %v5575_v56 = vmax.f32 %v4649_v50, 0.0  ;;  %v4641_v57 = vadd.f32 %v4640_v54, %v10963_v39 }
 0x144   : > { %v2055_v58 = vpop.f32.mrf.mxu0  ;;  %2246 = vmatmul.mubr.bf16.gmra.mxu0 %v10140_v46  ;;  %v9418_v59 = vpop.f32.mrf.mxu1  ;;  %9513 = vmatmul.mubr.msk.bf16.gmra.mxu1 %vm4210_vm0, %v10144_v47 }
 0x145   : > { %v11006_v60 = vpack.c.bf16 %v5575_v56, %v5574_v48  ;;  %v5573_v61 = vmax.f32 %v4641_v57, 0.0  ;;  %v3041_v62 = vadd.f32 %v3040_v49, %v2055_v58  ;;  %v4662_v0 = vadd.f32 %v9418_v59, %v10963_v39  ;;  %2253 = vmatprep.mubr.bf16.mxu0 %v10147_v51  ;;  %9516 = vmatprep.mubr.msk.bf16.mxu1 %vm4210_vm0, %v10148_v52  ;;  %v10157_v48 = vld [vmem:[%s10697_s13 + $0x214] ss:$8 sps:$4 sm:$0xff]   ;;  %v10158_v49 = vld [vmem:[%s10722_s29 + $0x1e0] sm:$0xff]  }
 0x146   : > { %v2057_v1 = vpop.f32.mrf.mxu0  ;;  %v4653_v2 = vpop.f32.mrf.mxu1 }
 0x147   : > { %v11010_v4 = vpack.c.bf16 %v5573_v61, %v5572_v55  ;;  %v4654_v6 = vadd.f32 %v4653_v2, %v10963_v39  ;;  %v5578_v13 = vmax.f32 %v4662_v0, 0.0 }
 0x148   : > { %v2058_v7 = vpop.f32.mrf.mxu0  ;;  %v9419_v8 = vpop.f32.mrf.mxu1 }
 0x149   : > { %v3042_v15 = vadd.f32 %v3041_v62, %v2058_v7  ;;  %v4665_v16 = vadd.f32 %v9419_v8, %v10963_v39  ;;  %v5576_v22 = vmax.f32 %v4654_v6, 0.0  ;;  %v10155_v8 = vld [vmem:[%s10697_s13 + $0x210] ss:$8 sps:$4 sm:$0xff]  }
 0x14a   : > { %v2060_v20 = vpop.f32.mrf.mxu0  ;;  %v4656_v21 = vpop.f32.mrf.mxu1 }
 0x14b   : > { %v5579_v23 = vmax.f32 %v4665_v16, 0.0  ;;  %v4657_v25 = vadd.f32 %v4656_v21, %v10963_v39  ;;  %v10162_v16 = vld [vmem:[%s10697_s13 + $0x224] ss:$8 sps:$4 sm:$0xff]  }
 0x14c   : > { %v2063_v26 = vpop.f32.mrf.mxu0  ;;  %2254 = vmatmul.mubr.bf16.gmra.mxu0 %v10145_v9  ;;  %v9422_v27 = vpop.f32.mrf.mxu1  ;;  %9517 = vmatmul.mubr.msk.bf16.gmra.mxu1 %vm4210_vm0, %v10149_v10  ;;  %v10159_v9 = vld [vmem:[%s10722_s29 + $0x1e8] sm:$0xff]  }
 0x14d   : > { %v11020_v29 = vpack.c.bf16 %v5579_v23, %v5578_v13  ;;  %v5577_v30 = vmax.f32 %v4657_v25, 0.0  ;;  %v3043_v31 = vadd.f32 %v3042_v15, %v2063_v26  ;;  %v4678_v32 = vadd.f32 %v9422_v27, %v10963_v39  ;;  %2261 = vmatprep.mubr.bf16.mxu0 %v10152_v17  ;;  %9520 = vmatprep.mubr.msk.bf16.mxu1 %vm4210_vm0, %v10153_v19  ;;  %v10163_v17 = vld [vmem:[%s10722_s29 + $0x1f0] sm:$0xff]  }
 0x14e   : > { %v2065_v33 = vpop.f32.mrf.mxu0  ;;  %v4669_v36 = vpop.f32.mrf.mxu1 }
 0x14f   : > { %v11024_v37 = vpack.c.bf16 %v5577_v30, %v5576_v22  ;;  %v4670_v38 = vadd.f32 %v4669_v36, %v10963_v39  ;;  %v5582_v45 = vmax.f32 %v4678_v32, 0.0 }
 0x150   : > { %v2066_v40 = vpop.f32.mrf.mxu0  ;;  %v9423_v41 = vpop.f32.mrf.mxu1 }
 0x151   : > { %v3044_v46 = vadd.f32 %v3043_v31, %v2066_v40  ;;  %v4681_v47 = vadd.f32 %v9423_v41, %v10963_v39  ;;  %v5580_v52 = vmax.f32 %v4670_v38, 0.0 }
 0x152   : > { %v2068_v50 = vpop.f32.mrf.mxu0  ;;  %v4672_v51 = vpop.f32.mrf.mxu1 }
 0x153   : > { %v5583_v53 = vmax.f32 %v4681_v47, 0.0  ;;  %v4673_v54 = vadd.f32 %v4672_v51, %v10963_v39  ;;  %v10168_v50 = vld [vmem:[%s10722_s29 + $0x200] sm:$0xff]  }
 0x154   : > { %v2071_v55 = vpop.f32.mrf.mxu0  ;;  %2262 = vmatmul.mubr.bf16.gmra.mxu0 %v10150_v43  ;;  %v9426_v56 = vpop.f32.mrf.mxu1  ;;  %9521 = vmatmul.mubr.msk.bf16.gmra.mxu1 %vm4210_vm0, %v10154_v44  ;;  %v10160_v44 = vld [vmem:[%s10697_s13 + $0x220] ss:$8 sps:$4 sm:$0xff]  }
 0x155   : > { %v11034_v57 = vpack.c.bf16 %v5583_v53, %v5582_v45  ;;  %v5581_v58 = vmax.f32 %v4673_v54, 0.0  ;;  %v3045_v59 = vadd.f32 %v3044_v46, %v2071_v55  ;;  %v4694_v61 = vadd.f32 %v9426_v56, %v10963_v39  ;;  %2269 = vmatprep.mubr.bf16.mxu0 %v10157_v48  ;;  %9524 = vmatprep.mubr.msk.bf16.mxu1 %vm4210_vm0, %v10158_v49  ;;  %v10164_v45 = vld [vmem:[%s10722_s29 + $0x1f8] sm:$0xff]  }
 0x156   : > { %v2073_v62 = vpop.f32.mrf.mxu0  ;;  %v4685_v0 = vpop.f32.mrf.mxu1  ;;  %v10167_v49 = vld [vmem:[%s10697_s13 + $0x234] ss:$8 sps:$4 sm:$0xff]  }
 0x157   : > { %v11038_v1 = vpack.c.bf16 %v5581_v58, %v5580_v52  ;;  %v4686_v2 = vadd.f32 %v4685_v0, %v10963_v39  ;;  %v5586_v10 = vmax.f32 %v4694_v61, 0.0 }
 0x158   : > { %v2074_v6 = vpop.f32.mrf.mxu0  ;;  %v9427_v7 = vpop.f32.mrf.mxu1 }
 0x159   : > { %v3046_v13 = vadd.f32 %v3045_v59, %v2074_v6  ;;  %v4697_v15 = vadd.f32 %v9427_v7, %v10963_v39  ;;  %v5584_v21 = vmax.f32 %v4686_v2, 0.0 }
 0x15a   : > { %v2076_v19 = vpop.f32.mrf.mxu0  ;;  %v4688_v20 = vpop.f32.mrf.mxu1 }
 0x15b   : > { %v5587_v22 = vmax.f32 %v4697_v15, 0.0  ;;  %v4689_v23 = vadd.f32 %v4688_v20, %v10963_v39  ;;  %v10169_v15 = vld [vmem:[%s10722_s29 + $0x208] sm:$0xff]  }
 0x15c   : > { %v2079_v25 = vpop.f32.mrf.mxu0  ;;  %2270 = vmatmul.mubr.bf16.gmra.mxu0 %v10155_v8  ;;  %v9430_v26 = vpop.f32.mrf.mxu1  ;;  %9525 = vmatmul.mubr.msk.bf16.gmra.mxu1 %vm4210_vm0, %v10159_v9  ;;  %v10173_v20 = vld [vmem:[%s10697_s13 + $0x244] ss:$8 sps:$4 sm:$0xff]  }
 0x15d   : > { %v11048_v27 = vpack.c.bf16 %v5587_v22, %v5586_v10  ;;  %v5585_v30 = vmax.f32 %v4689_v23, 0.0  ;;  %v3047_v31 = vadd.f32 %v3046_v13, %v2079_v25  ;;  %v4710_v32 = vadd.f32 %v9430_v26, %v10963_v39  ;;  %2277 = vmatprep.mubr.bf16.mxu0 %v10162_v16  ;;  %9528 = vmatprep.mubr.msk.bf16.mxu1 %vm4210_vm0, %v10163_v17  ;;  %v10165_v13 = vld [vmem:[%s10697_s13 + $0x230] ss:$8 sps:$4 sm:$0xff]   ;;  %v10246_v22 = vld [vmem:[%s12481_s4] sm:$0xff]  }
 0x15e   : > { %v2081_v33 = vpop.f32.mrf.mxu0  ;;  %v4701_v36 = vpop.f32.mrf.mxu1  ;;  %9650 = vmatprep.subr.bf16.mxu1 %v10246_v22 }
 0x15f   : > { %v11052_v38 = vpack.c.bf16 %v5585_v30, %v5584_v21  ;;  %v4702_v40 = vadd.f32 %v4701_v36, %v10963_v39  ;;  %v5590_v46 = vmax.f32 %v4710_v32, 0.0  ;;  %v10174_v21 = vld [vmem:[%s10722_s29 + $0x210] sm:$0xff]   ;;  %9651 = vmatpush3.bf16.msra.mxu1 %v10246_v22 }
 0x160   : > { %v2082_v41 = vpop.f32.mrf.mxu0  ;;  %v9431_v43 = vpop.f32.mrf.mxu1 }
 0x161   : > { %v3048_v47 = vadd.f32 %v3047_v31, %v2082_v41  ;;  %v4713_v48 = vadd.f32 %v9431_v43, %v10963_v39  ;;  %v5588_v53 = vmax.f32 %v4702_v40, 0.0 }
 0x162   : > { %v2084_v51 = vpop.f32.mrf.mxu0  ;;  %v4704_v52 = vpop.f32.mrf.mxu1 }
 0x163   : > { %v5591_v54 = vmax.f32 %v4713_v48, 0.0  ;;  %v4705_v55 = vadd.f32 %v4704_v52, %v10963_v39  ;;  %v10175_v51 = vld [vmem:[%s10722_s29 + $0x218] sm:$0xff]  }
 0x164   : > { %v2087_v56 = vpop.f32.mrf.mxu0  ;;  %2278 = vmatmul.mubr.bf16.gmra.mxu0 %v10160_v44  ;;  %v9434_v58 = vpop.f32.mrf.mxu1  ;;  %9529 = vmatmul.mubr.msk.bf16.gmra.mxu1 %vm4210_vm0, %v10164_v45 }
 0x165   : > { %v11062_v59 = vpack.c.bf16 %v5591_v54, %v5590_v46  ;;  %v5589_v61 = vmax.f32 %v4705_v55, 0.0  ;;  %v3049_v62 = vadd.f32 %v3048_v47, %v2087_v56  ;;  %v4726_v0 = vadd.f32 %v9434_v58, %v10963_v39  ;;  %2285 = vmatprep.mubr.bf16.mxu0 %v10167_v49  ;;  %9532 = vmatprep.mubr.msk.bf16.mxu1 %vm4210_vm0, %v10168_v50  ;;  %v10171_v50 = vld [vmem:[%s10697_s13 + $0x240] ss:$8 sps:$4 sm:$0xff]   ;;  %v10178_v55 = vld [vmem:[%s10697_s13 + $0x254] ss:$8 sps:$4 sm:$0xff]  }
 0x166   : > { %v2089_v2 = vpop.f32.mrf.mxu0  ;;  %v4717_v6 = vpop.f32.mrf.mxu1  ;;  %v10179_v56 = vld [vmem:[%s10722_s29 + $0x220] sm:$0xff]  }
 0x167   : > { %v11066_v7 = vpack.c.bf16 %v5589_v61, %v5588_v53  ;;  %v4718_v8 = vadd.f32 %v4717_v6, %v10963_v39  ;;  %v5594_v16 = vmax.f32 %v4726_v0, 0.0 }
 0x168   : > { %v2090_v9 = vpop.f32.mrf.mxu0  ;;  %v9435_v10 = vpop.f32.mrf.mxu1 }
 0x169   : > { %v3050_v17 = vadd.f32 %v3049_v62, %v2090_v9  ;;  %v4729_v19 = vadd.f32 %v9435_v10, %v10963_v39  ;;  %v5592_v26 = vmax.f32 %v4718_v8, 0.0 }
 0x16a   : > { %v2092_v23 = vpop.f32.mrf.mxu0  ;;  %v4720_v25 = vpop.f32.mrf.mxu1 }
 0x16b   : > { %v5595_v30 = vmax.f32 %v4729_v19, 0.0  ;;  %v4721_v31 = vadd.f32 %v4720_v25, %v10963_v39  ;;  %v10176_v23 = vld [vmem:[%s10697_s13 + $0x250] ss:$8 sps:$4 sm:$0xff]   ;;  %v10180_v25 = vld [vmem:[%s10722_s29 + $0x228] sm:$0xff]  }
 0x16c   : > { %v2095_v32 = vpop.f32.mrf.mxu0  ;;  %2286 = vmatmul.mubr.bf16.gmra.mxu0 %v10165_v13  ;;  %v9438_v33 = vpop.f32.mrf.mxu1  ;;  %9533 = vmatmul.mubr.msk.bf16.gmra.mxu1 %vm4210_vm0, %v10169_v15 }
 0x16d   : > { %v11079_v36 = vpack.c.bf16 %v5595_v30, %v5594_v16  ;;  %v5593_v40 = vmax.f32 %v4721_v31, 0.0  ;;  %v3051_v41 = vadd.f32 %v3050_v17, %v2095_v32  ;;  %v4742_v43 = vadd.f32 %v9438_v33, %v10963_v39  ;;  %2293 = vmatprep.mubr.bf16.mxu0 %v10173_v20  ;;  %9536 = vmatprep.mubr.msk.bf16.mxu1 %vm4210_vm0, %v10174_v21  ;;  %v10183_v32 = vld [vmem:[%s10697_s13 + $0x264] ss:$8 sps:$4 sm:$0xff]   ;;  %v10184_v33 = vld [vmem:[%s10722_s29 + $0x230] sm:$0xff]  }
 0x16e   : > { %v2097_v44 = vpop.f32.mrf.mxu0  ;;  %v4733_v45 = vpop.f32.mrf.mxu1 }
 0x16f   : > { %v11083_v46 = vpack.c.bf16 %v5593_v40, %v5592_v26  ;;  %v4734_v47 = vadd.f32 %v4733_v45, %v10963_v39  ;;  %v5598_v52 = vmax.f32 %v4742_v43, 0.0 }
 0x170   : > { %v2098_v48 = vpop.f32.mrf.mxu0  ;;  %v9439_v49 = vpop.f32.mrf.mxu1 }
 0x171   : > { %v3052_v53 = vadd.f32 %v3051_v41, %v2098_v48  ;;  %v4745_v54 = vadd.f32 %v9439_v49, %v10963_v39  ;;  %v5596_v62 = vmax.f32 %v4734_v47, 0.0 }
 0x172   : > { %v2100_v58 = vpop.f32.mrf.mxu0  ;;  %v4736_v61 = vpop.f32.mrf.mxu1 }
 0x173   : > { %v5599_v0 = vmax.f32 %v4745_v54, 0.0  ;;  %v4737_v2 = vadd.f32 %v4736_v61, %v10963_v39 }
 0x174   : > { %v2103_v6 = vpop.f32.mrf.mxu0  ;;  %2294 = vmatmul.mubr.bf16.gmra.mxu0 %v10171_v50  ;;  %v9442_v8 = vpop.f32.mrf.mxu1  ;;  %9537 = vmatmul.mubr.msk.bf16.gmra.mxu1 %vm4210_vm0, %v10175_v51 }
 0x175   : > { %v11093_v9 = vpack.c.bf16 %v5599_v0, %v5598_v52  ;;  %v5597_v10 = vmax.f32 %v4737_v2, 0.0  ;;  %v3053_v13 = vadd.f32 %v3052_v53, %v2103_v6  ;;  %v4758_v15 = vadd.f32 %v9442_v8, %v10963_v39  ;;  %2301 = vmatprep.mubr.bf16.mxu0 %v10178_v55  ;;  %9540 = vmatprep.mubr.msk.bf16.mxu1 %vm4210_vm0, %v10179_v56  ;;  %v10185_v0 = vld [vmem:[%s10722_s29 + $0x238] sm:$0xff]  }
 0x176   : > { %v2105_v16 = vpop.f32.mrf.mxu0  ;;  %v4749_v17 = vpop.f32.mrf.mxu1 }
 0x177   : > { %v11097_v19 = vpack.c.bf16 %v5597_v10, %v5596_v62  ;;  %v4750_v20 = vadd.f32 %v4749_v17, %v10963_v39  ;;  %v5602_v26 = vmax.f32 %v4758_v15, 0.0  ;;  %v10181_v62 = vld [vmem:[%s10697_s13 + $0x260] ss:$8 sps:$4 sm:$0xff]   ;;  %v10188_v10 = vld [vmem:[%s10697_s13 + $0x274] ss:$8 sps:$4 sm:$0xff]  }
 0x178   : > { %v2106_v21 = vpop.f32.mrf.mxu0  ;;  %v9443_v22 = vpop.f32.mrf.mxu1 }
 0x179   : > { %v3054_v30 = vadd.f32 %v3053_v13, %v2106_v21  ;;  %v4761_v31 = vadd.f32 %v9443_v22, %v10963_v39  ;;  %v5600_v43 = vmax.f32 %v4750_v20, 0.0  ;;  %v10189_v13 = vld [vmem:[%s10722_s29 + $0x240] sm:$0xff]  }
 0x17a   : > { %v2108_v40 = vpop.f32.mrf.mxu0  ;;  %v4752_v41 = vpop.f32.mrf.mxu1 }
 0x17b   : > { %v5603_v44 = vmax.f32 %v4761_v31, 0.0  ;;  %v4753_v45 = vadd.f32 %v4752_v41, %v10963_v39 }
 0x17c   : > { %v2111_v47 = vpop.f32.mrf.mxu0  ;;  %2302 = vmatmul.mubr.bf16.gmra.mxu0 %v10176_v23  ;;  %v9446_v48 = vpop.f32.mrf.mxu1  ;;  %9541 = vmatmul.mubr.msk.bf16.gmra.mxu1 %vm4210_vm0, %v10180_v25 }
 0x17d   : > { %v11107_v49 = vpack.c.bf16 %v5603_v44, %v5602_v26  ;;  %v5601_v50 = vmax.f32 %v4753_v45, 0.0  ;;  %v3055_v51 = vadd.f32 %v3054_v30, %v2111_v47  ;;  %v4774_v52 = vadd.f32 %v9446_v48, %v10963_v39  ;;  %2309 = vmatprep.mubr.bf16.mxu0 %v10183_v32  ;;  %9544 = vmatprep.mubr.msk.bf16.mxu1 %vm4210_vm0, %v10184_v33  ;;  %v10186_v45 = vld [vmem:[%s10697_s13 + $0x270] ss:$8 sps:$4 sm:$0xff]   ;;  %v10190_v47 = vld [vmem:[%s10722_s29 + $0x248] sm:$0xff]  }
 0x17e   : > { %v2113_v53 = vpop.f32.mrf.mxu0  ;;  %v4765_v54 = vpop.f32.mrf.mxu1 }
 0x17f   : > { %v11111_v55 = vpack.c.bf16 %v5601_v50, %v5600_v43  ;;  %v4766_v56 = vadd.f32 %v4765_v54, %v10963_v39  ;;  %v5606_v2 = vmax.f32 %v4774_v52, 0.0  ;;  %v10193_v52 = vld [vmem:[%s10697_s13 + $0x284] ss:$8 sps:$4 sm:$0xff]   ;;  %v10194_v53 = vld [vmem:[%s10722_s29 + $0x250] sm:$0xff]  }
 0x180   : > { %v2114_v58 = vpop.f32.mrf.mxu0  ;;  %v9447_v61 = vpop.f32.mrf.mxu1 }
 0x181   : > { %v3056_v6 = vadd.f32 %v3055_v51, %v2114_v58  ;;  %v4777_v8 = vadd.f32 %v9447_v61, %v10963_v39  ;;  %v5604_v17 = vmax.f32 %v4766_v56, 0.0 }
 0x182   : > { %v2116_v15 = vpop.f32.mrf.mxu0  ;;  %v4768_v16 = vpop.f32.mrf.mxu1 }
 0x183   : > { %v5607_v20 = vmax.f32 %v4777_v8, 0.0  ;;  %v4769_v21 = vadd.f32 %v4768_v16, %v10963_v39 }
 0x184   : > { %v2119_v22 = vpop.f32.mrf.mxu0  ;;  %2310 = vmatmul.mubr.bf16.gmra.mxu0 %v10181_v62  ;;  %v9450_v23 = vpop.f32.mrf.mxu1  ;;  %9545 = vmatmul.mubr.msk.bf16.gmra.mxu1 %vm4210_vm0, %v10185_v0 }
 0x185   : > { %v11121_v25 = vpack.c.bf16 %v5607_v20, %v5606_v2  ;;  %v5605_v26 = vmax.f32 %v4769_v21, 0.0  ;;  %v3057_v30 = vadd.f32 %v3056_v6, %v2119_v22  ;;  %v4790_v31 = vadd.f32 %v9450_v23, %v10963_v39  ;;  %2317 = vmatprep.mubr.bf16.mxu0 %v10188_v10  ;;  %9548 = vmatprep.mubr.msk.bf16.mxu1 %vm4210_vm0, %v10189_v13  ;;  %v10191_v23 = vld [vmem:[%s10697_s13 + $0x280] ss:$8 sps:$4 sm:$0xff]  }
 0x186   : > { %v2121_v32 = vpop.f32.mrf.mxu0  ;;  %v4781_v33 = vpop.f32.mrf.mxu1 }
 0x187   : > { %v11125_v40 = vpack.c.bf16 %v5605_v26, %v5604_v17  ;;  %v4782_v41 = vadd.f32 %v4781_v33, %v10963_v39  ;;  %v5610_v48 = vmax.f32 %v4790_v31, 0.0  ;;  %v10195_v26 = vld [vmem:[%s10722_s29 + $0x258] sm:$0xff]  }
 0x188   : > { %v2122_v43 = vpop.f32.mrf.mxu0  ;;  %v9451_v44 = vpop.f32.mrf.mxu1  ;;  %v10198_v33 = vld [vmem:[%s10697_s13 + $0x294] ss:$8 sps:$4 sm:$0xff]  }
 0x189   : > { %v3058_v50 = vadd.f32 %v3057_v30, %v2122_v43  ;;  %v4793_v51 = vadd.f32 %v9451_v44, %v10963_v39  ;;  %v5608_v58 = vmax.f32 %v4782_v41, 0.0  ;;  %v10199_v41 = vld [vmem:[%s10722_s29 + $0x260] sm:$0xff]  }
 0x18a   : > { %v2124_v54 = vpop.f32.mrf.mxu0  ;;  %v4784_v56 = vpop.f32.mrf.mxu1 }
 0x18b   : > { %v5611_v61 = vmax.f32 %v4793_v51, 0.0  ;;  %v4785_v62 = vadd.f32 %v4784_v56, %v10963_v39 }
 0x18c   : > { %v2127_v0 = vpop.f32.mrf.mxu0  ;;  %2318 = vmatmul.mubr.bf16.gmra.mxu0 %v10186_v45  ;;  %v9454_v2 = vpop.f32.mrf.mxu1  ;;  %9549 = vmatmul.mubr.msk.bf16.gmra.mxu1 %vm4210_vm0, %v10190_v47 }
 0x18d   : > { %v11135_v6 = vpack.c.bf16 %v5611_v61, %v5610_v48  ;;  %v5609_v8 = vmax.f32 %v4785_v62, 0.0  ;;  %v3059_v10 = vadd.f32 %v3058_v50, %v2127_v0  ;;  %v4806_v13 = vadd.f32 %v9454_v2, %v10963_v39  ;;  %2325 = vmatprep.mubr.bf16.mxu0 %v10193_v52  ;;  %9552 = vmatprep.mubr.msk.bf16.mxu1 %vm4210_vm0, %v10194_v53 }
 0x18e   : > { %v2129_v15 = vpop.f32.mrf.mxu0  ;;  %v4797_v16 = vpop.f32.mrf.mxu1 }
 0x18f   : > { %v11139_v17 = vpack.c.bf16 %v5609_v8, %v5608_v58  ;;  %v4798_v20 = vadd.f32 %v4797_v16, %v10963_v39  ;;  %v5614_v30 = vmax.f32 %v4806_v13, 0.0  ;;  %v10196_v8 = vld [vmem:[%s10697_s13 + $0x290] ss:$8 sps:$4 sm:$0xff]  }
 0x190   : > { %v2130_v21 = vpop.f32.mrf.mxu0  ;;  %v9455_v22 = vpop.f32.mrf.mxu1 }
 0x191   : > { %v11144_v31 = vadd.f32 %v3059_v10, %v2130_v21  ;;  %v4809_v32 = vadd.f32 %v9455_v22, %v10963_v39  ;;  %v5612_v45 = vmax.f32 %v4798_v20, 0.0  ;;  %v10200_v10 = vld [vmem:[%s10722_s29 + $0x268] sm:$0xff]   ;;  %v10204_v21 = vld [vmem:[%s10722_s29 + $0x270] sm:$0xff]  }
 0x192   : > { %v2132_v43 = vpop.f32.mrf.mxu0  ;;  %v4800_v44 = vpop.f32.mrf.mxu1  ;;  %v10203_v20 = vld [vmem:[%s10697_s13 + $0x2a4] ss:$8 sps:$4 sm:$0xff]  }
 0x193   : > { %v5615_v47 = vmax.f32 %v4809_v32, 0.0  ;;  %v4801_v48 = vadd.f32 %v4800_v44, %v10963_v39 }
 0x194   : > { %v2135_v50 = vpop.f32.mrf.mxu0  ;;  %2326 = vmatmul.mubr.bf16.gmra.mxu0 %v10191_v23  ;;  %v9458_v51 = vpop.f32.mrf.mxu1  ;;  %9553 = vmatmul.mubr.msk.bf16.gmra.mxu1 %vm4210_vm0, %v10195_v26 }
 0x195   : > { %v11151_v52 = vpack.c.bf16 %v5615_v47, %v5614_v30  ;;  %v5613_v53 = vmax.f32 %v4801_v48, 0.0  ;;  %v4822_v54 = vadd.f32 %v9458_v51, %v10963_v39  ;;  %2333 = vmatprep.mubr.bf16.mxu0 %v10198_v33  ;;  %9556 = vmatprep.mubr.msk.bf16.mxu1 %vm4210_vm0, %v10199_v41 }
 0x196   : > { %v2137_v56 = vpop.f32.mrf.mxu0  ;;  %v4813_v58 = vpop.f32.mrf.mxu1 }
 0x197   : > { %v11155_v61 = vpack.c.bf16 %v5613_v53, %v5612_v45  ;;  %v4814_v62 = vadd.f32 %v4813_v58, %v10963_v39  ;;  %v5618_v13 = vmax.f32 %v4822_v54, 0.0  ;;  %v10201_v58 = vld [vmem:[%s10697_s13 + $0x2a0] ss:$8 sps:$4 sm:$0xff]  }
 0x198   : > { %v2138_v0 = vpop.f32.mrf.mxu0  ;;  %v9459_v2 = vpop.f32.mrf.mxu1 }
 0x199   : > { %v3067_v15 = vadd.f32 %v2138_v0, %v2135_v50  ;;  %v4825_v16 = vadd.f32 %v9459_v2, %v10963_v39  ;;  %v5616_v26 = vmax.f32 %v4814_v62, 0.0  ;;  %v10205_v62 = vld [vmem:[%s10722_s29 + $0x278] sm:$0xff]  }
 0x19a   : > { %v2140_v22 = vpop.f32.mrf.mxu0  ;;  %v4816_v23 = vpop.f32.mrf.mxu1 }
 0x19b   : > { %v5619_v30 = vmax.f32 %v4825_v16, 0.0  ;;  %v4817_v32 = vadd.f32 %v4816_v23, %v10963_v39 }
 0x19c   : > { %v2143_v33 = vpop.f32.mrf.mxu0  ;;  %2334 = vmatmul.mubr.bf16.gmra.mxu0 %v10196_v8  ;;  %v9462_v41 = vpop.f32.mrf.mxu1  ;;  %9557 = vmatmul.mubr.msk.bf16.gmra.mxu1 %vm4210_vm0, %v10200_v10  ;;  %v10208_v10 = vld [vmem:[%s10697_s13 + $0x2b4] ss:$8 sps:$4 sm:$0xff]  }
 0x19d   : > { %v11165_v43 = vpack.c.bf16 %v5619_v30, %v5618_v13  ;;  %v5617_v44 = vmax.f32 %v4817_v32, 0.0  ;;  %v3068_v45 = vadd.f32 %v3067_v15, %v2143_v33  ;;  %2341 = vmatprep.mubr.bf16.mxu0 %v10203_v20  ;;  %9560 = vmatprep.mubr.msk.bf16.mxu1 %vm4210_vm0, %v10204_v21  ;;  %v4838_v47 = vadd.f32 %v9462_v41, %v10963_v39  ;;  %v10209_v13 = vld [vmem:[%s10722_s29 + $0x280] sm:$0xff]  }
 0x19e   : > { %v2145_v48 = vpop.f32.mrf.mxu0  ;;  %v4829_v50 = vpop.f32.mrf.mxu1 }
 0x19f   : > { %v11169_v51 = vpack.c.bf16 %v5617_v44, %v5616_v26  ;;  %v4830_v53 = vadd.f32 %v4829_v50, %v10963_v39  ;;  %v5622_v0 = vmax.f32 %v4838_v47, 0.0 }
 0x1a0   : > { %v2146_v54 = vpop.f32.mrf.mxu0  ;;  %v9463_v56 = vpop.f32.mrf.mxu1 }
 0x1a1   : > { %v3069_v2 = vadd.f32 %v3068_v45, %v2146_v54  ;;  %v4841_v8 = vadd.f32 %v9463_v56, %v10963_v39  ;;  %v5620_v20 = vmax.f32 %v4830_v53, 0.0  ;;  %v10206_v54 = vld [vmem:[%s10697_s13 + $0x2b0] ss:$8 sps:$4 sm:$0xff]   ;;  %v10210_v56 = vld [vmem:[%s10722_s29 + $0x288] sm:$0xff]  }
 0x1a2   : > { %v2148_v15 = vpop.f32.mrf.mxu0  ;;  %v4832_v16 = vpop.f32.mrf.mxu1 }
 0x1a3   : > { %v5623_v21 = vmax.f32 %v4841_v8, 0.0  ;;  %v4833_v22 = vadd.f32 %v4832_v16, %v10963_v39  ;;  %v10214_v8 = vld [vmem:[%s10722_s29 + $0x290] sm:$0xff]  }
 0x1a4   : > { %v2151_v23 = vpop.f32.mrf.mxu0  ;;  %2342 = vmatmul.mubr.bf16.gmra.mxu0 %v10201_v58  ;;  %v9466_v26 = vpop.f32.mrf.mxu1  ;;  %9561 = vmatmul.mubr.msk.bf16.gmra.mxu1 %vm4210_vm0, %v10205_v62 }
 0x1a5   : > { %v11179_v30 = vpack.c.bf16 %v5623_v21, %v5622_v0  ;;  %v5621_v32 = vmax.f32 %v4833_v22, 0.0  ;;  %v3070_v33 = vadd.f32 %v3069_v2, %v2151_v23  ;;  %v4854_v41 = vadd.f32 %v9466_v26, %v10963_v39  ;;  %2349 = vmatprep.mubr.bf16.mxu0 %v10208_v10  ;;  %9564 = vmatprep.mubr.msk.bf16.mxu1 %vm4210_vm0, %v10209_v13  ;;  %v10213_v2 = vld [vmem:[%s10697_s13 + $0x2c4] ss:$8 sps:$4 sm:$0xff]  }
 0x1a6   : > { %v2153_v44 = vpop.f32.mrf.mxu0  ;;  %v4845_v45 = vpop.f32.mrf.mxu1 }
 0x1a7   : > { %v11183_v47 = vpack.c.bf16 %v5621_v32, %v5620_v20  ;;  %v4846_v48 = vadd.f32 %v4845_v45, %v10963_v39  ;;  %v5626_v58 = vmax.f32 %v4854_v41, 0.0 }
 0x1a8   : > { %v2154_v50 = vpop.f32.mrf.mxu0  ;;  %v9467_v53 = vpop.f32.mrf.mxu1 }
 0x1a9   : > { %v3071_v62 = vadd.f32 %v3070_v33, %v2154_v50  ;;  %v4857_v0 = vadd.f32 %v9467_v53, %v10963_v39  ;;  %v5624_v16 = vmax.f32 %v4846_v48, 0.0 }
 0x1aa   : > { %v2156_v15 = vpop.f32.mrf.mxu0  ;;  %v4848_v10 = vpop.f32.mrf.mxu1 }
 0x1ab   : > { %v5627_v13 = vmax.f32 %v4857_v0, 0.0  ;;  %v4849_v21 = vadd.f32 %v4848_v10, %v10963_v39  ;;  %v10218_v15 = vld [vmem:[%s10697_s13 + $0x2d4] ss:$8 sps:$4 sm:$0xff]   ;;  %v10219_v10 = vld [vmem:[%s10722_s29 + $0x2a0] sm:$0xff]  }
 0x1ac   : > { %v2159_v20 = vpop.f32.mrf.mxu0  ;;  %2350 = vmatmul.mubr.bf16.gmra.mxu0 %v10206_v54  ;;  %v9470_v22 = vpop.f32.mrf.mxu1  ;;  %9565 = vmatmul.mubr.msk.bf16.gmra.mxu1 %vm4210_vm0, %v10210_v56  ;;  %v10211_v54 = vld [vmem:[%s10697_s13 + $0x2c0] ss:$8 sps:$4 sm:$0xff]   ;;  %v10215_v56 = vld [vmem:[%s10722_s29 + $0x298] sm:$0xff]  }
 0x1ad   : > { %v11193_v23 = vpack.c.bf16 %v5627_v13, %v5626_v58  ;;  %v5625_v26 = vmax.f32 %v4849_v21, 0.0  ;;  %v3072_v32 = vadd.f32 %v3071_v62, %v2159_v20  ;;  %v4870_v33 = vadd.f32 %v9470_v22, %v10963_v39  ;;  %2357 = vmatprep.mubr.bf16.mxu0 %v10213_v2  ;;  %9568 = vmatprep.mubr.msk.bf16.mxu1 %vm4210_vm0, %v10214_v8 }
 0x1ae   : > { %v2161_v41 = vpop.f32.mrf.mxu0  ;;  %v4861_v44 = vpop.f32.mrf.mxu1 }
 0x1af   : > { %v11197_v45 = vpack.c.bf16 %v5625_v26, %v5624_v16  ;;  %v4862_v48 = vadd.f32 %v4861_v44, %v10963_v39  ;;  %v5630_v58 = vmax.f32 %v4870_v33, 0.0 }
 0x1b0   : > { %v2162_v50 = vpop.f32.mrf.mxu0  ;;  %v9471_v53 = vpop.f32.mrf.mxu1 }
 0x1b1   : > { %v3073_v0 = vadd.f32 %v3072_v32, %v2162_v50  ;;  %v4873_v62 = vadd.f32 %v9471_v53, %v10963_v39  ;;  %v5628_v21 = vmax.f32 %v4862_v48, 0.0 }
 0x1b2   : > { %v2164_v13 = vpop.f32.mrf.mxu0  ;;  %v4864_v2 = vpop.f32.mrf.mxu1 }
 0x1b3   : > { %v5631_v8 = vmax.f32 %v4873_v62, 0.0  ;;  %v4865_v20 = vadd.f32 %v4864_v2, %v10963_v39 }
 0x1b4   : > { %v2167_v16 = vpop.f32.mrf.mxu0  ;;  %2358 = vmatmul.mubr.bf16.gmra.mxu0 %v10211_v54  ;;  %v9474_v22 = vpop.f32.mrf.mxu1  ;;  %9569 = vmatmul.mubr.msk.bf16.gmra.mxu1 %vm4210_vm0, %v10215_v56  ;;  %v10216_v56 = vld [vmem:[%s10697_s13 + $0x2d0] ss:$8 sps:$4 sm:$0xff]  }
 0x1b5   : > { %v11207_v26 = vpack.c.bf16 %v5631_v8, %v5630_v58  ;;  %v5629_v32 = vmax.f32 %v4865_v20, 0.0  ;;  %v3074_v33 = vadd.f32 %v3073_v0, %v2167_v16  ;;  %v4886_v41 = vadd.f32 %v9474_v22, %v10963_v39  ;;  %2365 = vmatprep.mubr.bf16.mxu0 %v10218_v15  ;;  %9572 = vmatprep.mubr.msk.bf16.mxu1 %vm4210_vm0, %v10219_v10  ;;  %v10220_v58 = vld [vmem:[%s10722_s29 + $0x2a8] sm:$0xff]   ;;  %v10224_v20 = vld [vmem:[%s10722_s29 + $0x2b0] sm:$0xff]  }
 0x1b6   : > { %v2169_v44 = vpop.f32.mrf.mxu0  ;;  %v4877_v48 = vpop.f32.mrf.mxu1  ;;  %v10223_v8 = vld [vmem:[%s10697_s13 + $0x2e4] ss:$8 sps:$4 sm:$0xff]  }
 0x1b7   : > { %v11211_v50 = vpack.c.bf16 %v5629_v32, %v5628_v21  ;;  %v4878_v53 = vadd.f32 %v4877_v48, %v10963_v39  ;;  %v5634_v13 = vmax.f32 %v4886_v41, 0.0 }
 0x1b8   : > { %v2170_v54 = vpop.f32.mrf.mxu0  ;;  %v9475_v62 = vpop.f32.mrf.mxu1 }
 0x1b9   : > { %v3075_v2 = vadd.f32 %v3074_v33, %v2170_v54  ;;  %v4889_v0 = vadd.f32 %v9475_v62, %v10963_v39  ;;  %v5632_v22 = vmax.f32 %v4878_v53, 0.0 }
 0x1ba   : > { %v2172_v16 = vpop.f32.mrf.mxu0  ;;  %v4880_v15 = vpop.f32.mrf.mxu1 }
 0x1bb   : > { %v5635_v10 = vmax.f32 %v4889_v0, 0.0  ;;  %v4881_v44 = vadd.f32 %v4880_v15, %v10963_v39 }
 0x1bc   : > { %v2175_v21 = vpop.f32.mrf.mxu0  ;;  %2366 = vmatmul.mubr.bf16.gmra.mxu0 %v10216_v56  ;;  %v9478_v32 = vpop.f32.mrf.mxu1  ;;  %9573 = vmatmul.mubr.msk.bf16.gmra.mxu1 %vm4210_vm0, %v10220_v58  ;;  %v10221_v58 = vld [vmem:[%s10697_s13 + $0x2e0] ss:$8 sps:$4 sm:$0xff]  }
 0x1bd   : > { %v11221_v48 = vpack.c.bf16 %v5635_v10, %v5634_v13  ;;  %v5633_v33 = vmax.f32 %v4881_v44, 0.0  ;;  %v3076_v41 = vadd.f32 %v3075_v2, %v2175_v21  ;;  %v4902_v54 = vadd.f32 %v9478_v32, %v10963_v39  ;;  %2373 = vmatprep.mubr.bf16.mxu0 %v10223_v8  ;;  %9576 = vmatprep.mubr.msk.bf16.mxu1 %vm4210_vm0, %v10224_v20  ;;  %v10225_v13 = vld [vmem:[%s10722_s29 + $0x2b8] sm:$0xff]  }
 0x1be   : > { %v2177_v53 = vpop.f32.mrf.mxu0  ;;  %v4893_v62 = vpop.f32.mrf.mxu1  ;;  %v10228_v21 = vld [vmem:[%s10697_s13 + $0x2f4] ss:$8 sps:$4 sm:$0xff]  }
 0x1bf   : > { %v11225_v0 = vpack.c.bf16 %v5633_v33, %v5632_v22  ;;  %v4894_v56 = vadd.f32 %v4893_v62, %v10963_v39  ;;  %v5638_v10 = vmax.f32 %v4902_v54, 0.0 }
 0x1c0   : > { %v2178_v16 = vpop.f32.mrf.mxu0  ;;  %v9479_v15 = vpop.f32.mrf.mxu1 }
 0x1c1   : > { %v3077_v44 = vadd.f32 %v3076_v41, %v2178_v16  ;;  %v4905_v2 = vadd.f32 %v9479_v15, %v10963_v39  ;;  %v5636_v35 = vmax.f32 %v4894_v56, 0.0 }
 0x1c2   : > { %v2180_v32 = vpop.f32.mrf.mxu0  ;;  %v4896_v8 = vpop.f32.mrf.mxu1 }
 0x1c3   : > { %v5639_v20 = vmax.f32 %v4905_v2, 0.0  ;;  %v4897_v53 = vadd.f32 %v4896_v8, %v10963_v39 }
 0x1c4   : > { %v2183_v22 = vpop.f32.mrf.mxu0  ;;  %2374 = vmatmul.mubr.bf16.gmra.mxu0 %v10221_v58  ;;  %v9482_v33 = vpop.f32.mrf.mxu1  ;;  %9577 = vmatmul.mubr.msk.bf16.gmra.mxu1 %vm4210_vm0, %v10225_v13  ;;  %v10226_v13 = vld [vmem:[%s10697_s13 + $0x2f0] ss:$8 sps:$4 sm:$0xff]  }
 0x1c5   : > { %v11235_v62 = vpack.c.bf16 %v5639_v20, %v5638_v10  ;;  %v5637_v41 = vmax.f32 %v4897_v53, 0.0  ;;  %v3078_v54 = vadd.f32 %v3077_v44, %v2183_v22  ;;  %v4918_v16 = vadd.f32 %v9482_v33, %v10963_v39  ;;  %2381 = vmatprep.mubr.bf16.mxu0 %v10228_v21  ;;  %9580 = vmatprep.mubr.msk.bf16.mxu1 %vm4210_vm0, %v10229_v14  ;;  %v10230_v10 = vld [vmem:[%s10722_s29 + $0x2c8] sm:$0xff]  }
 0x1c6   : > { %v2185_v56 = vpop.f32.mrf.mxu0  ;;  %v4909_v15 = vpop.f32.mrf.mxu1  ;;  %v10233_v22 = vld [vmem:[%s10697_s13 + $0x304] ss:$8 sps:$4 sm:$0xff]  }
 0x1c7   : > { %12497 = vst [vmem:[#allocation12_spill] sm:$0xff] %v11235_v62  ;;  %v11239_v2 = vpack.c.bf16 %v5637_v41, %v5636_v35  ;;  %v4910_v58 = vadd.f32 %v4909_v15, %v10963_v39  ;;  %v5642_v20 = vmax.f32 %v4918_v16, 0.0 }
 0x1c8   : > { %v2186_v32 = vpop.f32.mrf.mxu0  ;;  %v9483_v8 = vpop.f32.mrf.mxu1 }
 0x1c9   : > { %v3079_v53 = vadd.f32 %v3078_v54, %v2186_v32  ;;  %v4921_v44 = vadd.f32 %v9483_v8, %v10963_v39  ;;  %v5640_v18 = vmax.f32 %v4910_v58, 0.0 }
 0x1ca   : > { %v2188_v33 = vpop.f32.mrf.mxu0  ;;  %v4912_v21 = vpop.f32.mrf.mxu1 }
 0x1cb   : > { %v5643_v14 = vmax.f32 %v4921_v44, 0.0  ;;  %v4913_v56 = vadd.f32 %v4912_v21, %v10963_v39 }
 0x1cc   : > { %v2191_v35 = vpop.f32.mrf.mxu0  ;;  %2382 = vmatmul.mubr.bf16.gmra.mxu0 %v10226_v13  ;;  %v9486_v41 = vpop.f32.mrf.mxu1  ;;  %9581 = vmatmul.mubr.msk.bf16.gmra.mxu1 %vm4210_vm0, %v10230_v10  ;;  %v10231_v10 = vld [vmem:[%s10697_s13 + $0x300] ss:$8 sps:$4 sm:$0xff]  }
 0x1cd   : > { %v11249_v15 = vpack.c.bf16 %v5643_v14, %v5642_v20  ;;  %v5641_v54 = vmax.f32 %v4913_v56, 0.0  ;;  %v3080_v16 = vadd.f32 %v3079_v53, %v2191_v35  ;;  %v4934_v32 = vadd.f32 %v9486_v41, %v10963_v39  ;;  %2389 = vmatprep.mubr.bf16.mxu0 %v10233_v22  ;;  %9584 = vmatprep.mubr.msk.bf16.mxu1 %vm4210_vm0, %v10234_v28  ;;  %v10235_v20 = vld [vmem:[%s10722_s29 + $0x2d8] sm:$0xff]  }
 0x1ce   : > { %v2193_v58 = vpop.f32.mrf.mxu0  ;;  %v4925_v8 = vpop.f32.mrf.mxu1  ;;  %v10238_v35 = vld [vmem:[%s10697_s13 + $0x314] ss:$8 sps:$4 sm:$0xff]  }
 0x1cf   : > { %12498 = vst [vmem:[#allocation13_spill] sm:$0xff] %v11249_v15  ;;  %v11253_v44 = vpack.c.bf16 %v5641_v54, %v5640_v18  ;;  %v4926_v13 = vadd.f32 %v4925_v8, %v10963_v39  ;;  %v5646_v14 = vmax.f32 %v4934_v32, 0.0 }
 0x1d0   : > { %v2194_v33 = vpop.f32.mrf.mxu0  ;;  %v9487_v21 = vpop.f32.mrf.mxu1 }
 0x1d1   : > { %12499 = vst [vmem:[#allocation14_spill] sm:$0xff] %v11253_v44  ;;  %v3081_v56 = vadd.f32 %v3080_v16, %v2194_v33  ;;  %v4937_v53 = vadd.f32 %v9487_v21, %v10963_v39  ;;  %v5644_v3 = vmax.f32 %v4926_v13, 0.0 }
 0x1d2   : > { %v2196_v41 = vpop.f32.mrf.mxu0  ;;  %v4928_v22 = vpop.f32.mrf.mxu1 }
 0x1d3   : > { %v5647_v28 = vmax.f32 %v4937_v53, 0.0  ;;  %v4929_v58 = vadd.f32 %v4928_v22, %v10963_v39 }
 0x1d4   : > { %v2199_v18 = vpop.f32.mrf.mxu0  ;;  %2390 = vmatmul.mubr.bf16.gmra.mxu0 %v10231_v10  ;;  %v9490_v54 = vpop.f32.mrf.mxu1  ;;  %9585 = vmatmul.mubr.msk.bf16.gmra.mxu1 %vm4210_vm0, %v10235_v20  ;;  %v10236_v20 = vld [vmem:[%s10697_s13 + $0x310] ss:$8 sps:$4 sm:$0xff]  }
 0x1d5   : > { %v11263_v8 = vpack.c.bf16 %v5647_v28, %v5646_v14  ;;  %v5645_v16 = vmax.f32 %v4929_v58, 0.0  ;;  %v3082_v32 = vadd.f32 %v3081_v56, %v2199_v18  ;;  %v4950_v33 = vadd.f32 %v9490_v54, %v10963_v39  ;;  %2397 = vmatprep.mubr.bf16.mxu0 %v10238_v35  ;;  %9588 = vmatprep.mubr.msk.bf16.mxu1 %vm4210_vm0, %v10239_v12  ;;  %v10240_v14 = vld [vmem:[%s10722_s29 + $0x2e8] sm:$0xff]  }
 0x1d6   : > { %v2201_v13 = vpop.f32.mrf.mxu0  ;;  %v4941_v21 = vpop.f32.mrf.mxu1  ;;  %v10243_v18 = vld [vmem:[%s10697_s13 + $0x324] ss:$8 sps:$4 sm:$0xff]  }
 0x1d7   : > { %12500 = vst [vmem:[#allocation15_spill] sm:$0xff] %v11263_v8  ;;  %v11267_v53 = vpack.c.bf16 %v5645_v16, %v5644_v3  ;;  %v4942_v10 = vadd.f32 %v4941_v21, %v10963_v39  ;;  %v5650_v28 = vmax.f32 %v4950_v33, 0.0 }
 0x1d8   : > { %v2202_v41 = vpop.f32.mrf.mxu0  ;;  %v9491_v22 = vpop.f32.mrf.mxu1 }
 0x1d9   : > { %12501 = vst [vmem:[#allocation16_spill] sm:$0xff] %v11267_v53  ;;  %v3083_v58 = vadd.f32 %v3082_v32, %v2202_v41  ;;  %v4953_v56 = vadd.f32 %v9491_v22, %v10963_v39  ;;  %v5648_v24 = vmax.f32 %v4942_v10, 0.0 }
 0x1da   : > { %v2204_v54 = vpop.f32.mrf.mxu0  ;;  %v4944_v35 = vpop.f32.mrf.mxu1 }
 0x1db   : > { %v5651_v12 = vmax.f32 %v4953_v56, 0.0  ;;  %v4945_v13 = vadd.f32 %v4944_v35, %v10963_v39 }
 0x1dc   : > { %v2207_v3 = vpop.f32.mrf.mxu0  ;;  %2398 = vmatmul.mubr.bf16.gmra.mxu0 %v10236_v20  ;;  %v9494_v16 = vpop.f32.mrf.mxu1  ;;  %9589 = vmatmul.mubr.msk.bf16.gmra.mxu1 %vm4210_vm0, %v10240_v14  ;;  %v10241_v14 = vld [vmem:[%s10697_s13 + $0x320] ss:$8 sps:$4 sm:$0xff]  }
 0x1dd   : > { %v11277_v21 = vpack.c.bf16 %v5651_v12, %v5650_v28  ;;  %v5649_v32 = vmax.f32 %v4945_v13, 0.0  ;;  %v3084_v33 = vadd.f32 %v3083_v58, %v2207_v3  ;;  %v4966_v41 = vadd.f32 %v9494_v16, %v10963_v39  ;;  %2405 = vmatprep.mubr.bf16.mxu0 %v10243_v18  ;;  %9592 = vmatprep.mubr.msk.bf16.mxu1 %vm4210_vm0, %v10244_v63  ;;  %v10245_v28 = vld [vmem:[%s10722_s29 + $0x2f8] sm:$0xff]  }
 0x1de   : > { %v2209_v10 = vpop.f32.mrf.mxu0  ;;  %v4957_v22 = vpop.f32.mrf.mxu1  ;;  %v10249_v3 = vld [vmem:[%s10697_s13 + $0x334] ss:$8 sps:$4 sm:$0xff]  }
 0x1df   : > { %12502 = vst [vmem:[#allocation17_spill] sm:$0xff] %v11277_v21  ;;  %v11281_v56 = vpack.c.bf16 %v5649_v32, %v5648_v24  ;;  %v4958_v20 = vadd.f32 %v4957_v22, %v10963_v39  ;;  %v5654_v12 = vmax.f32 %v4966_v41, 0.0  ;;  %v10250_v21 = vld [vmem:[%s10722_s29 + $0x300] sm:$0xff]  }
 0x1e0   : > { %v2210_v54 = vpop.f32.mrf.mxu0  ;;  %v9495_v35 = vpop.f32.mrf.mxu1 }
 0x1e1   : > { %12503 = vst [vmem:[#allocation18_spill] sm:$0xff] %v11281_v56  ;;  %v3085_v13 = vadd.f32 %v3084_v33, %v2210_v54  ;;  %v4969_v58 = vadd.f32 %v9495_v35, %v10963_v39  ;;  %v5652_v8 = vmax.f32 %v4958_v20, 0.0 }
 0x1e2   : > { %v2212_v16 = vpop.f32.mrf.mxu0  ;;  %v4960_v18 = vpop.f32.mrf.mxu1 }
 0x1e3   : > { %v5655_v63 = vmax.f32 %v4969_v58, 0.0  ;;  %v4961_v10 = vadd.f32 %v4960_v18, %v10963_v39 }
 0x1e4   : > { %v2215_v24 = vpop.f32.mrf.mxu0  ;;  %2406 = vmatmul.mubr.bf16.gmra.mxu0 %v10241_v14  ;;  %v9498_v32 = vpop.f32.mrf.mxu1  ;;  %9593 = vmatmul.mubr.msk.bf16.gmra.mxu1 %vm4210_vm0, %v10245_v28  ;;  %v10247_v28 = vld [vmem:[%s10697_s13 + $0x330] ss:$8 sps:$4 sm:$0xff]  }
 0x1e5   : > { %v11291_v22 = vpack.c.bf16 %v5655_v63, %v5654_v12  ;;  %v5653_v33 = vmax.f32 %v4961_v10, 0.0  ;;  %v3086_v41 = vadd.f32 %v3085_v13, %v2215_v24  ;;  %v4982_v54 = vadd.f32 %v9498_v32, %v10963_v39  ;;  %2413 = vmatprep.mubr.bf16.mxu0 %v10249_v3  ;;  %9596 = vmatprep.mubr.msk.bf16.mxu1 %vm4210_vm0, %v10250_v21  ;;  %v10251_v12 = vld [vmem:[%s10722_s29 + $0x308] sm:$0xff]  }
 0x1e6   : > { %v2217_v20 = vpop.f32.mrf.mxu0  ;;  %v4973_v35 = vpop.f32.mrf.mxu1  ;;  %v10254_v24 = vld [vmem:[%s10697_s13 + $0x344] ss:$8 sps:$4 sm:$0xff]  }
 0x1e7   : > { %12504 = vst [vmem:[#allocation19_spill] sm:$0xff] %v11291_v22  ;;  %v11295_v58 = vpack.c.bf16 %v5653_v33, %v5652_v8  ;;  %v4974_v14 = vadd.f32 %v4973_v35, %v10963_v39  ;;  %v5658_v63 = vmax.f32 %v4982_v54, 0.0  ;;  %v10255_v22 = vld [vmem:[%s10722_s29 + $0x310] sm:$0xff]  }
 0x1e8   : > { %v2218_v16 = vpop.f32.mrf.mxu0  ;;  %v9499_v18 = vpop.f32.mrf.mxu1 }
 0x1e9   : > { %12505 = vst [vmem:[#allocation20_spill] sm:$0xff] %v11295_v58  ;;  %v3087_v10 = vadd.f32 %v3086_v41, %v2218_v16  ;;  %v4985_v13 = vadd.f32 %v9499_v18, %v10963_v39  ;;  %v5656_v56 = vmax.f32 %v4974_v14, 0.0 }
 0x1ea   : > { %v2220_v32 = vpop.f32.mrf.mxu0  ;;  %v4976_v3 = vpop.f32.mrf.mxu1 }
 0x1eb   : > { %v5659_v21 = vmax.f32 %v4985_v13, 0.0  ;;  %v4977_v20 = vadd.f32 %v4976_v3, %v10963_v39 }
 0x1ec   : > { %v2223_v8 = vpop.f32.mrf.mxu0  ;;  %2414 = vmatmul.mubr.bf16.gmra.mxu0 %v10247_v28  ;;  %v9502_v33 = vpop.f32.mrf.mxu1  ;;  %9597 = vmatmul.mubr.msk.bf16.gmra.mxu1 %vm4210_vm0, %v10251_v12  ;;  %v10252_v12 = vld [vmem:[%s10697_s13 + $0x340] ss:$8 sps:$4 sm:$0xff]  }
 0x1ed   : > { %v11305_v35 = vpack.c.bf16 %v5659_v21, %v5658_v63  ;;  %v5657_v41 = vmax.f32 %v4977_v20, 0.0  ;;  %v3088_v54 = vadd.f32 %v3087_v10, %v2223_v8  ;;  %v4998_v16 = vadd.f32 %v9502_v33, %v10963_v39  ;;  %2421 = vmatprep.mubr.bf16.mxu0 %v10254_v24  ;;  %9600 = vmatprep.mubr.msk.bf16.mxu1 %vm4210_vm0, %v10255_v22  ;;  %v10256_v63 = vld [vmem:[%s10722_s29 + $0x318] sm:$0xff]  }
 0x1ee   : > { %v2225_v14 = vpop.f32.mrf.mxu0  ;;  %v4989_v18 = vpop.f32.mrf.mxu1  ;;  %v10259_v8 = vld [vmem:[%s10697_s13 + $0x354] ss:$8 sps:$4 sm:$0xff]  }
 0x1ef   : > { %12506 = vst [vmem:[#allocation21_spill] sm:$0xff] %v11305_v35  ;;  %v11309_v13 = vpack.c.bf16 %v5657_v41, %v5656_v56  ;;  %v4990_v28 = vadd.f32 %v4989_v18, %v10963_v39  ;;  %v5662_v21 = vmax.f32 %v4998_v16, 0.0  ;;  %v10260_v35 = vld [vmem:[%s10722_s29 + $0x320] sm:$0xff]  }
 0x1f0   : > { %v2226_v32 = vpop.f32.mrf.mxu0  ;;  %v9503_v3 = vpop.f32.mrf.mxu1 }
 0x1f1   : > { %12507 = vst [vmem:[#allocation22_spill] sm:$0xff] %v11309_v13  ;;  %v3089_v20 = vadd.f32 %v3088_v54, %v2226_v32  ;;  %v5001_v10 = vadd.f32 %v9503_v3, %v10963_v39  ;;  %v5660_v58 = vmax.f32 %v4990_v28, 0.0 }
 0x1f2   : > { %v2228_v33 = vpop.f32.mrf.mxu0  ;;  %v4992_v24 = vpop.f32.mrf.mxu1 }
 0x1f3   : > { %v5663_v22 = vmax.f32 %v5001_v10, 0.0  ;;  %v4993_v14 = vadd.f32 %v4992_v24, %v10963_v39 }
 0x1f4   : > { %v2231_v56 = vpop.f32.mrf.mxu0  ;;  %2422 = vmatmul.mubr.bf16.gmra.mxu0 %v10252_v12  ;;  %v9506_v41 = vpop.f32.mrf.mxu1  ;;  %9601 = vmatmul.mubr.msk.bf16.gmra.mxu1 %vm4210_vm0, %v10256_v63  ;;  %v10257_v63 = vld [vmem:[%s10697_s13 + $0x350] ss:$8 sps:$4 sm:$0xff]  }
 0x1f5   : > { %v11319_v18 = vpack.c.bf16 %v5663_v22, %v5662_v21  ;;  %v5661_v54 = vmax.f32 %v4993_v14, 0.0  ;;  %v3090_v16 = vadd.f32 %v3089_v20, %v2231_v56  ;;  %v5014_v32 = vadd.f32 %v9506_v41, %v10963_v39  ;;  %2429 = vmatprep.mubr.bf16.mxu0 %v10259_v8  ;;  %9604 = vmatprep.mubr.msk.bf16.mxu1 %vm4210_vm0, %v10260_v35  ;;  %v10261_v21 = vld [vmem:[%s10722_s29 + $0x328] sm:$0xff]  }
 0x1f6   : > { %v2233_v28 = vpop.f32.mrf.mxu0  ;;  %v5005_v3 = vpop.f32.mrf.mxu1  ;;  %v10264_v56 = vld [vmem:[%s10697_s13 + $0x364] ss:$8 sps:$4 sm:$0xff]  }
 0x1f7   : > { %12508 = vst [vmem:[#allocation23_spill] sm:$0xff] %v11319_v18  ;;  %v11323_v10 = vpack.c.bf16 %v5661_v54, %v5660_v58  ;;  %v5006_v12 = vadd.f32 %v5005_v3, %v10963_v39  ;;  %v5666_v22 = vmax.f32 %v5014_v32, 0.0  ;;  %v10265_v18 = vld [vmem:[%s10722_s29 + $0x330] sm:$0xff]  }
 0x1f8   : > { %v2234_v33 = vpop.f32.mrf.mxu0  ;;  %v9507_v24 = vpop.f32.mrf.mxu1 }
 0x1f9   : > { %12509 = vst [vmem:[#allocation24_spill] sm:$0xff] %v11323_v10  ;;  %v3091_v14 = vadd.f32 %v3090_v16, %v2234_v33  ;;  %v5017_v20 = vadd.f32 %v9507_v24, %v10963_v39  ;;  %v5664_v13 = vmax.f32 %v5006_v12, 0.0 }
 0x1fa   : > { %v2236_v41 = vpop.f32.mrf.mxu0  ;;  %v5008_v8 = vpop.f32.mrf.mxu1 }
 0x1fb   : > { %v5667_v35 = vmax.f32 %v5017_v20, 0.0  ;;  %v5009_v28 = vadd.f32 %v5008_v8, %v10963_v39 }
 0x1fc   : > { %v2239_v58 = vpop.f32.mrf.mxu0  ;;  %2430 = vmatmul.mubr.bf16.gmra.mxu0 %v10257_v63  ;;  %v9510_v54 = vpop.f32.mrf.mxu1  ;;  %9605 = vmatmul.mubr.msk.bf16.gmra.mxu1 %vm4210_vm0, %v10261_v21  ;;  %v10262_v21 = vld [vmem:[%s10697_s13 + $0x360] ss:$8 sps:$4 sm:$0xff]  }
 0x1fd   : > { %v11333_v3 = vpack.c.bf16 %v5667_v35, %v5666_v22  ;;  %v5665_v16 = vmax.f32 %v5009_v28, 0.0  ;;  %v3092_v32 = vadd.f32 %v3091_v14, %v2239_v58  ;;  %v5030_v33 = vadd.f32 %v9510_v54, %v10963_v39  ;;  %2437 = vmatprep.mubr.bf16.mxu0 %v10264_v56  ;;  %9608 = vmatprep.mubr.msk.bf16.mxu1 %vm4210_vm0, %v10265_v18  ;;  %v10266_v22 = vld [vmem:[%s10722_s29 + $0x338] sm:$0xff]  }
 0x1fe   : > { %v2241_v12 = vpop.f32.mrf.mxu0  ;;  %v5021_v24 = vpop.f32.mrf.mxu1  ;;  %v10269_v58 = vld [vmem:[%s10697_s13 + $0x374] ss:$8 sps:$4 sm:$0xff]  }
 0x1ff   : > { %12510 = vst [vmem:[#allocation25_spill] sm:$0xff] %v11333_v3  ;;  %v11337_v20 = vpack.c.bf16 %v5665_v16, %v5664_v13  ;;  %v5022_v63 = vadd.f32 %v5021_v24, %v10963_v39  ;;  %v5670_v35 = vmax.f32 %v5030_v33, 0.0  ;;  %v10270_v3 = vld [vmem:[%s10722_s29 + $0x340] sm:$0xff]  }
 0x200   : > { %v2242_v41 = vpop.f32.mrf.mxu0  ;;  %v9511_v8 = vpop.f32.mrf.mxu1 }
 0x201   : > { %12511 = vst [vmem:[#allocation26_spill] sm:$0xff] %v11337_v20  ;;  %v3093_v28 = vadd.f32 %v3092_v32, %v2242_v41  ;;  %v5033_v14 = vadd.f32 %v9511_v8, %v10963_v39  ;;  %v5668_v10 = vmax.f32 %v5022_v63, 0.0  ;;  %v3061_v63 = vrot.slane %v11144_v31, 4 }
 0x202   : > { %v2244_v54 = vpop.f32.mrf.mxu0  ;;  %v5024_v56 = vpop.f32.mrf.mxu1 }
 0x203   : > { %v5671_v18 = vmax.f32 %v5033_v14, 0.0  ;;  %v5025_v12 = vadd.f32 %v5024_v56, %v10963_v39  ;;  %v10267_v56 = vld [vmem:[%s10697_s13 + $0x370] ss:$8 sps:$4 sm:$0xff]  }
 0x204   : > { %v2247_v13 = vpop.f32.mrf.mxu0  ;;  %2438 = vmatmul.mubr.bf16.gmra.mxu0 %v10262_v21  ;;  %v9514_v16 = vpop.f32.mrf.mxu1  ;;  %9609 = vmatmul.mubr.msk.bf16.gmra.mxu1 %vm4210_vm0, %v10266_v22 }
 0x205   : > { %v11347_v24 = vpack.c.bf16 %v5671_v18, %v5670_v35  ;;  %v5669_v32 = vmax.f32 %v5025_v12, 0.0  ;;  %v3094_v33 = vadd.f32 %v3093_v28, %v2247_v13  ;;  %v5046_v41 = vadd.f32 %v9514_v16, %v10963_v39  ;;  %2445 = vmatprep.mubr.bf16.mxu0 %v10269_v58  ;;  %9612 = vmatprep.mubr.msk.bf16.mxu1 %vm4210_vm0, %v10270_v3  ;;  %v10271_v18 = vld [vmem:[%s10722_s29 + $0x348] sm:$0xff]   ;;  %v10275_v58 = vld [vmem:[%s10722_s29 + $0x350] sm:$0xff]  }
 0x206   : > { %v2249_v8 = vpop.f32.mrf.mxu0  ;;  %v5037_v21 = vpop.f32.mrf.mxu1  ;;  %v10274_v16 = vld [vmem:[%s10697_s13 + $0x384] ss:$8 sps:$4 sm:$0xff]   ;;  %v3062_v3 = vadd.f32 %v3061_v63, %v11144_v31 }
 0x207   : > { %12512 = vst [vmem:[#allocation27_spill] sm:$0xff] %v11347_v24  ;;  %v11352_v14 = vpack.c.bf16 %v5669_v32, %v5668_v10  ;;  %v5038_v54 = vadd.f32 %v5037_v21, %v10963_v39  ;;  %v5674_v28 = vmax.f32 %v5046_v41, 0.0 }
 0x208   : > { %v2250_v22 = vpop.f32.mrf.mxu0  ;;  %v9515_v35 = vpop.f32.mrf.mxu1 }
 0x209   : > { %12513 = vst [vmem:[#allocation28_spill] sm:$0xff] %v11352_v14  ;;  %v3095_v12 = vadd.f32 %v3094_v33, %v2250_v22  ;;  %v5049_v13 = vadd.f32 %v9515_v35, %v10963_v39  ;;  %v5672_v8 = vmax.f32 %v5038_v54, 0.0 }
 0x20a   : > { %v2252_v24 = vpop.f32.mrf.mxu0  ;;  %v5040_v20 = vpop.f32.mrf.mxu1 }
 0x20b   : > { %v5675_v53 = vmax.f32 %v5049_v13, 0.0  ;;  %v5041_v10 = vadd.f32 %v5040_v20, %v10963_v39  ;;  %v3063_v24 = vrot.slane %v3062_v3, 2 }
 0x20c   : > { %v2255_v32 = vpop.f32.mrf.mxu0  ;;  %2446 = vmatmul.mubr.bf16.gmra.mxu0 %v10267_v56  ;;  %v9518_v21 = vpop.f32.mrf.mxu1  ;;  %9613 = vmatmul.mubr.msk.bf16.gmra.mxu1 %vm4210_vm0, %v10271_v18 }
 0x20d   : > { %v11363_v33 = vpack.c.bf16 %v5675_v53, %v5674_v28  ;;  %v5673_v41 = vmax.f32 %v5041_v10, 0.0  ;;  %v3096_v22 = vadd.f32 %v3095_v12, %v2255_v32  ;;  %v5062_v31 = vadd.f32 %v9518_v21, %v10963_v39  ;;  %2453 = vmatprep.mubr.bf16.mxu0 %v10274_v16  ;;  %9616 = vmatprep.mubr.msk.bf16.mxu1 %vm4210_vm0, %v10275_v58  ;;  %v10272_v53 = vld [vmem:[%s10697_s13 + $0x380] ss:$8 sps:$4 sm:$0xff]   ;;  %v10276_v28 = vld [vmem:[%s10722_s29 + $0x358] sm:$0xff]  }
 0x20e   : > { %v2257_v20 = vpop.f32.mrf.mxu0  ;;  %v5053_v63 = vpop.f32.mrf.mxu1  ;;  %v10279_v32 = vld [vmem:[%s10697_s13 + $0x394] ss:$8 sps:$4 sm:$0xff]   ;;  %v10280_v21 = vld [vmem:[%s10722_s29 + $0x360] sm:$0xff]   ;;  %v3064_v16 = vadd.f32 %v3063_v24, %v3062_v3 }
 0x20f   : > { %12514 = vst [vmem:[#allocation29_spill] sm:$0xff] %v11363_v33  ;;  %v11367_v54 = vpack.c.bf16 %v5673_v41, %v5672_v8  ;;  %v5054_v35 = vadd.f32 %v5053_v63, %v10963_v39  ;;  %v5678_v13 = vmax.f32 %v5062_v31, 0.0 }
 0x210   : > { %v2258_v56 = vpop.f32.mrf.mxu0  ;;  %v9519_v18 = vpop.f32.mrf.mxu1 }
 0x211   : > { %12515 = vst [vmem:[#allocation30_spill] sm:$0xff] %v11367_v54  ;;  %v3097_v12 = vadd.f32 %v3096_v22, %v2258_v56  ;;  %v5065_v10 = vadd.f32 %v9519_v18, %v10963_v39  ;;  %v5676_v14 = vmax.f32 %v5054_v35, 0.0 }
 0x212   : > { %v2260_v33 = vpop.f32.mrf.mxu0  ;;  %v5056_v58 = vpop.f32.mrf.mxu1 }
 0x213   : > { %v3098_v20 = vrot.slane %v3097_v12, 4  ;;  %v5679_v15 = vmax.f32 %v5065_v10, 0.0  ;;  %v5057_v8 = vadd.f32 %v5056_v58, %v10963_v39  ;;  %v3065_v33 = vrot.slane %v3064_v16, 1 }
 0x214   : > { %v2263_v41 = vpop.f32.mrf.mxu0  ;;  %2454 = vmatmul.mubr.bf16.gmra.mxu0 %v10272_v53  ;;  %v9522_v63 = vpop.f32.mrf.mxu1  ;;  %9617 = vmatmul.mubr.msk.bf16.gmra.mxu1 %vm4210_vm0, %v10276_v28 }
 0x215   : > { %v3099_v22 = vadd.f32 %v3098_v20, %v3097_v12  ;;  %v11377_v31 = vpack.c.bf16 %v5679_v15, %v5678_v13  ;;  %v5677_v56 = vmax.f32 %v5057_v8, 0.0  ;;  %v5078_v3 = vadd.f32 %v9522_v63, %v10963_v39  ;;  %2461 = vmatprep.mubr.bf16.mxu0 %v10279_v32  ;;  %9620 = vmatprep.mubr.msk.bf16.mxu1 %vm4210_vm0, %v10280_v21  ;;  %v10277_v15 = vld [vmem:[%s10697_s13 + $0x390] ss:$8 sps:$4 sm:$0xff]   ;;  %v10281_v13 = vld [vmem:[%s10722_s29 + $0x368] sm:$0xff]  }
 0x216   : > { %v2265_v24 = vpop.f32.mrf.mxu0  ;;  %v5069_v35 = vpop.f32.mrf.mxu1  ;;  %v10284_v63 = vld [vmem:[%s10697_s13 + $0x3a4] ss:$8 sps:$4 sm:$0xff]   ;;  %v10285_v21 = vld [vmem:[%s10722_s29 + $0x370] sm:$0xff]  }
 0x217   : > { %12516 = vst [vmem:[#allocation31_spill] sm:$0xff] %v11377_v31  ;;  %v3100_v18 = vrot.slane %v3099_v22, 2  ;;  %v11381_v53 = vpack.c.bf16 %v5677_v56, %v5676_v14  ;;  %v5070_v28 = vadd.f32 %v5069_v35, %v10963_v39  ;;  %v5682_v20 = vmax.f32 %v5078_v3, 0.0 }
 0x218   : > { %v2266_v10 = vpop.f32.mrf.mxu0  ;;  %v9523_v12 = vpop.f32.mrf.mxu1  ;;  %v3066_v31 = vadd.f32 %v3065_v33, %v3064_v16 }
 0x219   : > { %12517 = vst [vmem:[#allocation32_spill] sm:$0xff] %v11381_v53  ;;  %v3101_v58 = vadd.f32 %v3100_v18, %v3099_v22  ;;  %v3104_v8 = vadd.f32 %v2266_v10, %v2263_v41  ;;  %v5081_v32 = vadd.f32 %v9523_v12, %v10963_v39  ;;  %v5680_v62 = vmax.f32 %v5070_v28, 0.0 }
 0x21a   : > { %v2268_v54 = vpop.f32.mrf.mxu0  ;;  %v5072_v24 = vpop.f32.mrf.mxu1  ;;  %v3326_v28 = vmul.f32 0.00390625, %v3066_v31 }
 0x21b   : > { %v3102_v44 = vrot.slane %v3101_v58, 1  ;;  %v5683_v14 = vmax.f32 %v5081_v32, 0.0  ;;  %v5073_v56 = vadd.f32 %v5072_v24, %v10963_v39  ;;  %v10290_v24 = vld [vmem:[%s10722_s29 + $0x380] sm:$0xff]  }
 0x21c   : > { %v2271_v35 = vpop.f32.mrf.mxu0  ;;  %2462 = vmatmul.mubr.bf16.gmra.mxu0 %v10277_v15  ;;  %v9526_v53 = vpop.f32.mrf.mxu1  ;;  %9621 = vmatmul.mubr.msk.bf16.gmra.mxu1 %vm4210_vm0, %v10281_v13 }
 0x21d   : > { %v3103_v22 = vadd.f32 %v3102_v44, %v3101_v58  ;;  %v11391_v41 = vpack.c.bf16 %v5683_v14, %v5682_v20  ;;  %v5681_v3 = vmax.f32 %v5073_v56, 0.0  ;;  %v3105_v18 = vadd.f32 %v3104_v8, %v2271_v35  ;;  %2469 = vmatprep.mubr.bf16.mxu0 %v10284_v63  ;;  %9624 = vmatprep.mubr.msk.bf16.mxu1 %vm4210_vm0, %v10285_v21  ;;  %v10282_v58 = vld [vmem:[%s10697_s13 + $0x3a0] ss:$8 sps:$4 sm:$0xff]   ;;  %v10286_v20 = vld [vmem:[%s10722_s29 + $0x378] sm:$0xff]  }
 0x21e   : > { %v5094_v54 = vadd.f32 %v9526_v53, %v10963_v39  ;;  %v2273_v16 = vpop.f32.mrf.mxu0  ;;  %v5085_v33 = vpop.f32.mrf.mxu1  ;;  %v10289_v21 = vld [vmem:[%s10697_s13 + $0x3b4] ss:$8 sps:$4 sm:$0xff]  }
 0x21f   : > { %v3327_v10 = vmul.f32 0.00390625, %v3103_v22  ;;  %v11395_v12 = vpack.c.bf16 %v5681_v3, %v5680_v62  ;;  %v5086_v44 = vadd.f32 %v5085_v33, %v10963_v39 }
 0x220   : > { %v2274_v15 = vpop.f32.mrf.mxu0  ;;  %v9527_v13 = vpop.f32.mrf.mxu1  ;;  %v5686_v32 = vmax.f32 %v5094_v54, 0.0 }
 0x221   : > { %v11401_v8 = vsel %vm8150_vm1, %v3327_v10, %v3326_v28  ;;  %v3106_v63 = vadd.f32 %v3105_v18, %v2274_v15  ;;  %v5097_v53 = vadd.f32 %v9527_v13, %v10963_v39  ;;  %v5684_v56 = vmax.f32 %v5086_v44, 0.0 }
 0x222   : > { %v2276_v14 = vpop.f32.mrf.mxu0  ;;  %v5088_v31 = vpop.f32.mrf.mxu1 }
 0x223   : > { %v5687_v62 = vmax.f32 %v5097_v53, 0.0  ;;  %v5089_v35 = vadd.f32 %v5088_v31, %v10963_v39  ;;  %v10294_v31 = vld [vmem:[%s10697_s13 + $0x3c4] ss:$8 sps:$4 sm:$0xff]  }
 0x224   : > { %v2279_v22 = vpop.f32.mrf.mxu0  ;;  %2470 = vmatmul.mubr.bf16.gmra.mxu0 %v10282_v58  ;;  %v9530_v3 = vpop.f32.mrf.mxu1  ;;  %9625 = vmatmul.mubr.msk.bf16.gmra.mxu1 %vm4210_vm0, %v10286_v20  ;;  %v10287_v20 = vld [vmem:[%s10697_s13 + $0x3b0] ss:$8 sps:$4 sm:$0xff]  }
 0x225   : > { %v11408_v16 = vpack.c.bf16 %v5687_v62, %v5686_v32  ;;  %v5685_v18 = vmax.f32 %v5089_v35, 0.0  ;;  %v3107_v54 = vadd.f32 %v3106_v63, %v2279_v22  ;;  %v5110_v33 = vadd.f32 %v9530_v3, %v10963_v39  ;;  %2477 = vmatprep.mubr.bf16.mxu0 %v10289_v21  ;;  %9628 = vmatprep.mubr.msk.bf16.mxu1 %vm4210_vm0, %v10290_v24  ;;  %v10291_v32 = vld [vmem:[%s10722_s29 + $0x388] sm:$0xff]   ;;  %v10295_v62 = vld [vmem:[%s10722_s29 + $0x390] sm:$0xff]  }
 0x226   : > { %v2281_v28 = vpop.f32.mrf.mxu0  ;;  %v5101_v10 = vpop.f32.mrf.mxu1 }
 0x227   : > { %v11412_v44 = vpack.c.bf16 %v5685_v18, %v5684_v56  ;;  %v5102_v15 = vadd.f32 %v5101_v10, %v10963_v39  ;;  %v5690_v53 = vmax.f32 %v5110_v33, 0.0 }
 0x228   : > { %v2282_v13 = vpop.f32.mrf.mxu0  ;;  %v9531_v58 = vpop.f32.mrf.mxu1 }
 0x229   : > { %v3108_v14 = vadd.f32 %v3107_v54, %v2282_v13  ;;  %v5113_v63 = vadd.f32 %v9531_v58, %v10963_v39  ;;  %v5688_v22 = vmax.f32 %v5102_v15, 0.0 }
 0x22a   : > { %v2284_v35 = vpop.f32.mrf.mxu0  ;;  %v5104_v21 = vpop.f32.mrf.mxu1 }
 0x22b   : > { %v5691_v24 = vmax.f32 %v5113_v63, 0.0  ;;  %v5105_v3 = vadd.f32 %v5104_v21, %v10963_v39 }
 0x22c   : > { %v2287_v56 = vpop.f32.mrf.mxu0  ;;  %2478 = vmatmul.mubr.bf16.gmra.mxu0 %v10287_v20  ;;  %v9534_v18 = vpop.f32.mrf.mxu1  ;;  %9629 = vmatmul.mubr.msk.bf16.gmra.mxu1 %vm4210_vm0, %v10291_v32  ;;  %v10292_v32 = vld [vmem:[%s10697_s13 + $0x3c0] ss:$8 sps:$4 sm:$0xff]  }
 0x22d   : > { %v11422_v28 = vpack.c.bf16 %v5691_v24, %v5690_v53  ;;  %v5689_v54 = vmax.f32 %v5105_v3, 0.0  ;;  %v3109_v33 = vadd.f32 %v3108_v14, %v2287_v56  ;;  %v5126_v10 = vadd.f32 %v9534_v18, %v10963_v39  ;;  %2485 = vmatprep.mubr.bf16.mxu0 %v10294_v31  ;;  %9632 = vmatprep.mubr.msk.bf16.mxu1 %vm4210_vm0, %v10295_v62  ;;  %v10296_v53 = vld [vmem:[%s10722_s29 + $0x398] sm:$0xff]   ;;  %v10300_v56 = vld [vmem:[%s10722_s29 + $0x3a0] sm:$0xff]  }
 0x22e   : > { %v2289_v15 = vpop.f32.mrf.mxu0  ;;  %v5117_v13 = vpop.f32.mrf.mxu1  ;;  %v10299_v3 = vld [vmem:[%s10697_s13 + $0x3d4] ss:$8 sps:$4 sm:$0xff]  }
 0x22f   : > { %12518 = vst [vmem:[#allocation33_spill] sm:$0xff] %v11422_v28  ;;  %v11426_v58 = vpack.c.bf16 %v5689_v54, %v5688_v22  ;;  %v5118_v20 = vadd.f32 %v5117_v13, %v10963_v39  ;;  %v5694_v21 = vmax.f32 %v5126_v10, 0.0 }
 0x230   : > { %v2290_v63 = vpop.f32.mrf.mxu0  ;;  %v9535_v35 = vpop.f32.mrf.mxu1 }
 0x231   : > { %12519 = vst [vmem:[#allocation34_spill] sm:$0xff] %v11426_v58  ;;  %v3110_v24 = vadd.f32 %v3109_v33, %v2290_v63  ;;  %v5129_v14 = vadd.f32 %v9535_v35, %v10963_v39  ;;  %v5692_v28 = vmax.f32 %v5118_v20, 0.0 }
 0x232   : > { %v2292_v18 = vpop.f32.mrf.mxu0  ;;  %v5120_v31 = vpop.f32.mrf.mxu1 }
 0x233   : > { %v5695_v62 = vmax.f32 %v5129_v14, 0.0  ;;  %v5121_v15 = vadd.f32 %v5120_v31, %v10963_v39 }
 0x234   : > { %v2295_v22 = vpop.f32.mrf.mxu0  ;;  %2486 = vmatmul.mubr.bf16.gmra.mxu0 %v10292_v32  ;;  %v9538_v54 = vpop.f32.mrf.mxu1  ;;  %9633 = vmatmul.mubr.msk.bf16.gmra.mxu1 %vm4210_vm0, %v10296_v53  ;;  %v10297_v53 = vld [vmem:[%s10697_s13 + $0x3d0] ss:$8 sps:$4 sm:$0xff]  }
 0x235   : > { %v11436_v13 = vpack.c.bf16 %v5695_v62, %v5694_v21  ;;  %v5693_v33 = vmax.f32 %v5121_v15, 0.0  ;;  %v3111_v10 = vadd.f32 %v3110_v24, %v2295_v22  ;;  %v5142_v63 = vadd.f32 %v9538_v54, %v10963_v39  ;;  %2493 = vmatprep.mubr.bf16.mxu0 %v10299_v3  ;;  %9636 = vmatprep.mubr.msk.bf16.mxu1 %vm4210_vm0, %v10300_v56  ;;  %v10301_v21 = vld [vmem:[%s10722_s29 + $0x3a8] sm:$0xff]  }
 0x236   : > { %v2297_v20 = vpop.f32.mrf.mxu0  ;;  %v5133_v35 = vpop.f32.mrf.mxu1  ;;  %v10304_v22 = vld [vmem:[%s10697_s13 + $0x3e4] ss:$8 sps:$4 sm:$0xff]  }
 0x237   : > { %12520 = vst [vmem:[#allocation35_spill] sm:$0xff] %v11436_v13  ;;  %v11440_v14 = vpack.c.bf16 %v5693_v33, %v5692_v28  ;;  %v5134_v32 = vadd.f32 %v5133_v35, %v10963_v39  ;;  %v5698_v62 = vmax.f32 %v5142_v63, 0.0  ;;  %v10305_v13 = vld [vmem:[%s10722_s29 + $0x3b0] sm:$0xff]  }
 0x238   : > { %v2298_v18 = vpop.f32.mrf.mxu0  ;;  %v9539_v31 = vpop.f32.mrf.mxu1 }
 0x239   : > { %12521 = vst [vmem:[#allocation36_spill] sm:$0xff] %v11440_v14  ;;  %v3112_v15 = vadd.f32 %v3111_v10, %v2298_v18  ;;  %v5145_v24 = vadd.f32 %v9539_v31, %v10963_v39  ;;  %v5696_v58 = vmax.f32 %v5134_v32, 0.0  ;;  %v10302_v14 = vld [vmem:[%s10697_s13 + $0x3e0] ss:$8 sps:$4 sm:$0xff]  }
 0x23a   : > { %v2300_v54 = vpop.f32.mrf.mxu0  ;;  %v5136_v3 = vpop.f32.mrf.mxu1 }
 0x23b   : > { %v5699_v56 = vmax.f32 %v5145_v24, 0.0  ;;  %v5137_v20 = vadd.f32 %v5136_v3, %v10963_v39 }
 0x23c   : > { %v2303_v28 = vpop.f32.mrf.mxu0  ;;  %2494 = vmatmul.mubr.bf16.gmra.mxu0 %v10297_v53  ;;  %v9542_v33 = vpop.f32.mrf.mxu1  ;;  %9637 = vmatmul.mubr.msk.bf16.gmra.mxu1 %vm4210_vm0, %v10301_v21  ;;  %v10306_v21 = vld [vmem:[%s10722_s29 + $0x3b8] sm:$0xff]   ;;  %s8384_s29 = sshll.u32 %s292_s21, 4  ;;  %s8385_s29 = int_to_ptr.vmem [resolvable:$true] %s8384_s29 }
 0x23d   : > { %v11450_v35 = vpack.c.bf16 %v5699_v56, %v5698_v62  ;;  %v5697_v10 = vmax.f32 %v5137_v20, 0.0  ;;  %v3113_v63 = vadd.f32 %v3112_v15, %v2303_v28  ;;  %v5158_v18 = vadd.f32 %v9542_v33, %v10963_v39  ;;  %2501 = vmatprep.mubr.bf16.mxu0 %v10304_v22  ;;  %9640 = vmatprep.mubr.msk.bf16.mxu1 %vm4210_vm0, %v10305_v13  ;;  %v10309_v15 = vld [vmem:[%s10697_s13 + $0x3f4] ss:$8 sps:$4 sm:$0xff]   ;;  %s10515_s9 = scalar_lea.vmem %s8385_s29, 128  ;;  %p10522_p0 = scmp.lt.s32.totalorder %s8385_s29, %s10520_s14 }
 0x23e   : > { %v2305_v32 = vpop.f32.mrf.mxu0  ;;  %v5149_v31 = vpop.f32.mrf.mxu1  ;;  %p10516_p11 = scmp.ne.s32.totalorder %s8385_s29, %s10515_s9  ;;  %p10523_p1 = scmp.lt.s32.totalorder %s10521_s28, %s10515_s9 }
 0x23f   : > { %12522 = vst [vmem:[#allocation37_spill] sm:$0xff] %v11450_v35  ;;  %v11454_v24 = vpack.c.bf16 %v5697_v10, %v5696_v58  ;;  %v5150_v53 = vadd.f32 %v5149_v31, %v10963_v39  ;;  %v5702_v62 = vmax.f32 %v5158_v18, 0.0 }
 0x240   : > { %v2306_v54 = vpop.f32.mrf.mxu0  ;;  %v9543_v3 = vpop.f32.mrf.mxu1  ;;  %p10517_p12 = pnand %p10516_p11, %p10657_p5  ;;  %p10524_p2 = por %p10523_p1, %p10522_p0 }
 0x241   : > { %v3114_v56 = vadd.f32 %v3113_v63, %v2306_v54  ;;  %v5161_v20 = vadd.f32 %v9543_v3, %v10963_v39  ;;  %v5700_v22 = vmax.f32 %v5150_v53, 0.0 }
 0x242   : > { %v2308_v28 = vpop.f32.mrf.mxu0  ;;  %v5152_v33 = vpop.f32.mrf.mxu1  ;;  %p10518_p13 = pneg %p10517_p12 }
 0x243   : > { %v5703_v35 = vmax.f32 %v5161_v20, 0.0  ;;  %v5153_v13 = vadd.f32 %v5152_v33, %v10963_v39 }
 0x244   : > { %v2311_v32 = vpop.f32.mrf.mxu0  ;;  %2502 = vmatmul.mubr.bf16.gmra.mxu0 %v10302_v14  ;;  %v9546_v58 = vpop.f32.mrf.mxu1  ;;  %9641 = vmatmul.mubr.msk.bf16.gmra.mxu1 %vm4210_vm0, %v10306_v21  ;;  %v10307_v21 = vld [vmem:[%s10697_s13 + $0x3f0] ss:$8 sps:$4 sm:$0xff]   ;;  %p10525_p3 = pnand %p10524_p2, %p10518_p13 }
 0x245   : > { %v11463_v10 = vpack.c.bf16 %v5703_v35, %v5702_v62  ;;  %v5701_v18 = vmax.f32 %v5153_v13, 0.0  ;;  %v3115_v63 = vadd.f32 %v3114_v56, %v2311_v32  ;;  %v5174_v31 = vadd.f32 %v9546_v58, %v10963_v39  ;;  %9652 = vmatprep.mubr.msk.bf16.mxu1 %vm4210_vm0, %v10982_v11  ;;  %2509 = vmatprep.mubr.bf16.mxu0 %v10309_v15  ;;  %v10312_v56 = vld [vmem:[%s10697_s13 + $0x404] ss:$8 sps:$4 sm:$0xff]  }
 0x246   : > { %v2313_v53 = vpop.f32.mrf.mxu0  ;;  %v5165_v54 = vpop.f32.mrf.mxu1 }
 0x247   : > { %12523 = vst [vmem:[#allocation38_spill] sm:$0xff] %v11463_v10  ;;  %v11468_v3 = vpack.c.bf16 %v5701_v18, %v5700_v22  ;;  %v5166_v14 = vadd.f32 %v5165_v54, %v10963_v39  ;;  %v5706_v35 = vmax.f32 %v5174_v31, 0.0 }
 0x248   : > { %v2314_v20 = vpop.f32.mrf.mxu0  ;;  %v9547_v28 = vpop.f32.mrf.mxu1 }
 0x249   : > { %v3116_v62 = vadd.f32 %v3115_v63, %v2314_v20  ;;  %v5177_v33 = vadd.f32 %v9547_v28, %v10963_v39  ;;  %v5704_v58 = vmax.f32 %v5166_v14, 0.0 }
 0x24a   : > { %v2316_v13 = vpop.f32.mrf.mxu0  ;;  %v5168_v32 = vpop.f32.mrf.mxu1 }
 0x24b   : > { %v5707_v10 = vmax.f32 %v5177_v33, 0.0  ;;  %v5169_v11 = vadd.f32 %v5168_v32, %v10963_v39 }
 0x24c   : > { %v2319_v15 = vpop.f32.mrf.mxu0  ;;  %2510 = vmatmul.mubr.bf16.gmra.mxu0 %v10307_v21  ;;  %v9550_v22 = vpop.f32.mrf.mxu1  ;;  %9653 = vmatmul.mubr.msk.bf16.vlgmr.msra.gmra.mxu1 %vm4210_vm0, %v10978_v5  ;;  %v10310_v5 = vld [vmem:[%s10697_s13 + $0x400] ss:$8 sps:$4 sm:$0xff]  }
 0x24d   : > { %v11477_v18 = vpack.c.bf16 %v5707_v10, %v5706_v35  ;;  %v5705_v63 = vmax.f32 %v5169_v11, 0.0  ;;  %v3117_v31 = vadd.f32 %v3116_v62, %v2319_v15  ;;  %v5190_v53 = vadd.f32 %v9550_v22, %v10963_v39  ;;  %9656 = vmatprep.mubr.msk.bf16.mxu1 %vm4210_vm0, %v10996_v42  ;;  %2517 = vmatprep.mubr.bf16.mxu0 %v10312_v56  ;;  %v10315_v62 = vld [vmem:[%s10697_s13 + $0x414] ss:$8 sps:$4 sm:$0xff]  }
 0x24e   : > { %v2321_v54 = vpop.f32.mrf.mxu0  ;;  %v5181_v14 = vpop.f32.mrf.mxu1 }
 0x24f   : > { %v11482_v20 = vpack.c.bf16 %v5705_v63, %v5704_v58  ;;  %v5182_v28 = vadd.f32 %v5181_v14, %v10963_v39  ;;  %v5710_v10 = vmax.f32 %v5190_v53, 0.0 }
 0x250   : > { %v2322_v21 = vpop.f32.mrf.mxu0  ;;  %v9551_v33 = vpop.f32.mrf.mxu1 }
 0x251   : > { %v3118_v35 = vadd.f32 %v3117_v31, %v2322_v21  ;;  %v5193_v13 = vadd.f32 %v9551_v33, %v10963_v39  ;;  %v5708_v15 = vmax.f32 %v5182_v28, 0.0 }
 0x252   : > { %v2324_v32 = vpop.f32.mrf.mxu0  ;;  %v5184_v11 = vpop.f32.mrf.mxu1 }
 0x253   : > { %v5711_v22 = vmax.f32 %v5193_v13, 0.0  ;;  %v5185_v42 = vadd.f32 %v5184_v11, %v10963_v39 }
 0x254   : > { %v2327_v56 = vpop.f32.mrf.mxu0  ;;  %2518 = vmatmul.mubr.bf16.gmra.mxu0 %v10310_v5  ;;  %v9554_v58 = vpop.f32.mrf.mxu1  ;;  %9657 = vmatmul.mubr.msk.bf16.gmra.mxu1 %vm4210_vm0, %v10992_v34  ;;  %v10313_v34 = vld [vmem:[%s10697_s13 + $0x410] ss:$8 sps:$4 sm:$0xff]  }
 0x255   : > { %v11491_v63 = vpack.c.bf16 %v5711_v22, %v5710_v10  ;;  %v5709_v31 = vmax.f32 %v5185_v42, 0.0  ;;  %v3119_v53 = vadd.f32 %v3118_v35, %v2327_v56  ;;  %v5206_v54 = vadd.f32 %v9554_v58, %v10963_v39  ;;  %9660 = vmatprep.mubr.msk.bf16.mxu1 %vm4210_vm0, %v11010_v4  ;;  %2525 = vmatprep.mubr.bf16.mxu0 %v10315_v62  ;;  %v10318_v35 = vld [vmem:[%s10697_s13 + $0x424] ss:$8 sps:$4 sm:$0xff]  }
 0x256   : > { %v2329_v14 = vpop.f32.mrf.mxu0  ;;  %v5197_v28 = vpop.f32.mrf.mxu1 }
 0x257   : > { %v11496_v21 = vpack.c.bf16 %v5709_v31, %v5708_v15  ;;  %v5198_v33 = vadd.f32 %v5197_v28, %v10963_v39  ;;  %v5714_v10 = vmax.f32 %v5206_v54, 0.0 }
 0x258   : > { %v2330_v5 = vpop.f32.mrf.mxu0  ;;  %v9555_v13 = vpop.f32.mrf.mxu1 }
 0x259   : > { %v3120_v32 = vadd.f32 %v3119_v53, %v2330_v5  ;;  %v5209_v11 = vadd.f32 %v9555_v13, %v10963_v39  ;;  %v5712_v56 = vmax.f32 %v5198_v33, 0.0 }
 0x25a   : > { %v2332_v22 = vpop.f32.mrf.mxu0  ;;  %v5200_v42 = vpop.f32.mrf.mxu1 }
 0x25b   : > { %v5715_v58 = vmax.f32 %v5209_v11, 0.0  ;;  %v5201_v4 = vadd.f32 %v5200_v42, %v10963_v39 }
 0x25c   : > { %v2335_v62 = vpop.f32.mrf.mxu0  ;;  %2526 = vmatmul.mubr.bf16.gmra.mxu0 %v10313_v34  ;;  %v9558_v15 = vpop.f32.mrf.mxu1  ;;  %9661 = vmatmul.mubr.msk.bf16.gmra.mxu1 %vm4210_vm0, %v11006_v60  ;;  %v10316_v60 = vld [vmem:[%s10697_s13 + $0x420] ss:$8 sps:$4 sm:$0xff]  }
 0x25d   : > { %v11505_v31 = vpack.c.bf16 %v5715_v58, %v5714_v10  ;;  %v5713_v53 = vmax.f32 %v5201_v4, 0.0  ;;  %v3121_v54 = vadd.f32 %v3120_v32, %v2335_v62  ;;  %v5222_v14 = vadd.f32 %v9558_v15, %v10963_v39  ;;  %9664 = vmatprep.mubr.msk.bf16.mxu1 %vm4210_vm0, %v11024_v37  ;;  %2533 = vmatprep.mubr.bf16.mxu0 %v10318_v35  ;;  %v10321_v32 = vld [vmem:[%s10697_s13 + $0x434] ss:$8 sps:$4 sm:$0xff]  }
 0x25e   : > { %v2337_v28 = vpop.f32.mrf.mxu0  ;;  %v5213_v33 = vpop.f32.mrf.mxu1 }
 0x25f   : > { %v11510_v5 = vpack.c.bf16 %v5713_v53, %v5712_v56  ;;  %v5214_v13 = vadd.f32 %v5213_v33, %v10963_v39  ;;  %v5718_v10 = vmax.f32 %v5222_v14, 0.0 }
 0x260   : > { %v2338_v34 = vpop.f32.mrf.mxu0  ;;  %v9559_v11 = vpop.f32.mrf.mxu1 }
 0x261   : > { %v3122_v22 = vadd.f32 %v3121_v54, %v2338_v34  ;;  %v5225_v42 = vadd.f32 %v9559_v11, %v10963_v39  ;;  %v5716_v62 = vmax.f32 %v5214_v13, 0.0 }
 0x262   : > { %v2340_v58 = vpop.f32.mrf.mxu0  ;;  %v5216_v4 = vpop.f32.mrf.mxu1 }
 0x263   : > { %v5719_v15 = vmax.f32 %v5225_v42, 0.0  ;;  %v5217_v37 = vadd.f32 %v5216_v4, %v10963_v39 }
 0x264   : > { %v2343_v35 = vpop.f32.mrf.mxu0  ;;  %2534 = vmatmul.mubr.bf16.gmra.mxu0 %v10316_v60  ;;  %v9562_v56 = vpop.f32.mrf.mxu1  ;;  %9665 = vmatmul.mubr.msk.bf16.gmra.mxu1 %vm4210_vm0, %v11020_v29  ;;  %v10319_v29 = vld [vmem:[%s10697_s13 + $0x430] ss:$8 sps:$4 sm:$0xff]  }
 0x265   : > { %v11519_v53 = vpack.c.bf16 %v5719_v15, %v5718_v10  ;;  %v5717_v54 = vmax.f32 %v5217_v37, 0.0  ;;  %v3123_v14 = vadd.f32 %v3122_v22, %v2343_v35  ;;  %v5238_v28 = vadd.f32 %v9562_v56, %v10963_v39  ;;  %9668 = vmatprep.mubr.msk.bf16.mxu1 %vm4210_vm0, %v11038_v1  ;;  %2541 = vmatprep.mubr.bf16.mxu0 %v10321_v32  ;;  %v10324_v22 = vld [vmem:[%s10697_s13 + $0x444] ss:$8 sps:$4 sm:$0xff]  }
 0x266   : > { %v2345_v33 = vpop.f32.mrf.mxu0  ;;  %v5229_v13 = vpop.f32.mrf.mxu1 }
 0x267   : > { %v11524_v34 = vpack.c.bf16 %v5717_v54, %v5716_v62  ;;  %v5230_v11 = vadd.f32 %v5229_v13, %v10963_v39  ;;  %v5722_v10 = vmax.f32 %v5238_v28, 0.0 }
 0x268   : > { %v2346_v60 = vpop.f32.mrf.mxu0  ;;  %v9563_v42 = vpop.f32.mrf.mxu1 }
 0x269   : > { %v3124_v58 = vadd.f32 %v3123_v14, %v2346_v60  ;;  %v5241_v4 = vadd.f32 %v9563_v42, %v10963_v39  ;;  %v5720_v35 = vmax.f32 %v5230_v11, 0.0 }
 0x26a   : > { %v2348_v15 = vpop.f32.mrf.mxu0  ;;  %v5232_v37 = vpop.f32.mrf.mxu1 }
 0x26b   : > { %v5723_v56 = vmax.f32 %v5241_v4, 0.0  ;;  %v5233_v1 = vadd.f32 %v5232_v37, %v10963_v39 }
 0x26c   : > { %v2351_v32 = vpop.f32.mrf.mxu0  ;;  %2542 = vmatmul.mubr.bf16.gmra.mxu0 %v10319_v29  ;;  %v9566_v62 = vpop.f32.mrf.mxu1  ;;  %9669 = vmatmul.mubr.msk.bf16.gmra.mxu1 %vm4210_vm0, %v11034_v57  ;;  %v10322_v57 = vld [vmem:[%s10697_s13 + $0x440] ss:$8 sps:$4 sm:$0xff]  }
 0x26d   : > { %v11533_v54 = vpack.c.bf16 %v5723_v56, %v5722_v10  ;;  %v5721_v14 = vmax.f32 %v5233_v1, 0.0  ;;  %v3125_v28 = vadd.f32 %v3124_v58, %v2351_v32  ;;  %v5254_v33 = vadd.f32 %v9566_v62, %v10963_v39  ;;  %9672 = vmatprep.mubr.msk.bf16.mxu1 %vm4210_vm0, %v11052_v38  ;;  %2549 = vmatprep.mubr.bf16.mxu0 %v10324_v22  ;;  %v10327_v58 = vld [vmem:[%s10697_s13 + $0x454] ss:$8 sps:$4 sm:$0xff]  }
 0x26e   : > { %v2353_v13 = vpop.f32.mrf.mxu0  ;;  %v5245_v11 = vpop.f32.mrf.mxu1 }
 0x26f   : > { %v11538_v60 = vpack.c.bf16 %v5721_v14, %v5720_v35  ;;  %v5246_v42 = vadd.f32 %v5245_v11, %v10963_v39  ;;  %v5726_v10 = vmax.f32 %v5254_v33, 0.0 }
 0x270   : > { %v2354_v29 = vpop.f32.mrf.mxu0  ;;  %v9567_v4 = vpop.f32.mrf.mxu1 }
 0x271   : > { %v3126_v15 = vadd.f32 %v3125_v28, %v2354_v29  ;;  %v5257_v37 = vadd.f32 %v9567_v4, %v10963_v39  ;;  %v5724_v32 = vmax.f32 %v5246_v42, 0.0 }
 0x272   : > { %v2356_v56 = vpop.f32.mrf.mxu0  ;;  %v5248_v1 = vpop.f32.mrf.mxu1 }
 0x273   : > { %v5727_v62 = vmax.f32 %v5257_v37, 0.0  ;;  %v5249_v38 = vadd.f32 %v5248_v1, %v10963_v39 }
 0x274   : > { %v2359_v22 = vpop.f32.mrf.mxu0  ;;  %2550 = vmatmul.mubr.bf16.gmra.mxu0 %v10322_v57  ;;  %v9570_v35 = vpop.f32.mrf.mxu1  ;;  %9673 = vmatmul.mubr.msk.bf16.gmra.mxu1 %vm4210_vm0, %v11048_v27  ;;  %v10325_v27 = vld [vmem:[%s10697_s13 + $0x450] ss:$8 sps:$4 sm:$0xff]  }
 0x275   : > { %v11547_v14 = vpack.c.bf16 %v5727_v62, %v5726_v10  ;;  %v5725_v28 = vmax.f32 %v5249_v38, 0.0  ;;  %v3127_v33 = vadd.f32 %v3126_v15, %v2359_v22  ;;  %v5270_v13 = vadd.f32 %v9570_v35, %v10963_v39  ;;  %9676 = vmatprep.mubr.msk.bf16.mxu1 %vm4210_vm0, %v11066_v7  ;;  %2557 = vmatprep.mubr.bf16.mxu0 %v10327_v58  ;;  %v10330_v15 = vld [vmem:[%s10697_s13 + $0x464] ss:$8 sps:$4 sm:$0xff]  }
 0x276   : > { %v2361_v11 = vpop.f32.mrf.mxu0  ;;  %v5261_v42 = vpop.f32.mrf.mxu1 }
 0x277   : > { %v11552_v29 = vpack.c.bf16 %v5725_v28, %v5724_v32  ;;  %v5262_v4 = vadd.f32 %v5261_v42, %v10963_v39  ;;  %v5730_v10 = vmax.f32 %v5270_v13, 0.0 }
 0x278   : > { %v2362_v57 = vpop.f32.mrf.mxu0  ;;  %v9571_v37 = vpop.f32.mrf.mxu1 }
 0x279   : > { %v3128_v56 = vadd.f32 %v3127_v33, %v2362_v57  ;;  %v5273_v1 = vadd.f32 %v9571_v37, %v10963_v39  ;;  %v5728_v22 = vmax.f32 %v5262_v4, 0.0 }
 0x27a   : > { %v2364_v62 = vpop.f32.mrf.mxu0  ;;  %v5264_v38 = vpop.f32.mrf.mxu1 }
 0x27b   : > { %v5731_v35 = vmax.f32 %v5273_v1, 0.0  ;;  %v5265_v7 = vadd.f32 %v5264_v38, %v10963_v39 }
 0x27c   : > { %v2367_v58 = vpop.f32.mrf.mxu0  ;;  %2558 = vmatmul.mubr.bf16.gmra.mxu0 %v10325_v27  ;;  %v9574_v32 = vpop.f32.mrf.mxu1  ;;  %9677 = vmatmul.mubr.msk.bf16.gmra.mxu1 %vm4210_vm0, %v11062_v59  ;;  %v10328_v59 = vld [vmem:[%s10697_s13 + $0x460] ss:$8 sps:$4 sm:$0xff]  }
 0x27d   : > { %v11561_v28 = vpack.c.bf16 %v5731_v35, %v5730_v10  ;;  %v5729_v33 = vmax.f32 %v5265_v7, 0.0  ;;  %v3129_v13 = vadd.f32 %v3128_v56, %v2367_v58  ;;  %v5286_v11 = vadd.f32 %v9574_v32, %v10963_v39  ;;  %9680 = vmatprep.mubr.msk.bf16.mxu1 %vm4210_vm0, %v11083_v46  ;;  %2565 = vmatprep.mubr.bf16.mxu0 %v10330_v15  ;;  %v10333_v56 = vld [vmem:[%s10697_s13 + $0x474] ss:$8 sps:$4 sm:$0xff]  }
 0x27e   : > { %v2369_v42 = vpop.f32.mrf.mxu0  ;;  %v5277_v4 = vpop.f32.mrf.mxu1 }
 0x27f   : > { %v11566_v57 = vpack.c.bf16 %v5729_v33, %v5728_v22  ;;  %v5278_v37 = vadd.f32 %v5277_v4, %v10963_v39  ;;  %v5734_v10 = vmax.f32 %v5286_v11, 0.0 }
 0x280   : > { %v2370_v27 = vpop.f32.mrf.mxu0  ;;  %v9575_v1 = vpop.f32.mrf.mxu1 }
 0x281   : > { %v3130_v62 = vadd.f32 %v3129_v13, %v2370_v27  ;;  %v5289_v38 = vadd.f32 %v9575_v1, %v10963_v39  ;;  %v5732_v58 = vmax.f32 %v5278_v37, 0.0 }
 0x282   : > { %v2372_v35 = vpop.f32.mrf.mxu0  ;;  %v5280_v7 = vpop.f32.mrf.mxu1 }
 0x283   : > { %v5735_v32 = vmax.f32 %v5289_v38, 0.0  ;;  %v5281_v46 = vadd.f32 %v5280_v7, %v10963_v39 }
 0x284   : > { %v2375_v15 = vpop.f32.mrf.mxu0  ;;  %2566 = vmatmul.mubr.bf16.gmra.mxu0 %v10328_v59  ;;  %v9578_v22 = vpop.f32.mrf.mxu1  ;;  %9681 = vmatmul.mubr.msk.bf16.gmra.mxu1 %vm4210_vm0, %v11079_v36  ;;  %v10331_v36 = vld [vmem:[%s10697_s13 + $0x470] ss:$8 sps:$4 sm:$0xff]  }
 0x285   : > { %v11575_v33 = vpack.c.bf16 %v5735_v32, %v5734_v10  ;;  %v5733_v13 = vmax.f32 %v5281_v46, 0.0  ;;  %v3131_v11 = vadd.f32 %v3130_v62, %v2375_v15  ;;  %v5302_v42 = vadd.f32 %v9578_v22, %v10963_v39  ;;  %9684 = vmatprep.mubr.msk.bf16.mxu1 %vm4210_vm0, %v11097_v19  ;;  %2573 = vmatprep.mubr.bf16.mxu0 %v10333_v56  ;;  %v10336_v62 = vld [vmem:[%s10697_s13 + $0x484] ss:$8 sps:$4 sm:$0xff]  }
 0x286   : > { %v2377_v4 = vpop.f32.mrf.mxu0  ;;  %v5293_v37 = vpop.f32.mrf.mxu1 }
 0x287   : > { %v11580_v27 = vpack.c.bf16 %v5733_v13, %v5732_v58  ;;  %v5294_v1 = vadd.f32 %v5293_v37, %v10963_v39  ;;  %v5738_v10 = vmax.f32 %v5302_v42, 0.0 }
 0x288   : > { %v2378_v59 = vpop.f32.mrf.mxu0  ;;  %v9579_v38 = vpop.f32.mrf.mxu1 }
 0x289   : > { %v3132_v35 = vadd.f32 %v3131_v11, %v2378_v59  ;;  %v5305_v7 = vadd.f32 %v9579_v38, %v10963_v39  ;;  %v5736_v15 = vmax.f32 %v5294_v1, 0.0 }
 0x28a   : > { %v2380_v32 = vpop.f32.mrf.mxu0  ;;  %v5296_v46 = vpop.f32.mrf.mxu1 }
 0x28b   : > { %v5739_v22 = vmax.f32 %v5305_v7, 0.0  ;;  %v5297_v19 = vadd.f32 %v5296_v46, %v10963_v39 }
 0x28c   : > { %v2383_v56 = vpop.f32.mrf.mxu0  ;;  %2574 = vmatmul.mubr.bf16.gmra.mxu0 %v10331_v36  ;;  %v9582_v58 = vpop.f32.mrf.mxu1  ;;  %9685 = vmatmul.mubr.msk.bf16.gmra.mxu1 %vm4210_vm0, %v11093_v9  ;;  %v10334_v9 = vld [vmem:[%s10697_s13 + $0x480] ss:$8 sps:$4 sm:$0xff]  }
 0x28d   : > { %v11589_v13 = vpack.c.bf16 %v5739_v22, %v5738_v10  ;;  %v5737_v11 = vmax.f32 %v5297_v19, 0.0  ;;  %v3133_v42 = vadd.f32 %v3132_v35, %v2383_v56  ;;  %v5318_v4 = vadd.f32 %v9582_v58, %v10963_v39  ;;  %9688 = vmatprep.mubr.msk.bf16.mxu1 %vm4210_vm0, %v11111_v55  ;;  %2581 = vmatprep.mubr.bf16.mxu0 %v10336_v62  ;;  %v10339_v35 = vld [vmem:[%s10697_s13 + $0x494] ss:$8 sps:$4 sm:$0xff]  }
 0x28e   : > { %v2385_v37 = vpop.f32.mrf.mxu0  ;;  %v5309_v1 = vpop.f32.mrf.mxu1 }
 0x28f   : > { %12524 = vst [vmem:[#allocation39_spill] sm:$0xff] %v11589_v13  ;;  %v11594_v59 = vpack.c.bf16 %v5737_v11, %v5736_v15  ;;  %v5310_v38 = vadd.f32 %v5309_v1, %v10963_v39  ;;  %v5742_v10 = vmax.f32 %v5318_v4, 0.0 }
 0x290   : > { %v2386_v36 = vpop.f32.mrf.mxu0  ;;  %v9583_v7 = vpop.f32.mrf.mxu1 }
 0x291   : > { %v3134_v32 = vadd.f32 %v3133_v42, %v2386_v36  ;;  %v5321_v46 = vadd.f32 %v9583_v7, %v10963_v39  ;;  %v5740_v56 = vmax.f32 %v5310_v38, 0.0 }
 0x292   : > { %v2388_v22 = vpop.f32.mrf.mxu0  ;;  %v5312_v19 = vpop.f32.mrf.mxu1 }
 0x293   : > { %v3135_v58 = vrot.slane %v3134_v32, 4  ;;  %v5743_v55 = vmax.f32 %v5321_v46, 0.0  ;;  %v5313_v62 = vadd.f32 %v5312_v19, %v10963_v39 }
 0x294   : > { %v2391_v37 = vpop.f32.mrf.mxu0  ;;  %2582 = vmatmul.mubr.bf16.gmra.mxu0 %v10334_v9  ;;  %v9586_v15 = vpop.f32.mrf.mxu1  ;;  %9689 = vmatmul.mubr.msk.bf16.gmra.mxu1 %vm4210_vm0, %v11107_v49 }
 0x295   : > { %v3136_v11 = vadd.f32 %v3135_v58, %v3134_v32  ;;  %v11603_v4 = vpack.c.bf16 %v5743_v55, %v5742_v10  ;;  %v5741_v42 = vmax.f32 %v5313_v62, 0.0  ;;  %v5334_v1 = vadd.f32 %v9586_v15, %v10963_v39  ;;  %9692 = vmatprep.mubr.msk.bf16.mxu1 %vm4210_vm0, %v11125_v40  ;;  %2589 = vmatprep.mubr.bf16.mxu0 %v10339_v35  ;;  %v10337_v32 = vld [vmem:[%s10697_s13 + $0x490] ss:$8 sps:$4 sm:$0xff]   ;;  %v10342_v62 = vld [vmem:[%s10697_s13 + $0x4a4] ss:$8 sps:$4 sm:$0xff]  }
 0x296   : > { %v2393_v38 = vpop.f32.mrf.mxu0  ;;  %v5325_v36 = vpop.f32.mrf.mxu1 }
 0x297   : > { %12525 = vst [vmem:[#allocation40_spill] sm:$0xff] %v11603_v4  ;;  %v3137_v7 = vrot.slane %v3136_v11, 2  ;;  %v11608_v9 = vpack.c.bf16 %v5741_v42, %v5740_v56  ;;  %v5326_v46 = vadd.f32 %v5325_v36, %v10963_v39  ;;  %v5746_v19 = vmax.f32 %v5334_v1, 0.0 }
 0x298   : > { %v2394_v22 = vpop.f32.mrf.mxu0  ;;  %v9587_v49 = vpop.f32.mrf.mxu1 }
 0x299   : > { %v3138_v10 = vadd.f32 %v3137_v7, %v3136_v11  ;;  %v3141_v58 = vadd.f32 %v2394_v22, %v2391_v37  ;;  %v5337_v55 = vadd.f32 %v9587_v49, %v10963_v39  ;;  %v5744_v35 = vmax.f32 %v5326_v46, 0.0 }
 0x29a   : > { %v2396_v15 = vpop.f32.mrf.mxu0  ;;  %v5328_v4 = vpop.f32.mrf.mxu1 }
 0x29b   : > { %v3139_v40 = vrot.slane %v3138_v10, 1  ;;  %v5747_v38 = vmax.f32 %v5337_v55, 0.0  ;;  %v5329_v13 = vadd.f32 %v5328_v4, %v10963_v39 }
 0x29c   : > { %v2399_v56 = vpop.f32.mrf.mxu0  ;;  %2590 = vmatmul.mubr.bf16.gmra.mxu0 %v10337_v32  ;;  %v9590_v42 = vpop.f32.mrf.mxu1  ;;  %9693 = vmatmul.mubr.msk.bf16.gmra.mxu1 %vm4210_vm0, %v11121_v25 }
 0x29d   : > { %v3140_v11 = vadd.f32 %v3139_v40, %v3138_v10  ;;  %v11617_v1 = vpack.c.bf16 %v5747_v38, %v5746_v19  ;;  %v5745_v37 = vmax.f32 %v5329_v13, 0.0  ;;  %v3142_v36 = vadd.f32 %v3141_v58, %v2399_v56  ;;  %9696 = vmatprep.mubr.msk.bf16.mxu1 %vm4210_vm0, %v11139_v17  ;;  %2597 = vmatprep.mubr.bf16.mxu0 %v10342_v62  ;;  %v10340_v19 = vld [vmem:[%s10697_s13 + $0x4a0] ss:$8 sps:$4 sm:$0xff]   ;;  %v10345_v62 = vld [vmem:[%s10697_s13 + $0x4b4] ss:$8 sps:$4 sm:$0xff]  }
 0x29e   : > { %v5350_v4 = vadd.f32 %v9590_v42, %v10963_v39  ;;  %v2401_v7 = vpop.f32.mrf.mxu0  ;;  %v5341_v46 = vpop.f32.mrf.mxu1 }
 0x29f   : > { %v3328_v22 = vmul.f32 0.00390625, %v3140_v11  ;;  %v11622_v49 = vpack.c.bf16 %v5745_v37, %v5744_v35  ;;  %v5342_v25 = vadd.f32 %v5341_v46, %v10963_v39 }
 0x2a0   : > { %v2402_v32 = vpop.f32.mrf.mxu0  ;;  %v9591_v10 = vpop.f32.mrf.mxu1  ;;  %v5750_v17 = vmax.f32 %v5350_v4, 0.0 }
 0x2a1   : > { %v11628_v13 = vsel %vm8152_vm2, %v3328_v22, %v11401_v8  ;;  %v3143_v58 = vadd.f32 %v3142_v36, %v2402_v32  ;;  %v5353_v55 = vadd.f32 %v9591_v10, %v10963_v39  ;;  %v5748_v38 = vmax.f32 %v5342_v25, 0.0 }
 0x2a2   : > { %v2404_v15 = vpop.f32.mrf.mxu0  ;;  %v5344_v40 = vpop.f32.mrf.mxu1 }
 0x2a3   : > { %v5751_v56 = vmax.f32 %v5353_v55, 0.0  ;;  %v5345_v35 = vadd.f32 %v5344_v40, %v10963_v39 }
 0x2a4   : > { %v2407_v42 = vpop.f32.mrf.mxu0  ;;  %2598 = vmatmul.mubr.bf16.gmra.mxu0 %v10340_v19  ;;  %v9594_v11 = vpop.f32.mrf.mxu1  ;;  %9697 = vmatmul.mubr.msk.bf16.gmra.mxu1 %vm4210_vm0, %v11135_v6  ;;  %v10343_v6 = vld [vmem:[%s10697_s13 + $0x4b0] ss:$8 sps:$4 sm:$0xff]  }
 0x2a5   : > { %v11635_v8 = vpack.c.bf16 %v5751_v56, %v5750_v17  ;;  %v5749_v37 = vmax.f32 %v5345_v35, 0.0  ;;  %v3144_v36 = vadd.f32 %v3143_v58, %v2407_v42  ;;  %v5366_v4 = vadd.f32 %v9594_v11, %v10963_v39  ;;  %9700 = vmatprep.mubr.msk.bf16.mxu1 %vm4210_vm0, %v11155_v61  ;;  %2605 = vmatprep.mubr.bf16.mxu0 %v10345_v62  ;;  %v10348_v58 = vld [vmem:[%s10697_s13 + $0x4c4] ss:$8 sps:$4 sm:$0xff]  }
 0x2a6   : > { %v2409_v7 = vpop.f32.mrf.mxu0  ;;  %v5357_v46 = vpop.f32.mrf.mxu1 }
 0x2a7   : > { %v11640_v22 = vpack.c.bf16 %v5749_v37, %v5748_v38  ;;  %v5358_v25 = vadd.f32 %v5357_v46, %v10963_v39  ;;  %v5754_v19 = vmax.f32 %v5366_v4, 0.0 }
 0x2a8   : > { %v2410_v32 = vpop.f32.mrf.mxu0  ;;  %v9595_v10 = vpop.f32.mrf.mxu1 }
 0x2a9   : > { %v3145_v17 = vadd.f32 %v3144_v36, %v2410_v32  ;;  %v5369_v55 = vadd.f32 %v9595_v10, %v10963_v39  ;;  %v5752_v56 = vmax.f32 %v5358_v25, 0.0 }
 0x2aa   : > { %v2412_v15 = vpop.f32.mrf.mxu0  ;;  %v5360_v40 = vpop.f32.mrf.mxu1 }
 0x2ab   : > { %v5755_v35 = vmax.f32 %v5369_v55, 0.0  ;;  %v5361_v61 = vadd.f32 %v5360_v40, %v10963_v39 }
 0x2ac   : > { %v2415_v62 = vpop.f32.mrf.mxu0  ;;  %2606 = vmatmul.mubr.bf16.gmra.mxu0 %v10343_v6  ;;  %v9598_v38 = vpop.f32.mrf.mxu1  ;;  %9701 = vmatmul.mubr.msk.bf16.gmra.mxu1 %vm4210_vm0, %v11151_v52  ;;  %v10346_v52 = vld [vmem:[%s10697_s13 + $0x4c0] ss:$8 sps:$4 sm:$0xff]  }
 0x2ad   : > { %v11649_v42 = vpack.c.bf16 %v5755_v35, %v5754_v19  ;;  %v5753_v11 = vmax.f32 %v5361_v61, 0.0  ;;  %v3146_v37 = vadd.f32 %v3145_v17, %v2415_v62  ;;  %v5382_v36 = vadd.f32 %v9598_v38, %v10963_v39  ;;  %9704 = vmatprep.mubr.msk.bf16.mxu1 %vm4210_vm0, %v11169_v51  ;;  %2613 = vmatprep.mubr.bf16.mxu0 %v10348_v58  ;;  %v10351_v17 = vld [vmem:[%s10697_s13 + $0x4d4] ss:$8 sps:$4 sm:$0xff]  }
 0x2ae   : > { %v2417_v4 = vpop.f32.mrf.mxu0  ;;  %v5373_v7 = vpop.f32.mrf.mxu1 }
 0x2af   : > { %v11654_v46 = vpack.c.bf16 %v5753_v11, %v5752_v56  ;;  %v5374_v25 = vadd.f32 %v5373_v7, %v10963_v39  ;;  %v5758_v6 = vmax.f32 %v5382_v36, 0.0 }
 0x2b0   : > { %v2418_v32 = vpop.f32.mrf.mxu0  ;;  %v9599_v10 = vpop.f32.mrf.mxu1 }
 0x2b1   : > { %v3147_v19 = vadd.f32 %v3146_v37, %v2418_v32  ;;  %v5385_v55 = vadd.f32 %v9599_v10, %v10963_v39  ;;  %v5756_v35 = vmax.f32 %v5374_v25, 0.0 }
 0x2b2   : > { %v2420_v15 = vpop.f32.mrf.mxu0  ;;  %v5376_v40 = vpop.f32.mrf.mxu1 }
 0x2b3   : > { %v5759_v61 = vmax.f32 %v5385_v55, 0.0  ;;  %v5377_v51 = vadd.f32 %v5376_v40, %v10963_v39 }
 0x2b4   : > { %v2423_v58 = vpop.f32.mrf.mxu0  ;;  %2614 = vmatmul.mubr.bf16.gmra.mxu0 %v10346_v52  ;;  %v9602_v56 = vpop.f32.mrf.mxu1  ;;  %9705 = vmatmul.mubr.msk.bf16.gmra.mxu1 %vm4210_vm0, %v11165_v43  ;;  %v10349_v43 = vld [vmem:[%s10697_s13 + $0x4d0] ss:$8 sps:$4 sm:$0xff]  }
 0x2b5   : > { %v11663_v62 = vpack.c.bf16 %v5759_v61, %v5758_v6  ;;  %v5757_v38 = vmax.f32 %v5377_v51, 0.0  ;;  %v3148_v11 = vadd.f32 %v3147_v19, %v2423_v58  ;;  %v5398_v37 = vadd.f32 %v9602_v56, %v10963_v39  ;;  %9708 = vmatprep.mubr.msk.bf16.mxu1 %vm4210_vm0, %v11183_v47  ;;  %2621 = vmatprep.mubr.bf16.mxu0 %v10351_v17  ;;  %v10354_v19 = vld [vmem:[%s10697_s13 + $0x4e4] ss:$8 sps:$4 sm:$0xff]  }
 0x2b6   : > { %v2425_v36 = vpop.f32.mrf.mxu0  ;;  %v5389_v4 = vpop.f32.mrf.mxu1 }
 0x2b7   : > { %v11668_v7 = vpack.c.bf16 %v5757_v38, %v5756_v35  ;;  %v5390_v25 = vadd.f32 %v5389_v4, %v10963_v39  ;;  %v5762_v52 = vmax.f32 %v5398_v37, 0.0  ;;  %v10397_v37 = vld [vmem:[%s12482_s5 + $0x78] sm:$0xff]  }
 0x2b8   : > { %v2426_v32 = vpop.f32.mrf.mxu0  ;;  %v9603_v10 = vpop.f32.mrf.mxu1  ;;  %9374 = vmatprep.subr.bf16.mxu1 %v10397_v37 }
 0x2b9   : > { %v3149_v6 = vadd.f32 %v3148_v11, %v2426_v32  ;;  %v5401_v55 = vadd.f32 %v9603_v10, %v10963_v39  ;;  %v5760_v61 = vmax.f32 %v5390_v25, 0.0 }
 0x2ba   : > { %v2428_v15 = vpop.f32.mrf.mxu0  ;;  %v5392_v40 = vpop.f32.mrf.mxu1 }
 0x2bb   : > { %v5763_v51 = vmax.f32 %v5401_v55, 0.0  ;;  %v5393_v47 = vadd.f32 %v5392_v40, %v10963_v39 }
 0x2bc   : > { %v2431_v17 = vpop.f32.mrf.mxu0  ;;  %2622 = vmatmul.mubr.bf16.gmra.mxu0 %v10349_v43  ;;  %v9606_v35 = vpop.f32.mrf.mxu1  ;;  %9709 = vmatmul.mubr.msk.bf16.gmra.mxu1 %vm4210_vm0, %v11179_v30  ;;  %v10398_v30 = vld [vmem:[%s12482_s5 + $0x38] sm:$0xff]  }
 0x2bd   : > { %v11677_v58 = vpack.c.bf16 %v5763_v51, %v5762_v52  ;;  %v5761_v56 = vmax.f32 %v5393_v47, 0.0  ;;  %v3150_v38 = vadd.f32 %v3149_v6, %v2431_v17  ;;  %v5414_v11 = vadd.f32 %v9606_v35, %v10963_v39  ;;  %9712 = vmatprep.mubr.msk.bf16.mxu1 %vm4210_vm0, %v11197_v45  ;;  %2629 = vmatprep.mubr.bf16.mxu0 %v10354_v19  ;;  %v10352_v45 = vld [vmem:[%s10697_s13 + $0x4e0] ss:$8 sps:$4 sm:$0xff]   ;;  %v10357_v19 = vld [vmem:[%s10697_s13 + $0x4f4] ss:$8 sps:$4 sm:$0xff]  }
 0x2be   : > { %v2433_v36 = vpop.f32.mrf.mxu0  ;;  %v5405_v4 = vpop.f32.mrf.mxu1  ;;  %9375 = vmatpush3.bf16.msra.mxu1 %v10398_v30 }
 0x2bf   : > { %v11688_v25 = vpack.c.bf16 %v5761_v56, %v5760_v61  ;;  %v5406_v32 = vadd.f32 %v5405_v4, %v10963_v39  ;;  %v5766_v52 = vmax.f32 %v5414_v11, 0.0 }
 0x2c0   : > { %v2434_v10 = vpop.f32.mrf.mxu0  ;;  %v9607_v43 = vpop.f32.mrf.mxu1 }
 0x2c1   : > { %v3151_v6 = vadd.f32 %v3150_v38, %v2434_v10  ;;  %v5417_v55 = vadd.f32 %v9607_v43, %v10963_v39  ;;  %v5764_v51 = vmax.f32 %v5406_v32, 0.0 }
 0x2c2   : > { %v2436_v15 = vpop.f32.mrf.mxu0  ;;  %v5408_v40 = vpop.f32.mrf.mxu1 }
 0x2c3   : > { %v5767_v47 = vmax.f32 %v5417_v55, 0.0  ;;  %v5409_v17 = vadd.f32 %v5408_v40, %v10963_v39 }
 0x2c4   : > { %v2439_v61 = vpop.f32.mrf.mxu0  ;;  %2630 = vmatmul.mubr.bf16.gmra.mxu0 %v10352_v45  ;;  %v9610_v35 = vpop.f32.mrf.mxu1  ;;  %9713 = vmatmul.mubr.msk.bf16.gmra.mxu1 %vm4210_vm0, %v11193_v23  ;;  %v10355_v23 = vld [vmem:[%s10697_s13 + $0x4f0] ss:$8 sps:$4 sm:$0xff]  }
 0x2c5   : > { %v11697_v56 = vpack.c.bf16 %v5767_v47, %v5766_v52  ;;  %v5765_v38 = vmax.f32 %v5409_v17, 0.0  ;;  %v3152_v11 = vadd.f32 %v3151_v6, %v2439_v61  ;;  %v5430_v37 = vadd.f32 %v9610_v35, %v10963_v39  ;;  %9716 = vmatprep.mubr.msk.bf16.mxu1 %vm4210_vm0, %v11211_v50  ;;  %2637 = vmatprep.mubr.bf16.mxu0 %v10357_v19  ;;  %v10360_v6 = vld [vmem:[%s10697_s13 + $0x504] ss:$8 sps:$4 sm:$0xff]  }
 0x2c6   : > { %v2441_v30 = vpop.f32.mrf.mxu0  ;;  %v5421_v36 = vpop.f32.mrf.mxu1 }
 0x2c7   : > { %12526 = vst [vmem:[#allocation41_spill] sm:$0xff] %v11697_v56  ;;  %v11702_v4 = vpack.c.bf16 %v5765_v38, %v5764_v51  ;;  %v5422_v32 = vadd.f32 %v5421_v36, %v10963_v39  ;;  %v5770_v45 = vmax.f32 %v5430_v37, 0.0 }
 0x2c8   : > { %v2442_v10 = vpop.f32.mrf.mxu0  ;;  %v9611_v43 = vpop.f32.mrf.mxu1 }
 0x2c9   : > { %12527 = vst [vmem:[#allocation42_spill] sm:$0xff] %v11702_v4  ;;  %v3153_v52 = vadd.f32 %v3152_v11, %v2442_v10  ;;  %v5433_v55 = vadd.f32 %v9611_v43, %v10963_v39  ;;  %v5768_v47 = vmax.f32 %v5422_v32, 0.0  ;;  %v12563_v4 = vld [vmem:[#allocation27_spill] sm:$0xff] }
 0x2ca   : > { %v2444_v15 = vpop.f32.mrf.mxu0  ;;  %v5424_v40 = vpop.f32.mrf.mxu1 }
 0x2cb   : > { %v5771_v17 = vmax.f32 %v5433_v55, 0.0  ;;  %v5425_v50 = vadd.f32 %v5424_v40, %v10963_v39 }
 0x2cc   : > { %v2447_v19 = vpop.f32.mrf.mxu0  ;;  %2638 = vmatmul.mubr.bf16.gmra.mxu0 %v10355_v23  ;;  %v9614_v51 = vpop.f32.mrf.mxu1  ;;  %9717 = vmatmul.mubr.msk.bf16.gmra.mxu1 %vm4210_vm0, %v11207_v26  ;;  %v10358_v26 = vld [vmem:[%s10697_s13 + $0x500] ss:$8 sps:$4 sm:$0xff]  }
 0x2cd   : > { %v11711_v61 = vpack.c.bf16 %v5771_v17, %v5770_v45  ;;  %v5769_v35 = vmax.f32 %v5425_v50, 0.0  ;;  %v3154_v38 = vadd.f32 %v3153_v52, %v2447_v19  ;;  %v5446_v11 = vadd.f32 %v9614_v51, %v10963_v39  ;;  %9720 = vmatprep.mubr.msk.bf16.mxu1 %vm4210_vm0, %v11225_v0  ;;  %2645 = vmatprep.mubr.bf16.mxu0 %v10360_v6  ;;  %v10363_v52 = vld [vmem:[%s10697_s13 + $0x514] ss:$8 sps:$4 sm:$0xff]  }
 0x2ce   : > { %v2449_v37 = vpop.f32.mrf.mxu0  ;;  %v5437_v30 = vpop.f32.mrf.mxu1 }
 0x2cf   : > { %12528 = vst [vmem:[#allocation43_spill] sm:$0xff] %v11711_v61  ;;  %v11716_v36 = vpack.c.bf16 %v5769_v35, %v5768_v47  ;;  %v5438_v32 = vadd.f32 %v5437_v30, %v10963_v39  ;;  %v5774_v23 = vmax.f32 %v5446_v11, 0.0 }
 0x2d0   : > { %v2450_v10 = vpop.f32.mrf.mxu0  ;;  %v9615_v43 = vpop.f32.mrf.mxu1 }
 0x2d1   : > { %12529 = vst [vmem:[#allocation44_spill] sm:$0xff] %v11716_v36  ;;  %v3155_v45 = vadd.f32 %v3154_v38, %v2450_v10  ;;  %v5449_v55 = vadd.f32 %v9615_v43, %v10963_v39  ;;  %v5772_v17 = vmax.f32 %v5438_v32, 0.0 }
 0x2d2   : > { %v2452_v15 = vpop.f32.mrf.mxu0  ;;  %v5440_v40 = vpop.f32.mrf.mxu1 }
 0x2d3   : > { %v5775_v50 = vmax.f32 %v5449_v55, 0.0  ;;  %v5441_v0 = vadd.f32 %v5440_v40, %v10963_v39 }
 0x2d4   : > { %v2455_v6 = vpop.f32.mrf.mxu0  ;;  %2646 = vmatmul.mubr.bf16.gmra.mxu0 %v10358_v26  ;;  %v9618_v47 = vpop.f32.mrf.mxu1  ;;  %9721 = vmatmul.mubr.msk.bf16.gmra.mxu1 %vm4210_vm0, %v11221_v48  ;;  %v10361_v48 = vld [vmem:[%s10697_s13 + $0x510] ss:$8 sps:$4 sm:$0xff]  }
 0x2d5   : > { %v11725_v19 = vpack.c.bf16 %v5775_v50, %v5774_v23  ;;  %v5773_v51 = vmax.f32 %v5441_v0, 0.0  ;;  %v3156_v35 = vadd.f32 %v3155_v45, %v2455_v6  ;;  %v5462_v38 = vadd.f32 %v9618_v47, %v10963_v39  ;;  %9724 = vmatprep.mubr.msk.bf16.mxu1 %vm4210_vm0, %v11239_v2  ;;  %2653 = vmatprep.mubr.bf16.mxu0 %v10363_v52  ;;  %v10366_v45 = vld [vmem:[%s10697_s13 + $0x524] ss:$8 sps:$4 sm:$0xff]  }
 0x2d6   : > { %v2457_v11 = vpop.f32.mrf.mxu0  ;;  %v5453_v37 = vpop.f32.mrf.mxu1  ;;  %v12532_v6 = vld [vmem:[#allocation12_spill] sm:$0xff] }
 0x2d7   : > { %12530 = vst [vmem:[#allocation45_spill] sm:$0xff] %v11725_v19  ;;  %v11730_v30 = vpack.c.bf16 %v5773_v51, %v5772_v17  ;;  %v5454_v32 = vadd.f32 %v5453_v37, %v10963_v39  ;;  %v5778_v26 = vmax.f32 %v5462_v38, 0.0  ;;  %v12534_v11 = vld [vmem:[#allocation14_spill] sm:$0xff] }
 0x2d8   : > { %v2458_v10 = vpop.f32.mrf.mxu0  ;;  %v9619_v43 = vpop.f32.mrf.mxu1 }
 0x2d9   : > { %12531 = vst [vmem:[#allocation46_spill] sm:$0xff] %v11730_v30  ;;  %v3157_v23 = vadd.f32 %v3156_v35, %v2458_v10  ;;  %v5465_v55 = vadd.f32 %v9619_v43, %v10963_v39  ;;  %v5776_v50 = vmax.f32 %v5454_v32, 0.0 }
 0x2da   : > { %v2460_v15 = vpop.f32.mrf.mxu0  ;;  %v5456_v40 = vpop.f32.mrf.mxu1 }
 0x2db   : > { %v5779_v0 = vmax.f32 %v5465_v55, 0.0  ;;  %v5457_v2 = vadd.f32 %v5456_v40, %v10963_v39  ;;  %v10364_v15 = vld [vmem:[%s10697_s13 + $0x520] ss:$8 sps:$4 sm:$0xff]  }
 0x2dc   : > { %v2463_v52 = vpop.f32.mrf.mxu0  ;;  %2654 = vmatmul.mubr.bf16.gmra.mxu0 %v10361_v48  ;;  %v9622_v17 = vpop.f32.mrf.mxu1  ;;  %9725 = vmatmul.mubr.msk.bf16.gmra.mxu1 %vm4210_vm0, %v12532_v6 }
 0x2dd   : > { %v11739_v47 = vpack.c.bf16 %v5779_v0, %v5778_v26  ;;  %v5777_v51 = vmax.f32 %v5457_v2, 0.0  ;;  %v3158_v35 = vadd.f32 %v3157_v23, %v2463_v52  ;;  %v5478_v38 = vadd.f32 %v9622_v17, %v10963_v39  ;;  %9728 = vmatprep.mubr.msk.bf16.mxu1 %vm4210_vm0, %v12534_v11  ;;  %2661 = vmatprep.mubr.bf16.mxu0 %v10366_v45  ;;  %v10369_v23 = vld [vmem:[%s10697_s13 + $0x534] ss:$8 sps:$4 sm:$0xff]  }
 0x2de   : > { %v2465_v37 = vpop.f32.mrf.mxu0  ;;  %v5469_v32 = vpop.f32.mrf.mxu1 }
 0x2df   : > { %12533 = vst [vmem:[#allocation12_spill] sm:$0xff] %v11739_v47  ;;  %v11744_v10 = vpack.c.bf16 %v5777_v51, %v5776_v50  ;;  %v5470_v43 = vadd.f32 %v5469_v32, %v10963_v39  ;;  %v5782_v26 = vmax.f32 %v5478_v38, 0.0  ;;  %v12536_v51 = vld [vmem:[#allocation13_spill] sm:$0xff] }
 0x2e0   : > { %v2466_v48 = vpop.f32.mrf.mxu0  ;;  %v9623_v55 = vpop.f32.mrf.mxu1 }
 0x2e1   : > { %12535 = vst [vmem:[#allocation14_spill] sm:$0xff] %v11744_v10  ;;  %v3159_v40 = vadd.f32 %v3158_v35, %v2466_v48  ;;  %v5481_v0 = vadd.f32 %v9623_v55, %v10963_v39  ;;  %v5780_v17 = vmax.f32 %v5470_v43, 0.0  ;;  %v12538_v48 = vld [vmem:[#allocation16_spill] sm:$0xff] }
 0x2e2   : > { %v2468_v2 = vpop.f32.mrf.mxu0  ;;  %v5472_v52 = vpop.f32.mrf.mxu1 }
 0x2e3   : > { %v5783_v6 = vmax.f32 %v5481_v0, 0.0  ;;  %v5473_v45 = vadd.f32 %v5472_v52, %v10963_v39 }
 0x2e4   : > { %v2471_v11 = vpop.f32.mrf.mxu0  ;;  %2662 = vmatmul.mubr.bf16.gmra.mxu0 %v10364_v15  ;;  %v9626_v50 = vpop.f32.mrf.mxu1  ;;  %9729 = vmatmul.mubr.msk.bf16.gmra.mxu1 %vm4210_vm0, %v12536_v51  ;;  %v10367_v51 = vld [vmem:[%s10697_s13 + $0x530] ss:$8 sps:$4 sm:$0xff]  }
 0x2e5   : > { %v11753_v37 = vpack.c.bf16 %v5783_v6, %v5782_v26  ;;  %v5781_v35 = vmax.f32 %v5473_v45, 0.0  ;;  %v3160_v38 = vadd.f32 %v3159_v40, %v2471_v11  ;;  %v5494_v32 = vadd.f32 %v9626_v50, %v10963_v39  ;;  %9732 = vmatprep.mubr.msk.bf16.mxu1 %vm4210_vm0, %v12538_v48  ;;  %2669 = vmatprep.mubr.bf16.mxu0 %v10369_v23  ;;  %v10372_v40 = vld [vmem:[%s10697_s13 + $0x544] ss:$8 sps:$4 sm:$0xff]  }
 0x2e6   : > { %v2473_v43 = vpop.f32.mrf.mxu0  ;;  %v5485_v55 = vpop.f32.mrf.mxu1 }
 0x2e7   : > { %12537 = vst [vmem:[#allocation13_spill] sm:$0xff] %v11753_v37  ;;  %v11758_v0 = vpack.c.bf16 %v5781_v35, %v5780_v17  ;;  %v5486_v15 = vadd.f32 %v5485_v55, %v10963_v39  ;;  %v5786_v26 = vmax.f32 %v5494_v32, 0.0  ;;  %v12540_v35 = vld [vmem:[#allocation15_spill] sm:$0xff] }
 0x2e8   : > { %v2474_v2 = vpop.f32.mrf.mxu0  ;;  %v9627_v52 = vpop.f32.mrf.mxu1 }
 0x2e9   : > { %12539 = vst [vmem:[#allocation16_spill] sm:$0xff] %v11758_v0  ;;  %v3161_v6 = vadd.f32 %v3160_v38, %v2474_v2  ;;  %v5497_v45 = vadd.f32 %v9627_v52, %v10963_v39  ;;  %v5784_v37 = vmax.f32 %v5486_v15, 0.0  ;;  %v12542_v2 = vld [vmem:[#allocation18_spill] sm:$0xff] }
 0x2ea   : > { %v2476_v11 = vpop.f32.mrf.mxu0  ;;  %v5488_v50 = vpop.f32.mrf.mxu1 }
 0x2eb   : > { %v5787_v47 = vmax.f32 %v5497_v45, 0.0  ;;  %v5489_v23 = vadd.f32 %v5488_v50, %v10963_v39 }
 0x2ec   : > { %v2479_v48 = vpop.f32.mrf.mxu0  ;;  %2670 = vmatmul.mubr.bf16.gmra.mxu0 %v10367_v51  ;;  %v9630_v17 = vpop.f32.mrf.mxu1  ;;  %9733 = vmatmul.mubr.msk.bf16.gmra.mxu1 %vm4210_vm0, %v12540_v35  ;;  %v10370_v35 = vld [vmem:[%s10697_s13 + $0x540] ss:$8 sps:$4 sm:$0xff]  }
 0x2ed   : > { %v11767_v43 = vpack.c.bf16 %v5787_v47, %v5786_v26  ;;  %v5785_v38 = vmax.f32 %v5489_v23, 0.0  ;;  %v3162_v32 = vadd.f32 %v3161_v6, %v2479_v48  ;;  %v5510_v55 = vadd.f32 %v9630_v17, %v10963_v39  ;;  %9736 = vmatprep.mubr.msk.bf16.mxu1 %vm4210_vm0, %v12542_v2  ;;  %2677 = vmatprep.mubr.bf16.mxu0 %v10372_v40  ;;  %v10375_v6 = vld [vmem:[%s10697_s13 + $0x554] ss:$8 sps:$4 sm:$0xff]  }
 0x2ee   : > { %v2481_v15 = vpop.f32.mrf.mxu0  ;;  %v5501_v52 = vpop.f32.mrf.mxu1 }
 0x2ef   : > { %12541 = vst [vmem:[#allocation15_spill] sm:$0xff] %v11767_v43  ;;  %v11772_v45 = vpack.c.bf16 %v5785_v38, %v5784_v37  ;;  %v5502_v51 = vadd.f32 %v5501_v52, %v10963_v39  ;;  %v5790_v47 = vmax.f32 %v5510_v55, 0.0  ;;  %v12544_v38 = vld [vmem:[#allocation17_spill] sm:$0xff] }
 0x2f0   : > { %v2482_v11 = vpop.f32.mrf.mxu0  ;;  %v9631_v50 = vpop.f32.mrf.mxu1 }
 0x2f1   : > { %12543 = vst [vmem:[#allocation18_spill] sm:$0xff] %v11772_v45  ;;  %v3163_v26 = vadd.f32 %v3162_v32, %v2482_v11  ;;  %v5513_v23 = vadd.f32 %v9631_v50, %v10963_v39  ;;  %v5788_v43 = vmax.f32 %v5502_v51, 0.0  ;;  %v12546_v11 = vld [vmem:[#allocation20_spill] sm:$0xff] }
 0x2f2   : > { %v2484_v48 = vpop.f32.mrf.mxu0  ;;  %v5504_v17 = vpop.f32.mrf.mxu1 }
 0x2f3   : > { %v5791_v0 = vmax.f32 %v5513_v23, 0.0  ;;  %v5505_v40 = vadd.f32 %v5504_v17, %v10963_v39 }
 0x2f4   : > { %v2487_v2 = vpop.f32.mrf.mxu0  ;;  %2678 = vmatmul.mubr.bf16.gmra.mxu0 %v10370_v35  ;;  %v9634_v37 = vpop.f32.mrf.mxu1  ;;  %9737 = vmatmul.mubr.msk.bf16.gmra.mxu1 %vm4210_vm0, %v12544_v38  ;;  %v10373_v38 = vld [vmem:[%s10697_s13 + $0x550] ss:$8 sps:$4 sm:$0xff]  }
 0x2f5   : > { %v11781_v15 = vpack.c.bf16 %v5791_v0, %v5790_v47  ;;  %v5789_v32 = vmax.f32 %v5505_v40, 0.0  ;;  %v3164_v55 = vadd.f32 %v3163_v26, %v2487_v2  ;;  %v5526_v52 = vadd.f32 %v9634_v37, %v10963_v39  ;;  %9740 = vmatprep.mubr.msk.bf16.mxu1 %vm4210_vm0, %v12546_v11  ;;  %2685 = vmatprep.mubr.bf16.mxu0 %v10375_v6  ;;  %v10378_v26 = vld [vmem:[%s10697_s13 + $0x564] ss:$8 sps:$4 sm:$0xff]   ;;  %v10423_v2 = vld [vmem:[%s12482_s5 + $0x70] sm:$0xff]  }
 0x2f6   : > { %v2489_v51 = vpop.f32.mrf.mxu0  ;;  %v5517_v50 = vpop.f32.mrf.mxu1  ;;  %9376 = vmatprep.subr.bf16.mxu1 %v10423_v2 }
 0x2f7   : > { %12545 = vst [vmem:[#allocation17_spill] sm:$0xff] %v11781_v15  ;;  %v11786_v23 = vpack.c.bf16 %v5789_v32, %v5788_v43  ;;  %v5518_v35 = vadd.f32 %v5517_v50, %v10963_v39  ;;  %v5794_v0 = vmax.f32 %v5526_v52, 0.0  ;;  %v10424_v43 = vld [vmem:[%s12482_s5 + $0x30] sm:$0xff]   ;;  %v12548_v50 = vld [vmem:[#allocation19_spill] sm:$0xff] }
 0x2f8   : > { %v2490_v48 = vpop.f32.mrf.mxu0  ;;  %v9635_v17 = vpop.f32.mrf.mxu1  ;;  %9377 = vmatpush3.bf16.msra.mxu1 %v10424_v43 }
 0x2f9   : > { %12547 = vst [vmem:[#allocation20_spill] sm:$0xff] %v11786_v23  ;;  %v3165_v47 = vadd.f32 %v3164_v55, %v2490_v48  ;;  %v5529_v40 = vadd.f32 %v9635_v17, %v10963_v39  ;;  %v5792_v32 = vmax.f32 %v5518_v35, 0.0  ;;  %v12550_v23 = vld [vmem:[#allocation22_spill] sm:$0xff] }
 0x2fa   : > { %v2492_v37 = vpop.f32.mrf.mxu0  ;;  %v5520_v6 = vpop.f32.mrf.mxu1 }
 0x2fb   : > { %v5795_v11 = vmax.f32 %v5529_v40, 0.0  ;;  %v5521_v51 = vadd.f32 %v5520_v6, %v10963_v39 }
 0x2fc   : > { %v2495_v52 = vpop.f32.mrf.mxu0  ;;  %2686 = vmatmul.mubr.bf16.gmra.mxu0 %v10373_v38  ;;  %v9638_v55 = vpop.f32.mrf.mxu1  ;;  %9741 = vmatmul.mubr.msk.bf16.gmra.mxu1 %vm4210_vm0, %v12548_v50 }
 0x2fd   : > { %v11801_v48 = vpack.c.bf16 %v5795_v11, %v5794_v0  ;;  %v5793_v17 = vmax.f32 %v5521_v51, 0.0  ;;  %v3166_v37 = vadd.f32 %v3165_v47, %v2495_v52  ;;  %v5542_v15 = vadd.f32 %v9638_v55, %v10963_v39  ;;  %9744 = vmatprep.mubr.msk.bf16.mxu1 %vm4210_vm0, %v12550_v23  ;;  %2693 = vmatprep.mubr.bf16.mxu0 %v10378_v26  ;;  %v10376_v0 = vld [vmem:[%s10697_s13 + $0x560] ss:$8 sps:$4 sm:$0xff]   ;;  %v10381_v52 = vld [vmem:[%s10697_s13 + $0x574] ss:$8 sps:$4 sm:$0xff]  }
 0x2fe   : > { %v2497_v35 = vpop.f32.mrf.mxu0  ;;  %v5533_v40 = vpop.f32.mrf.mxu1 }
 0x2ff   : > { %12549 = vst [vmem:[#allocation19_spill] sm:$0xff] %v11801_v48  ;;  %v11806_v38 = vpack.c.bf16 %v5793_v17, %v5792_v32  ;;  %v5534_v2 = vadd.f32 %v5533_v40, %v10963_v39  ;;  %v5798_v11 = vmax.f32 %v5542_v15, 0.0  ;;  %v12552_v32 = vld [vmem:[#allocation21_spill] sm:$0xff] }
 0x300   : > { %v2498_v6 = vpop.f32.mrf.mxu0  ;;  %v9639_v50 = vpop.f32.mrf.mxu1 }
 0x301   : > { %12551 = vst [vmem:[#allocation22_spill] sm:$0xff] %v11806_v38  ;;  %v3167_v51 = vadd.f32 %v3166_v37, %v2498_v6  ;;  %v5545_v47 = vadd.f32 %v9639_v50, %v10963_v39  ;;  %v5796_v45 = vmax.f32 %v5534_v2, 0.0  ;;  %v12554_v6 = vld [vmem:[#allocation24_spill] sm:$0xff] }
 0x302   : > { %v2500_v55 = vpop.f32.mrf.mxu0  ;;  %v5536_v48 = vpop.f32.mrf.mxu1 }
 0x303   : > { %v5799_v23 = vmax.f32 %v5545_v47, 0.0  ;;  %v5537_v26 = vadd.f32 %v5536_v48, %v10963_v39 }
 0x304   : > { %v2503_v35 = vpop.f32.mrf.mxu0  ;;  %2694 = vmatmul.mubr.bf16.gmra.mxu0 %v10376_v0  ;;  %v9642_v43 = vpop.f32.mrf.mxu1  ;;  %9745 = vmatmul.mubr.msk.bf16.gmra.mxu1 %vm4210_vm0, %v12552_v32  ;;  %v10379_v32 = vld [vmem:[%s10697_s13 + $0x570] ss:$8 sps:$4 sm:$0xff]  }
 0x305   : > { %v11815_v17 = vpack.c.bf16 %v5799_v23, %v5798_v11  ;;  %v5797_v15 = vmax.f32 %v5537_v26, 0.0  ;;  %v3168_v37 = vadd.f32 %v3167_v51, %v2503_v35  ;;  %v5558_v40 = vadd.f32 %v9642_v43, %v10963_v39  ;;  %9748 = vmatprep.mubr.msk.bf16.mxu1 %vm4210_vm0, %v12554_v6  ;;  %2701 = vmatprep.mubr.bf16.mxu0 %v10381_v52  ;;  %v10384_v51 = vld [vmem:[%s10697_s13 + $0x584] ss:$8 sps:$4 sm:$0xff]   ;;  %v12556_v6 = vld [vmem:[#allocation9_spill] sm:$0xff] }
 0x306   : > { %v2505_v2 = vpop.f32.mrf.mxu0  ;;  %v5549_v48 = vpop.f32.mrf.mxu1 }
 0x307   : > { %12553 = vst [vmem:[#allocation21_spill] sm:$0xff] %v11815_v17  ;;  %v11820_v50 = vpack.c.bf16 %v5797_v15, %v5796_v45  ;;  %v5550_v0 = vadd.f32 %v5549_v48, %v10963_v39  ;;  %v5802_v11 = vmax.f32 %v5558_v40, 0.0  ;;  %v5934_v2 = vsub.s32 1, %v12556_v6  ;;  %v12557_v48 = vld [vmem:[#allocation23_spill] sm:$0xff] }
 0x308   : > { %v2506_v47 = vpop.f32.mrf.mxu0  ;;  %v9643_v55 = vpop.f32.mrf.mxu1 }
 0x309   : > { %12555 = vst [vmem:[#allocation24_spill] sm:$0xff] %v11820_v50  ;;  %v3169_v23 = vadd.f32 %v3168_v37, %v2506_v47  ;;  %v5561_v26 = vadd.f32 %v9643_v55, %v10963_v39  ;;  %v5800_v17 = vmax.f32 %v5550_v0, 0.0  ;;  %v12559_v55 = vld [vmem:[#allocation26_spill] sm:$0xff] }
 0x30a   : > { %v2508_v35 = vpop.f32.mrf.mxu0  ;;  %v5552_v43 = vpop.f32.mrf.mxu1 }
 0x30b   : > { %v5803_v38 = vmax.f32 %v5561_v26, 0.0  ;;  %v5553_v52 = vadd.f32 %v5552_v43, %v10963_v39 }
 0x30c   : > { %v2511_v45 = vpop.f32.mrf.mxu0  ;;  %2702 = vmatmul.mubr.bf16.gmra.mxu0 %v10379_v32  ;;  %v9654_v15 = vpop.f32.mrf.mxu1  ;;  %9749 = vmatmul.mubr.msk.bf16.gmra.mxu1 %vm4210_vm0, %v12557_v48  ;;  %v10513_v32 = vld [vmem:[%s12483_s6] sm:$0x7] }
 0x30d   : > { %v11830_v37 = vpack.c.bf16 %v5803_v38, %v5802_v11  ;;  %v5801_v40 = vmax.f32 %v5553_v52, 0.0  ;;  %v3170_v47 = vadd.f32 %v3169_v23, %v2511_v45  ;;  %9752 = vmatprep.mubr.msk.bf16.mxu1 %vm4210_vm0, %v12559_v55  ;;  %2709 = vmatprep.mubr.bf16.mxu0 %v10384_v51  ;;  %v11839_v35 = vrot.slane %v10513_v32, %v5934_v2  ;;  %v10382_v38 = vld [vmem:[%s10697_s13 + $0x580] ss:$8 sps:$4 sm:$0xff]   ;;  %v10387_v52 = vld [vmem:[%s10697_s13 + $0x594] ss:$8 sps:$4 sm:$0xff]  }
 0x30e   : > { %v2513_v0 = vpop.f32.mrf.mxu0  ;;  %v6354_v39 = vpop.f32.mrf.mxu1 }
 0x30f   : > { %12558 = vst [vmem:[#allocation9_spill] sm:$0xff] %v11830_v37  ;;  %v11834_v26 = vpack.c.bf16 %v5801_v40, %v5800_v17  ;;  %v6355_v11 = vadd.f32 %v6354_v39, %v11839_v35  ;;  %v6363_v51 = vadd.f32 %v9654_v15, %v11839_v35 }
 0x310   : > { %v2514_v43 = vpop.f32.mrf.mxu0  ;;  %v9655_v48 = vpop.f32.mrf.mxu1 }
 0x311   : > { %12560 = vst [vmem:[#allocation23_spill] sm:$0xff] %v11834_v26  ;;  %v3171_v23 = vadd.f32 %v3170_v47, %v2514_v43  ;;  %v12561_v26 = vld [vmem:[#allocation25_spill] sm:$0xff]  ;;  %v7313_v2 = vmax.f32 %v6355_v11, 0.0  ;;  %v6366_v39 = vadd.f32 %v9655_v48, %v11839_v35  ;;  %v12562_v43 = vld [vmem:[#allocation28_spill] sm:$0xff] }
 0x312   : > { %v2516_v45 = vpop.f32.mrf.mxu0  ;;  %v6357_v55 = vpop.f32.mrf.mxu1 }
 0x313   : > { %v3172_v0 = vrot.slane %v3171_v23, 4  ;;  %v6358_v17 = vadd.f32 %v6357_v55, %v11839_v35  ;;  %v7315_v55 = vmax.f32 %v6363_v51, 0.0 }
 0x314   : > { %v2519_v40 = vpop.f32.mrf.mxu0  ;;  %2710 = vmatmul.mubr.bf16.gmra.mxu0 %v10382_v38  ;;  %v9658_v37 = vpop.f32.mrf.mxu1  ;;  %9753 = vmatmul.mubr.msk.bf16.gmra.mxu1 %vm4210_vm0, %v12561_v26  ;;  %v10385_v26 = vld [vmem:[%s10697_s13 + $0x590] ss:$8 sps:$4 sm:$0xff]  }
 0x315   : > { %v3173_v32 = vadd.f32 %v3172_v0, %v3171_v23  ;;  %v7314_v47 = vmax.f32 %v6358_v17, 0.0  ;;  %9756 = vmatprep.mubr.msk.bf16.mxu1 %vm4210_vm0, %v12562_v43  ;;  %2717 = vmatprep.mubr.bf16.mxu0 %v10387_v52  ;;  %v7316_v23 = vmax.f32 %v6366_v39, 0.0  ;;  %v10390_v17 = vld [vmem:[%s10697_s13 + $0x5a4] ss:$8 sps:$4 sm:$0xff]   ;;  %v6379_v61 = vadd.f32 %v9658_v37, %v11839_v35 }
 0x316   : > { %v2521_v15 = vpop.f32.mrf.mxu0  ;;  %v6370_v45 = vpop.f32.mrf.mxu1 }
 0x317   : > { %v3174_v50 = vrot.slane %v3173_v32, 2  ;;  %v7854_v38 = vadd.f32 %v7314_v47, %v7313_v2  ;;  %v6371_v10 = vadd.f32 %v6370_v45, %v11839_v35  ;;  %v7319_v39 = vmax.f32 %v6379_v61, 0.0 }
 0x318   : > { %v2522_v19 = vpop.f32.mrf.mxu0  ;;  %v9659_v30 = vpop.f32.mrf.mxu1 }
 0x319   : > { %v3175_v11 = vadd.f32 %v3174_v50, %v3173_v32  ;;  %v7855_v0 = vadd.f32 %v7854_v38, %v7315_v55  ;;  %v3178_v48 = vadd.f32 %v2522_v19, %v2519_v40  ;;  %v7317_v15 = vmax.f32 %v6371_v10, 0.0 }
 0x31a   : > { %v2524_v36 = vpop.f32.mrf.mxu0  ;;  %v6373_v43 = vpop.f32.mrf.mxu1  ;;  %v6382_v2 = vadd.f32 %v9659_v30, %v11839_v35 }
 0x31b   : > { %v3176_v52 = vrot.slane %v3175_v11, 1  ;;  %v7856_v56 = vadd.f32 %v7855_v0, %v7316_v23  ;;  %v6374_v51 = vadd.f32 %v6373_v43, %v11839_v35  ;;  %v12564_v36 = vld [vmem:[#allocation30_spill] sm:$0xff]  ;;  %v10388_v23 = vld [vmem:[%s10697_s13 + $0x5a0] ss:$8 sps:$4 sm:$0xff]  }
 0x31c   : > { %v2527_v47 = vpop.f32.mrf.mxu0  ;;  %2718 = vmatmul.mubr.bf16.gmra.mxu0 %v10385_v26  ;;  %v9662_v45 = vpop.f32.mrf.mxu1  ;;  %9757 = vmatmul.mubr.msk.bf16.gmra.mxu1 %vm4210_vm0, %v12563_v4  ;;  %v10393_v43 = vld [vmem:[%s10697_s13 + $0x5b4] ss:$8 sps:$4 sm:$0xff]  }
 0x31d   : > { %v3177_v19 = vadd.f32 %v3176_v52, %v3175_v11  ;;  %v7857_v50 = vadd.f32 %v7856_v56, %v7317_v15  ;;  %v7318_v40 = vmax.f32 %v6374_v51, 0.0  ;;  %v3179_v37 = vadd.f32 %v3178_v48, %v2527_v47  ;;  %9760 = vmatprep.mubr.msk.bf16.mxu1 %vm4210_vm0, %v12564_v36  ;;  %2725 = vmatprep.mubr.bf16.mxu0 %v10390_v17 }
 0x31e   : > { %v2529_v10 = vpop.f32.mrf.mxu0  ;;  %v6386_v32 = vpop.f32.mrf.mxu1  ;;  %v7320_v11 = vmax.f32 %v6382_v2, 0.0  ;;  %v6395_v15 = vadd.f32 %v9662_v45, %v11839_v35 }
 0x31f   : > { %v3329_v30 = vmul.f32 0.00390625, %v3177_v19  ;;  %v7858_v55 = vadd.f32 %v7857_v50, %v7318_v40  ;;  %v6387_v38 = vadd.f32 %v6386_v32, %v11839_v35  ;;  %v12565_v40 = vld [vmem:[#allocation29_spill] sm:$0xff]  ;;  %v12566_v10 = vld [vmem:[#allocation32_spill] sm:$0xff] }
 0x320   : > { %v2530_v26 = vpop.f32.mrf.mxu0  ;;  %v9663_v4 = vpop.f32.mrf.mxu1 }
 0x321   : > { %v11865_v56 = vsel %vm8154_vm3, %v3329_v30, %v11628_v13  ;;  %v7859_v0 = vadd.f32 %v7858_v55, %v7319_v39  ;;  %v3180_v48 = vadd.f32 %v3179_v37, %v2530_v26  ;;  %v7321_v51 = vmax.f32 %v6387_v38, 0.0 }
 0x322   : > { %v2532_v17 = vpop.f32.mrf.mxu0  ;;  %v6389_v52 = vpop.f32.mrf.mxu1  ;;  %v6398_v2 = vadd.f32 %v9663_v4, %v11839_v35  ;;  %v7323_v30 = vmax.f32 %v6395_v15, 0.0  ;;  %v10396_v4 = vld [vmem:[%s10697_s13 + $0x5c4] ss:$8 sps:$4 sm:$0xff]  }
 0x323   : > { %v7860_v61 = vadd.f32 %v7859_v0, %v7320_v11  ;;  %v6390_v47 = vadd.f32 %v6389_v52, %v11839_v35 }
 0x324   : > { %v2535_v19 = vpop.f32.mrf.mxu0  ;;  %2726 = vmatmul.mubr.bf16.gmra.mxu0 %v10388_v23  ;;  %v9666_v50 = vpop.f32.mrf.mxu1  ;;  %9761 = vmatmul.mubr.msk.bf16.gmra.mxu1 %vm4210_vm0, %v12565_v40  ;;  %v10391_v23 = vld [vmem:[%s10697_s13 + $0x5b0] ss:$8 sps:$4 sm:$0xff]   ;;  %v7324_v11 = vmax.f32 %v6398_v2, 0.0  ;;  %v12567_v40 = vld [vmem:[#allocation31_spill] sm:$0xff] }
 0x325   : > { %v7861_v13 = vadd.f32 %v7860_v61, %v7321_v51  ;;  %v7322_v37 = vmax.f32 %v6390_v47, 0.0  ;;  %v3181_v36 = vadd.f32 %v3180_v48, %v2535_v19  ;;  %9764 = vmatprep.mubr.msk.bf16.mxu1 %vm4210_vm0, %v12566_v10  ;;  %2733 = vmatprep.mubr.bf16.mxu0 %v10393_v43  ;;  %v6411_v48 = vadd.f32 %v9666_v50, %v11839_v35 }
 0x326   : > { %v2537_v45 = vpop.f32.mrf.mxu0  ;;  %v6402_v32 = vpop.f32.mrf.mxu1 }
 0x327   : > { %v7862_v39 = vadd.f32 %v7861_v13, %v7322_v37  ;;  %v6403_v55 = vadd.f32 %v6402_v32, %v11839_v35  ;;  %v7327_v45 = vmax.f32 %v6411_v48, 0.0 }
 0x328   : > { %v2538_v38 = vpop.f32.mrf.mxu0  ;;  %v9667_v26 = vpop.f32.mrf.mxu1 }
 0x329   : > { %v7863_v0 = vadd.f32 %v7862_v39, %v7323_v30  ;;  %v3182_v17 = vadd.f32 %v3181_v36, %v2538_v38  ;;  %v7325_v61 = vmax.f32 %v6403_v55, 0.0  ;;  %v6414_v2 = vadd.f32 %v9667_v26, %v11839_v35  ;;  %v10394_v38 = vld [vmem:[%s10697_s13 + $0x5c0] ss:$8 sps:$4 sm:$0xff]   ;;  %v10401_v26 = vld [vmem:[%s10697_s13 + $0x5d4] ss:$8 sps:$4 sm:$0xff]  }
 0x32a   : > { %v2540_v52 = vpop.f32.mrf.mxu0  ;;  %v6405_v51 = vpop.f32.mrf.mxu1 }
 0x32b   : > { %v7864_v47 = vadd.f32 %v7863_v0, %v7324_v11  ;;  %v6406_v43 = vadd.f32 %v6405_v51, %v11839_v35 }
 0x32c   : > { %v2543_v19 = vpop.f32.mrf.mxu0  ;;  %2734 = vmatmul.mubr.bf16.gmra.mxu0 %v10391_v23  ;;  %v9670_v15 = vpop.f32.mrf.mxu1  ;;  %9765 = vmatmul.mubr.msk.bf16.gmra.mxu1 %vm4210_vm0, %v12567_v40  ;;  %v7328_v23 = vmax.f32 %v6414_v2, 0.0  ;;  %v10447_v2 = vld [vmem:[%s12482_s5 + $0x28] sm:$0xff]  }
 0x32d   : > { %v7865_v13 = vadd.f32 %v7864_v47, %v7325_v61  ;;  %v7326_v37 = vmax.f32 %v6406_v43, 0.0  ;;  %v3183_v36 = vadd.f32 %v3182_v17, %v2543_v19  ;;  %9768 = vmatprep.mubr.msk.bf16.mxu1 %vm4210_vm0, %v11395_v12  ;;  %2741 = vmatprep.mubr.bf16.mxu0 %v10396_v4  ;;  %v6427_v17 = vadd.f32 %v9670_v15, %v11839_v35  ;;  %v10446_v15 = vld [vmem:[%s12482_s5 + $0x68] sm:$0xff]  }
 0x32e   : > { %v2545_v50 = vpop.f32.mrf.mxu0  ;;  %v6418_v10 = vpop.f32.mrf.mxu1  ;;  %9378 = vmatprep.subr.bf16.mxu1 %v10446_v15 }
 0x32f   : > { %v7866_v32 = vadd.f32 %v7865_v13, %v7326_v37  ;;  %v6419_v30 = vadd.f32 %v6418_v10, %v11839_v35  ;;  %9379 = vmatpush3.bf16.msra.mxu1 %v10447_v2 }
 0x330   : > { %v2546_v39 = vpop.f32.mrf.mxu0  ;;  %v9671_v55 = vpop.f32.mrf.mxu1 }
 0x331   : > { %v7867_v11 = vadd.f32 %v7866_v32, %v7327_v45  ;;  %v3184_v0 = vadd.f32 %v3183_v36, %v2546_v39  ;;  %v7329_v61 = vmax.f32 %v6419_v30, 0.0  ;;  %v6430_v19 = vadd.f32 %v9671_v55, %v11839_v35 }
 0x332   : > { %v2548_v52 = vpop.f32.mrf.mxu0  ;;  %v6421_v51 = vpop.f32.mrf.mxu1  ;;  %v7331_v36 = vmax.f32 %v6427_v17, 0.0 }
 0x333   : > { %v7868_v12 = vadd.f32 %v7867_v11, %v7328_v23  ;;  %v6422_v4 = vadd.f32 %v6421_v51, %v11839_v35  ;;  %v7332_v30 = vmax.f32 %v6430_v19, 0.0  ;;  %v12568_v19 = vld [vmem:[#allocation34_spill] sm:$0xff] }
 0x334   : > { %v2551_v47 = vpop.f32.mrf.mxu0  ;;  %2742 = vmatmul.mubr.bf16.gmra.mxu0 %v10394_v38  ;;  %v9674_v48 = vpop.f32.mrf.mxu1  ;;  %9769 = vmatmul.mubr.msk.bf16.gmra.mxu1 %vm4210_vm0, %v11391_v41  ;;  %v10404_v38 = vld [vmem:[%s10697_s13 + $0x5e4] ss:$8 sps:$4 sm:$0xff]  }
 0x335   : > { %v7869_v43 = vadd.f32 %v7868_v12, %v7329_v61  ;;  %v7330_v40 = vmax.f32 %v6422_v4, 0.0  ;;  %v3185_v13 = vadd.f32 %v3184_v0, %v2551_v47  ;;  %9772 = vmatprep.mubr.msk.bf16.mxu1 %vm4210_vm0, %v11412_v44  ;;  %2749 = vmatprep.mubr.bf16.mxu0 %v10401_v26  ;;  %v10399_v44 = vld [vmem:[%s10697_s13 + $0x5d0] ss:$8 sps:$4 sm:$0xff]   ;;  %v6443_v0 = vadd.f32 %v9674_v48, %v11839_v35 }
 0x336   : > { %v2553_v41 = vpop.f32.mrf.mxu0  ;;  %v6434_v37 = vpop.f32.mrf.mxu1 }
 0x337   : > { %v7870_v50 = vadd.f32 %v7869_v43, %v7330_v40  ;;  %v6435_v10 = vadd.f32 %v6434_v37, %v11839_v35 }
 0x338   : > { %v2554_v45 = vpop.f32.mrf.mxu0  ;;  %v9675_v32 = vpop.f32.mrf.mxu1 }
 0x339   : > { %v7871_v39 = vadd.f32 %v7870_v50, %v7331_v36  ;;  %v3186_v55 = vadd.f32 %v3185_v13, %v2554_v45  ;;  %v7333_v26 = vmax.f32 %v6435_v10, 0.0  ;;  %v6446_v4 = vadd.f32 %v9675_v32, %v11839_v35  ;;  %v10402_v36 = vld [vmem:[%s10697_s13 + $0x5e0] ss:$8 sps:$4 sm:$0xff]   ;;  %v10407_v45 = vld [vmem:[%s10697_s13 + $0x5f4] ss:$8 sps:$4 sm:$0xff]  }
 0x33a   : > { %v2556_v23 = vpop.f32.mrf.mxu0  ;;  %v6437_v11 = vpop.f32.mrf.mxu1  ;;  %v7335_v13 = vmax.f32 %v6443_v0, 0.0 }
 0x33b   : > { %v7872_v52 = vadd.f32 %v7871_v39, %v7332_v30  ;;  %v6438_v51 = vadd.f32 %v6437_v11, %v11839_v35 }
 0x33c   : > { %v2559_v17 = vpop.f32.mrf.mxu0  ;;  %2750 = vmatmul.mubr.bf16.gmra.mxu0 %v10399_v44  ;;  %v9678_v61 = vpop.f32.mrf.mxu1  ;;  %9773 = vmatmul.mubr.msk.bf16.gmra.mxu1 %vm4210_vm0, %v11408_v16  ;;  %v7336_v16 = vmax.f32 %v6446_v4, 0.0 }
 0x33d   : > { %v7873_v12 = vadd.f32 %v7872_v52, %v7333_v26  ;;  %v7334_v47 = vmax.f32 %v6438_v51, 0.0  ;;  %v3187_v43 = vadd.f32 %v3186_v55, %v2559_v17  ;;  %9776 = vmatprep.mubr.msk.bf16.mxu1 %vm4210_vm0, %v12568_v19  ;;  %2757 = vmatprep.mubr.bf16.mxu0 %v10404_v38  ;;  %v6459_v30 = vadd.f32 %v9678_v61, %v11839_v35  ;;  %v12569_v26 = vld [vmem:[#allocation33_spill] sm:$0xff]  ;;  %v12570_v61 = vld [vmem:[#allocation36_spill] sm:$0xff] }
 0x33e   : > { %v2561_v48 = vpop.f32.mrf.mxu0  ;;  %v6450_v40 = vpop.f32.mrf.mxu1  ;;  %v11920_v52 = vadd.s32 224, %v12556_v6 }
 0x33f   : > { %v7874_v15 = vadd.f32 %v7873_v12, %v7334_v47  ;;  %v6451_v2 = vadd.f32 %v6450_v40, %v11839_v35 }
 0x340   : > { %v2562_v41 = vpop.f32.mrf.mxu0  ;;  %v9679_v37 = vpop.f32.mrf.mxu1  ;;  %vm7612_vm4 = vcmp.lt.s32.totalorder %v11920_v52, 225 }
 0x341   : > { %v7875_v50 = vadd.f32 %v7874_v15, %v7335_v13  ;;  %v3188_v10 = vadd.f32 %v3187_v43, %v2562_v41  ;;  %v7337_v39 = vmax.f32 %v6451_v2, 0.0  ;;  %v6462_v23 = vadd.f32 %v9679_v37, %v11839_v35  ;;  %v10405_v41 = vld [vmem:[%s10697_s13 + $0x5f0] ss:$8 sps:$4 sm:$0xff]  }
 0x342   : > { %v2564_v32 = vpop.f32.mrf.mxu0  ;;  %v6453_v44 = vpop.f32.mrf.mxu1  ;;  %v7339_v43 = vmax.f32 %v6459_v30, 0.0 }
 0x343   : > { %v7876_v55 = vadd.f32 %v7875_v50, %v7336_v16  ;;  %v6454_v38 = vadd.f32 %v6453_v44, %v11839_v35  ;;  %v7340_v13 = vmax.f32 %v6462_v23, 0.0  ;;  %v10410_v32 = vld [vmem:[%s10697_s13 + $0x604] ss:$8 sps:$4 sm:$0xff]  }
 0x344   : > { %v2567_v11 = vpop.f32.mrf.mxu0  ;;  %2758 = vmatmul.mubr.bf16.gmra.mxu0 %v10402_v36  ;;  %v9682_v0 = vpop.f32.mrf.mxu1  ;;  %9777 = vmatmul.mubr.msk.bf16.gmra.mxu1 %vm4210_vm0, %v12569_v26 }
 0x345   : > { %v7877_v51 = vadd.f32 %v7876_v55, %v7337_v39  ;;  %v7338_v17 = vmax.f32 %v6454_v38, 0.0  ;;  %v3189_v12 = vadd.f32 %v3188_v10, %v2567_v11  ;;  %9780 = vmatprep.mubr.msk.bf16.mxu1 %vm4210_vm0, %v12570_v61  ;;  %2765 = vmatprep.mubr.bf16.mxu0 %v10407_v45  ;;  %v6475_v48 = vadd.f32 %v9682_v0, %v11839_v35  ;;  %v12571_v11 = vld [vmem:[#allocation35_spill] sm:$0xff] }
 0x346   : > { %v2569_v4 = vpop.f32.mrf.mxu0  ;;  %v6466_v47 = vpop.f32.mrf.mxu1 }
 0x347   : > { %v7878_v19 = vadd.f32 %v7877_v51, %v7338_v17  ;;  %v6467_v40 = vadd.f32 %v6466_v47, %v11839_v35  ;;  %v7343_v44 = vmax.f32 %v6475_v48, 0.0 }
 0x348   : > { %v2570_v15 = vpop.f32.mrf.mxu0  ;;  %v9683_v2 = vpop.f32.mrf.mxu1 }
 0x349   : > { %v7879_v37 = vadd.f32 %v7878_v19, %v7339_v43  ;;  %v7341_v36 = vmax.f32 %v6467_v40, 0.0  ;;  %v3190_v16 = vadd.f32 %v3189_v12, %v2570_v15  ;;  %v6478_v50 = vadd.f32 %v9683_v2, %v11839_v35  ;;  %v10408_v43 = vld [vmem:[%s10697_s13 + $0x600] ss:$8 sps:$4 sm:$0xff]   ;;  %v10413_v40 = vld [vmem:[%s10697_s13 + $0x614] ss:$8 sps:$4 sm:$0xff]  }
 0x34a   : > { %v2572_v10 = vpop.f32.mrf.mxu0  ;;  %v6469_v45 = vpop.f32.mrf.mxu1 }
 0x34b   : > { %v7642_v30 = vsel %vm7612_vm4, %v7341_v36, 0.0  ;;  %v7880_v39 = vadd.f32 %v7879_v37, %v7340_v13  ;;  %v7344_v55 = vmax.f32 %v6478_v50, 0.0 }
 0x34c   : > { %v2575_v38 = vpop.f32.mrf.mxu0  ;;  %2766 = vmatmul.mubr.bf16.gmra.mxu0 %v10405_v41  ;;  %v9686_v23 = vpop.f32.mrf.mxu1  ;;  %9781 = vmatmul.mubr.msk.bf16.gmra.mxu1 %vm4210_vm0, %v12571_v11  ;;  %v10411_v11 = vld [vmem:[%s10697_s13 + $0x610] ss:$8 sps:$4 sm:$0xff]  }
 0x34d   : > { %v11934_v0 = vadd.f32 %v7880_v39, %v7642_v30  ;;  %v7889_v26 = vadd.f32 %v7344_v55, %v7343_v44  ;;  %v3191_v51 = vadd.f32 %v3190_v16, %v2575_v38  ;;  %9784 = vmatprep.mubr.msk.bf16.mxu1 %vm4210_vm0, %v11454_v24  ;;  %2773 = vmatprep.mubr.bf16.mxu0 %v10410_v32  ;;  %v12572_v16 = vld [vmem:[#allocation37_spill] sm:$0xff] }
 0x34e   : > { %v2577_v17 = vpop.f32.mrf.mxu0  ;;  %v6482_v12 = vpop.f32.mrf.mxu1  ;;  %v6491_v2 = vadd.f32 %v9686_v23, %v11839_v35 }
 0x34f   : > { %v6483_v61 = vadd.f32 %v6482_v12, %v11839_v35  ;;  %v10416_v12 = vld [vmem:[%s10697_s13 + $0x624] ss:$8 sps:$4 sm:$0xff]  }
 0x350   : > { %v2578_v4 = vpop.f32.mrf.mxu0  ;;  %v9687_v47 = vpop.f32.mrf.mxu1  ;;  %v7347_v30 = vmax.f32 %v6491_v2, 0.0 }
 0x351   : > { %v7345_v19 = vmax.f32 %v6483_v61, 0.0  ;;  %v3192_v48 = vadd.f32 %v3191_v51, %v2578_v4  ;;  %v6494_v50 = vadd.f32 %v9687_v47, %v11839_v35 }
 0x352   : > { %v2580_v13 = vpop.f32.mrf.mxu0  ;;  %v6485_v15 = vpop.f32.mrf.mxu1 }
 0x353   : > { %v7890_v41 = vadd.f32 %v7889_v26, %v7345_v19  ;;  %v6486_v37 = vadd.f32 %v6485_v15, %v11839_v35  ;;  %v7348_v26 = vmax.f32 %v6494_v50, 0.0  ;;  %v12573_v13 = vld [vmem:[#allocation38_spill] sm:$0xff] }
 0x354   : > { %v2583_v36 = vpop.f32.mrf.mxu0  ;;  %2774 = vmatmul.mubr.bf16.gmra.mxu0 %v10408_v43  ;;  %v9690_v24 = vpop.f32.mrf.mxu1  ;;  %9785 = vmatmul.mubr.msk.bf16.gmra.mxu1 %vm4210_vm0, %v12572_v16 }
 0x355   : > { %v7346_v10 = vmax.f32 %v6486_v37, 0.0  ;;  %v3193_v45 = vadd.f32 %v3192_v48, %v2583_v36  ;;  %9788 = vmatprep.mubr.msk.bf16.mxu1 %vm4210_vm0, %v11468_v3  ;;  %2781 = vmatprep.mubr.bf16.mxu0 %v10413_v40  ;;  %v6507_v47 = vadd.f32 %v9690_v24, %v11839_v35 }
 0x356   : > { %v2585_v32 = vpop.f32.mrf.mxu0  ;;  %v6498_v44 = vpop.f32.mrf.mxu1 }
 0x357   : > { %v7891_v39 = vadd.f32 %v7890_v41, %v7346_v10  ;;  %v6499_v55 = vadd.f32 %v6498_v44, %v11839_v35  ;;  %v7351_v16 = vmax.f32 %v6507_v47, 0.0  ;;  %v10414_v44 = vld [vmem:[%s10697_s13 + $0x620] ss:$8 sps:$4 sm:$0xff]  }
 0x358   : > { %v2586_v38 = vpop.f32.mrf.mxu0  ;;  %v9691_v23 = vpop.f32.mrf.mxu1 }
 0x359   : > { %v7892_v51 = vadd.f32 %v7891_v39, %v7347_v30  ;;  %v3194_v17 = vadd.f32 %v3193_v45, %v2586_v38  ;;  %v7349_v43 = vmax.f32 %v6499_v55, 0.0  ;;  %v6510_v2 = vadd.f32 %v9691_v23, %v11839_v35  ;;  %v10419_v38 = vld [vmem:[%s10697_s13 + $0x634] ss:$8 sps:$4 sm:$0xff]  }
 0x35a   : > { %v2588_v61 = vpop.f32.mrf.mxu0  ;;  %v6501_v4 = vpop.f32.mrf.mxu1 }
 0x35b   : > { %v7893_v3 = vadd.f32 %v7892_v51, %v7348_v26  ;;  %v6502_v19 = vadd.f32 %v6501_v4, %v11839_v35  ;;  %v7352_v30 = vmax.f32 %v6510_v2, 0.0 }
 0x35c   : > { %v2591_v48 = vpop.f32.mrf.mxu0  ;;  %2782 = vmatmul.mubr.bf16.gmra.mxu0 %v10411_v11  ;;  %v9694_v40 = vpop.f32.mrf.mxu1  ;;  %9789 = vmatmul.mubr.msk.bf16.gmra.mxu1 %vm4210_vm0, %v12573_v13 }
 0x35d   : > { %v7894_v15 = vadd.f32 %v7893_v3, %v7349_v43  ;;  %v7350_v41 = vmax.f32 %v6502_v19, 0.0  ;;  %v3195_v37 = vadd.f32 %v3194_v17, %v2591_v48  ;;  %9792 = vmatprep.mubr.msk.bf16.mxu1 %vm4210_vm0, %v11482_v20  ;;  %2789 = vmatprep.mubr.bf16.mxu0 %v10416_v12  ;;  %v6523_v26 = vadd.f32 %v9694_v40, %v11839_v35 }
 0x35e   : > { %v2593_v36 = vpop.f32.mrf.mxu0  ;;  %v6514_v24 = vpop.f32.mrf.mxu1 }
 0x35f   : > { %v7895_v50 = vadd.f32 %v7894_v15, %v7350_v41  ;;  %v6515_v10 = vadd.f32 %v6514_v24, %v11839_v35  ;;  %v7355_v40 = vmax.f32 %v6523_v26, 0.0 }
 0x360   : > { %v2594_v45 = vpop.f32.mrf.mxu0  ;;  %v9695_v32 = vpop.f32.mrf.mxu1 }
 0x361   : > { %v7896_v39 = vadd.f32 %v7895_v50, %v7351_v16  ;;  %v3196_v55 = vadd.f32 %v3195_v37, %v2594_v45  ;;  %v7353_v51 = vmax.f32 %v6515_v10, 0.0  ;;  %v6526_v47 = vadd.f32 %v9695_v32, %v11839_v35  ;;  %v10417_v37 = vld [vmem:[%s10697_s13 + $0x630] ss:$8 sps:$4 sm:$0xff]   ;;  %v10422_v16 = vld [vmem:[%s10697_s13 + $0x644] ss:$8 sps:$4 sm:$0xff]  }
 0x362   : > { %v2596_v23 = vpop.f32.mrf.mxu0  ;;  %v6517_v11 = vpop.f32.mrf.mxu1 }
 0x363   : > { %v7897_v20 = vadd.f32 %v7896_v39, %v7352_v30  ;;  %v6518_v17 = vadd.f32 %v6517_v11, %v11839_v35 }
 0x364   : > { %v2599_v12 = vpop.f32.mrf.mxu0  ;;  %2790 = vmatmul.mubr.bf16.gmra.mxu0 %v10414_v44  ;;  %v9698_v61 = vpop.f32.mrf.mxu1  ;;  %9793 = vmatmul.mubr.msk.bf16.gmra.mxu1 %vm4210_vm0, %v11477_v18  ;;  %v7356_v18 = vmax.f32 %v6526_v47, 0.0  ;;  %v10420_v47 = vld [vmem:[%s10697_s13 + $0x640] ss:$8 sps:$4 sm:$0xff]  }
 0x365   : > { %v7898_v4 = vadd.f32 %v7897_v20, %v7353_v51  ;;  %v7354_v43 = vmax.f32 %v6518_v17, 0.0  ;;  %v3197_v3 = vadd.f32 %v3196_v55, %v2599_v12  ;;  %9796 = vmatprep.mubr.msk.bf16.mxu1 %vm4210_vm0, %v11496_v21  ;;  %2797 = vmatprep.mubr.bf16.mxu0 %v10419_v38  ;;  %v6539_v45 = vadd.f32 %v9698_v61, %v11839_v35 }
 0x366   : > { %v2601_v19 = vpop.f32.mrf.mxu0  ;;  %v6530_v48 = vpop.f32.mrf.mxu1 }
 0x367   : > { %v7899_v13 = vadd.f32 %v7898_v4, %v7354_v43  ;;  %v6531_v15 = vadd.f32 %v6530_v48, %v11839_v35  ;;  %v7359_v20 = vmax.f32 %v6539_v45, 0.0  ;;  %v10427_v19 = vld [vmem:[%s10697_s13 + $0x654] ss:$8 sps:$4 sm:$0xff]   ;;  %v10472_v48 = vld [vmem:[%s12482_s5 + $0x60] sm:$0xff]  }
 0x368   : > { %v2602_v2 = vpop.f32.mrf.mxu0  ;;  %v9699_v41 = vpop.f32.mrf.mxu1  ;;  %9380 = vmatprep.subr.bf16.mxu1 %v10472_v48 }
 0x369   : > { %v7900_v36 = vadd.f32 %v7899_v13, %v7355_v40  ;;  %v3198_v24 = vadd.f32 %v3197_v3, %v2602_v2  ;;  %v7357_v32 = vmax.f32 %v6531_v15, 0.0  ;;  %v6542_v38 = vadd.f32 %v9699_v41, %v11839_v35  ;;  %v10473_v13 = vld [vmem:[%s12482_s5 + $0x20] sm:$0xff]  }
 0x36a   : > { %v2604_v50 = vpop.f32.mrf.mxu0  ;;  %v6533_v10 = vpop.f32.mrf.mxu1  ;;  %9381 = vmatpush3.bf16.msra.mxu1 %v10473_v13 }
 0x36b   : > { %v7901_v21 = vadd.f32 %v7900_v36, %v7356_v18  ;;  %v6534_v44 = vadd.f32 %v6533_v10, %v11839_v35 }
 0x36c   : > { %v2607_v30 = vpop.f32.mrf.mxu0  ;;  %2798 = vmatmul.mubr.bf16.gmra.mxu0 %v10417_v37  ;;  %v9702_v39 = vpop.f32.mrf.mxu1  ;;  %9797 = vmatmul.mubr.msk.bf16.gmra.mxu1 %vm4210_vm0, %v11491_v63  ;;  %v7360_v63 = vmax.f32 %v6542_v38, 0.0 }
 0x36d   : > { %v7902_v55 = vadd.f32 %v7901_v21, %v7357_v32  ;;  %v7358_v23 = vmax.f32 %v6534_v44, 0.0  ;;  %v3199_v11 = vadd.f32 %v3198_v24, %v2607_v30  ;;  %9800 = vmatprep.mubr.msk.bf16.mxu1 %vm4210_vm0, %v11510_v5  ;;  %2805 = vmatprep.mubr.bf16.mxu0 %v10422_v16  ;;  %v6555_v15 = vadd.f32 %v9702_v39, %v11839_v35 }
 0x36e   : > { %v2609_v26 = vpop.f32.mrf.mxu0  ;;  %v6546_v51 = vpop.f32.mrf.mxu1 }
 0x36f   : > { %v7903_v17 = vadd.f32 %v7902_v55, %v7358_v23  ;;  %v6547_v12 = vadd.f32 %v6546_v51, %v11839_v35  ;;  %v7363_v21 = vmax.f32 %v6555_v15, 0.0  ;;  %v10430_v26 = vld [vmem:[%s10697_s13 + $0x664] ss:$8 sps:$4 sm:$0xff]  }
 0x370   : > { %v2610_v61 = vpop.f32.mrf.mxu0  ;;  %v9703_v4 = vpop.f32.mrf.mxu1 }
 0x371   : > { %v7904_v43 = vadd.f32 %v7903_v17, %v7359_v20  ;;  %v3200_v3 = vadd.f32 %v3199_v11, %v2610_v61  ;;  %v7361_v2 = vmax.f32 %v6547_v12, 0.0  ;;  %v6558_v16 = vadd.f32 %v9703_v4, %v11839_v35 }
 0x372   : > { %v2612_v40 = vpop.f32.mrf.mxu0  ;;  %v6549_v5 = vpop.f32.mrf.mxu1 }
 0x373   : > { %v7905_v41 = vadd.f32 %v7904_v43, %v7360_v63  ;;  %v6550_v37 = vadd.f32 %v6549_v5, %v11839_v35  ;;  %v7364_v38 = vmax.f32 %v6558_v16, 0.0 }
 0x374   : > { %v2615_v18 = vpop.f32.mrf.mxu0  ;;  %2806 = vmatmul.mubr.bf16.gmra.mxu0 %v10420_v47  ;;  %v9706_v36 = vpop.f32.mrf.mxu1  ;;  %9801 = vmatmul.mubr.msk.bf16.gmra.mxu1 %vm4210_vm0, %v11505_v31  ;;  %v10425_v31 = vld [vmem:[%s10697_s13 + $0x650] ss:$8 sps:$4 sm:$0xff]  }
 0x375   : > { %v7906_v24 = vadd.f32 %v7905_v41, %v7361_v2  ;;  %v7362_v50 = vmax.f32 %v6550_v37, 0.0  ;;  %v3201_v10 = vadd.f32 %v3200_v3, %v2615_v18  ;;  %9804 = vmatprep.mubr.msk.bf16.mxu1 %vm4210_vm0, %v11524_v34  ;;  %2813 = vmatprep.mubr.bf16.mxu0 %v10427_v19  ;;  %v6571_v17 = vadd.f32 %v9706_v36, %v11839_v35  ;;  %v10428_v18 = vld [vmem:[%s10697_s13 + $0x660] ss:$8 sps:$4 sm:$0xff]  }
 0x376   : > { %v2617_v45 = vpop.f32.mrf.mxu0  ;;  %v6562_v32 = vpop.f32.mrf.mxu1  ;;  %v7883_v2 = vrot.slane %v11934_v0, 4 }
 0x377   : > { %v7907_v44 = vadd.f32 %v7906_v24, %v7362_v50  ;;  %v6563_v30 = vadd.f32 %v6562_v32, %v11839_v35  ;;  %v7367_v5 = vmax.f32 %v6571_v17, 0.0  ;;  %v10433_v50 = vld [vmem:[%s10697_s13 + $0x674] ss:$8 sps:$4 sm:$0xff]  }
 0x378   : > { %v2618_v39 = vpop.f32.mrf.mxu0  ;;  %v9707_v55 = vpop.f32.mrf.mxu1 }
 0x379   : > { %v7908_v23 = vadd.f32 %v7907_v44, %v7363_v21  ;;  %v3202_v11 = vadd.f32 %v3201_v10, %v2618_v39  ;;  %v7365_v34 = vmax.f32 %v6563_v30, 0.0  ;;  %v6574_v43 = vadd.f32 %v9707_v55, %v11839_v35 }
 0x37a   : > { %v2620_v51 = vpop.f32.mrf.mxu0  ;;  %v6565_v20 = vpop.f32.mrf.mxu1  ;;  %v7884_v44 = vadd.f32 %v7883_v2, %v11934_v0 }
 0x37b   : > { %v7909_v12 = vadd.f32 %v7908_v23, %v7364_v38  ;;  %v6566_v61 = vadd.f32 %v6565_v20, %v11839_v35  ;;  %v7368_v36 = vmax.f32 %v6574_v43, 0.0 }
 0x37c   : > { %v2623_v4 = vpop.f32.mrf.mxu0  ;;  %2814 = vmatmul.mubr.bf16.gmra.mxu0 %v10425_v31  ;;  %v9710_v47 = vpop.f32.mrf.mxu1  ;;  %9805 = vmatmul.mubr.msk.bf16.gmra.mxu1 %vm4210_vm0, %v11519_v53  ;;  %v7885_v0 = vrot.slane %v7884_v44, 2 }
 0x37d   : > { %v7910_v63 = vadd.f32 %v7909_v12, %v7365_v34  ;;  %v7366_v3 = vmax.f32 %v6566_v61, 0.0  ;;  %v3203_v19 = vadd.f32 %v3202_v11, %v2623_v4  ;;  %9808 = vmatprep.mubr.msk.bf16.mxu1 %vm4210_vm0, %v11538_v60  ;;  %2821 = vmatprep.mubr.bf16.mxu0 %v10430_v26  ;;  %v6587_v53 = vadd.f32 %v9710_v47, %v11839_v35  ;;  %v10436_v47 = vld [vmem:[%s10697_s13 + $0x684] ss:$8 sps:$4 sm:$0xff]  }
 0x37e   : > { %v2625_v48 = vpop.f32.mrf.mxu0  ;;  %v6578_v40 = vpop.f32.mrf.mxu1 }
 0x37f   : > { %v7911_v13 = vadd.f32 %v7910_v63, %v7366_v3  ;;  %v6579_v15 = vadd.f32 %v6578_v40, %v11839_v35  ;;  %v7371_v30 = vmax.f32 %v6587_v53, 0.0  ;;  %v7886_v48 = vadd.f32 %v7885_v0, %v7884_v44 }
 0x380   : > { %v2626_v41 = vpop.f32.mrf.mxu0  ;;  %v9711_v37 = vpop.f32.mrf.mxu1 }
 0x381   : > { %v7912_v24 = vadd.f32 %v7911_v13, %v7367_v5  ;;  %v3204_v16 = vadd.f32 %v3203_v19, %v2626_v41  ;;  %v7369_v45 = vmax.f32 %v6579_v15, 0.0  ;;  %v7672_v20 = vsel %vm7612_vm4, %v7371_v30, 0.0 }
 0x382   : > { %v2628_v10 = vpop.f32.mrf.mxu0  ;;  %v6581_v60 = vpop.f32.mrf.mxu1 }
 0x383   : > { %v7913_v32 = vadd.f32 %v7912_v24, %v7368_v36  ;;  %v6582_v21 = vadd.f32 %v6581_v60, %v11839_v35  ;;  %v7887_v10 = vrot.slane %v7886_v48, 1 }
 0x384   : > { %v2631_v39 = vpop.f32.mrf.mxu0  ;;  %2822 = vmatmul.mubr.bf16.gmra.mxu0 %v10428_v18  ;;  %v9714_v55 = vpop.f32.mrf.mxu1  ;;  %9809 = vmatmul.mubr.msk.bf16.gmra.mxu1 %vm4210_vm0, %v11533_v54  ;;  %v10431_v54 = vld [vmem:[%s10697_s13 + $0x670] ss:$8 sps:$4 sm:$0xff]  }
 0x385   : > { %v7914_v31 = vadd.f32 %v7913_v32, %v7369_v45  ;;  %v7370_v38 = vmax.f32 %v6582_v21, 0.0  ;;  %v3205_v23 = vadd.f32 %v3204_v16, %v2631_v39  ;;  %9812 = vmatprep.mubr.msk.bf16.mxu1 %vm4210_vm0, %v11552_v29  ;;  %2829 = vmatprep.mubr.bf16.mxu0 %v10433_v50  ;;  %v6603_v29 = vadd.f32 %v9714_v55, %v11839_v35  ;;  %v10434_v45 = vld [vmem:[%s10697_s13 + $0x680] ss:$8 sps:$4 sm:$0xff]   ;;  %v10439_v39 = vld [vmem:[%s10697_s13 + $0x694] ss:$8 sps:$4 sm:$0xff]  }
 0x386   : > { %v2633_v11 = vpop.f32.mrf.mxu0  ;;  %v6594_v26 = vpop.f32.mrf.mxu1  ;;  %v7888_v0 = vadd.f32 %v7887_v10, %v7886_v48 }
 0x387   : > { %v7915_v51 = vadd.f32 %v7914_v31, %v7370_v38  ;;  %v6595_v17 = vadd.f32 %v6594_v26, %v11839_v35  ;;  %v7375_v24 = vmax.f32 %v6603_v29, 0.0 }
 0x388   : > { %v2634_v34 = vpop.f32.mrf.mxu0  ;;  %v9715_v12 = vpop.f32.mrf.mxu1 }
 0x389   : > { %v7916_v61 = vadd.f32 %v7915_v51, %v7672_v20  ;;  %v3206_v4 = vadd.f32 %v3205_v23, %v2634_v34  ;;  %v7373_v40 = vmax.f32 %v6595_v17, 0.0  ;;  %v6606_v2 = vadd.f32 %v9715_v12, %v11839_v35 }
 0x38a   : > { %v2636_v63 = vpop.f32.mrf.mxu0  ;;  %v6597_v43 = vpop.f32.mrf.mxu1 }
 0x38b   : > { %v7918_v3 = vrot.slane %v7916_v61, 4  ;;  %v6598_v19 = vadd.f32 %v6597_v43, %v11839_v35  ;;  %v7376_v21 = vmax.f32 %v6606_v2, 0.0 }
 0x38c   : > { %v2639_v5 = vpop.f32.mrf.mxu0  ;;  %2830 = vmatmul.mubr.bf16.gmra.mxu0 %v10431_v54  ;;  %v9718_v13 = vpop.f32.mrf.mxu1  ;;  %9813 = vmatmul.mubr.msk.bf16.gmra.mxu1 %vm4210_vm0, %v11547_v14 }
 0x38d   : > { %v7919_v15 = vadd.f32 %v7918_v3, %v7916_v61  ;;  %v7374_v53 = vmax.f32 %v6598_v19, 0.0  ;;  %v3207_v41 = vadd.f32 %v3206_v4, %v2639_v5  ;;  %9816 = vmatprep.mubr.msk.bf16.mxu1 %vm4210_vm0, %v11566_v57  ;;  %2837 = vmatprep.mubr.bf16.mxu0 %v10436_v47  ;;  %v6619_v57 = vadd.f32 %v9718_v13, %v11839_v35  ;;  %v10437_v13 = vld [vmem:[%s10697_s13 + $0x690] ss:$8 sps:$4 sm:$0xff]  }
 0x38e   : > { %v2641_v37 = vpop.f32.mrf.mxu0  ;;  %v6610_v18 = vpop.f32.mrf.mxu1 }
 0x38f   : > { %v7920_v36 = vrot.slane %v7919_v15, 2  ;;  %v7924_v16 = vadd.f32 %v7374_v53, %v7373_v40  ;;  %v6611_v50 = vadd.f32 %v6610_v18, %v11839_v35  ;;  %v7379_v47 = vmax.f32 %v6619_v57, 0.0  ;;  %v10442_v37 = vld [vmem:[%s10697_s13 + $0x6a4] ss:$8 sps:$4 sm:$0xff]  }
 0x390   : > { %v2642_v14 = vpop.f32.mrf.mxu0  ;;  %v9719_v60 = vpop.f32.mrf.mxu1  ;;  %v8134_v40 = vmul.f32 0.0044444446, %v7888_v0 }
 0x391   : > { %v7921_v32 = vadd.f32 %v7920_v36, %v7919_v15  ;;  %v7925_v44 = vadd.f32 %v7924_v16, %v7375_v24  ;;  %v3208_v30 = vadd.f32 %v3207_v41, %v2642_v14  ;;  %v7377_v55 = vmax.f32 %v6611_v50, 0.0 }
 0x392   : > { %v2644_v31 = vpop.f32.mrf.mxu0  ;;  %v6613_v38 = vpop.f32.mrf.mxu1  ;;  %v6622_v20 = vadd.f32 %v9719_v60, %v11839_v35 }
 0x393   : > { %v7922_v23 = vrot.slane %v7921_v32, 1  ;;  %v7926_v11 = vadd.f32 %v7925_v44, %v7376_v21  ;;  %v3209_v26 = vrot.slane %v3208_v30, 4  ;;  %v6614_v51 = vadd.f32 %v6613_v38, %v11839_v35 }
 0x394   : > { %v2647_v17 = vpop.f32.mrf.mxu0  ;;  %2838 = vmatmul.mubr.bf16.gmra.mxu0 %v10434_v45  ;;  %v9722_v34 = vpop.f32.mrf.mxu1  ;;  %9817 = vmatmul.mubr.msk.bf16.gmra.mxu1 %vm4210_vm0, %v11561_v28  ;;  %v7380_v2 = vmax.f32 %v6622_v20, 0.0 }
 0x395   : > { %v7923_v12 = vadd.f32 %v7922_v23, %v7921_v32  ;;  %v7927_v54 = vadd.f32 %v7926_v11, %v7377_v55  ;;  %v3210_v61 = vadd.f32 %v3209_v26, %v3208_v30  ;;  %v7378_v4 = vmax.f32 %v6614_v51, 0.0  ;;  %9820 = vmatprep.mubr.msk.bf16.mxu1 %vm4210_vm0, %v11580_v27  ;;  %2845 = vmatprep.mubr.bf16.mxu0 %v10439_v39  ;;  %v10440_v51 = vld [vmem:[%s10697_s13 + $0x6a0] ss:$8 sps:$4 sm:$0xff]  }
 0x396   : > { %v2649_v63 = vpop.f32.mrf.mxu0  ;;  %v6626_v43 = vpop.f32.mrf.mxu1  ;;  %v6635_v27 = vadd.f32 %v9722_v34, %v11839_v35  ;;  %v10445_v34 = vld [vmem:[%s10697_s13 + $0x6b4] ss:$8 sps:$4 sm:$0xff]  }
 0x397   : > { %v8135_v3 = vmul.f32 0.0044444446, %v7923_v12  ;;  %v3211_v29 = vrot.slane %v3210_v61, 2  ;;  %v7928_v19 = vadd.f32 %v7927_v54, %v7378_v4  ;;  %v6627_v48 = vadd.f32 %v6626_v43, %v11839_v35 }
 0x398   : > { %v2650_v28 = vpop.f32.mrf.mxu0  ;;  %v9723_v5 = vpop.f32.mrf.mxu1  ;;  %v7383_v38 = vmax.f32 %v6635_v27, 0.0 }
 0x399   : > { %v3212_v15 = vadd.f32 %v3211_v29, %v3210_v61  ;;  %v7929_v53 = vadd.f32 %v7928_v19, %v7379_v47  ;;  %v3215_v41 = vadd.f32 %v2650_v28, %v2647_v17  ;;  %v12042_v24 = vsel %vm8150_vm1, %v8135_v3, %v8134_v40  ;;  %v12574_v29 = vld [vmem:[#allocation39_spill] sm:$0xff] }
 0x39a   : > { %v2652_v18 = vpop.f32.mrf.mxu0  ;;  %v6629_v36 = vpop.f32.mrf.mxu1  ;;  %v7381_v50 = vmax.f32 %v6627_v48, 0.0  ;;  %v6638_v60 = vadd.f32 %v9723_v5, %v11839_v35 }
 0x39b   : > { %v3213_v16 = vrot.slane %v3212_v15, 1  ;;  %v7930_v10 = vadd.f32 %v7929_v53, %v7380_v2  ;;  %v6630_v14 = vadd.f32 %v6629_v36, %v11839_v35 }
 0x39c   : > { %v2655_v45 = vpop.f32.mrf.mxu0  ;;  %2846 = vmatmul.mubr.bf16.gmra.mxu0 %v10437_v13  ;;  %v9726_v32 = vpop.f32.mrf.mxu1  ;;  %9821 = vmatmul.mubr.msk.bf16.gmra.mxu1 %vm4210_vm0, %v11575_v33  ;;  %v7384_v20 = vmax.f32 %v6638_v60, 0.0 }
 0x39d   : > { %v3214_v21 = vadd.f32 %v3213_v16, %v3212_v15  ;;  %v7931_v44 = vadd.f32 %v7930_v10, %v7381_v50  ;;  %v7382_v30 = vmax.f32 %v6630_v14, 0.0  ;;  %v3216_v39 = vadd.f32 %v3215_v41, %v2655_v45  ;;  %9824 = vmatprep.mubr.msk.bf16.mxu1 %vm4210_vm0, %v11594_v59  ;;  %2853 = vmatprep.mubr.bf16.mxu0 %v10442_v37  ;;  %v10443_v37 = vld [vmem:[%s10697_s13 + $0x6b0] ss:$8 sps:$4 sm:$0xff]   ;;  %v10450_v16 = vld [vmem:[%s10697_s13 + $0x6c4] ss:$8 sps:$4 sm:$0xff]  }
 0x39e   : > { %v2657_v57 = vpop.f32.mrf.mxu0  ;;  %v6642_v55 = vpop.f32.mrf.mxu1  ;;  %v6651_v61 = vadd.f32 %v9726_v32, %v11839_v35 }
 0x39f   : > { %v3330_v31 = vmul.f32 0.00390625, %v3214_v21  ;;  %v7932_v23 = vadd.f32 %v7931_v44, %v7382_v30  ;;  %v6643_v11 = vadd.f32 %v6642_v55, %v11839_v35  ;;  %v12575_v44 = vld [vmem:[#allocation40_spill] sm:$0xff] }
 0x3a0   : > { %v2658_v26 = vpop.f32.mrf.mxu0  ;;  %v9727_v33 = vpop.f32.mrf.mxu1  ;;  %v7387_v13 = vmax.f32 %v6651_v61, 0.0 }
 0x3a1   : > { %v12054_v0 = vsel %vm8156_vm5, %v3330_v31, %v11865_v56  ;;  %v7933_v17 = vadd.f32 %v7932_v23, %v7383_v38  ;;  %v3217_v59 = vadd.f32 %v3216_v39, %v2658_v26  ;;  %v7385_v4 = vmax.f32 %v6643_v11, 0.0  ;;  %v10495_v31 = vld [vmem:[%s12482_s5 + $0x58] sm:$0xff]  }
 0x3a2   : > { %v2660_v12 = vpop.f32.mrf.mxu0  ;;  %v6645_v54 = vpop.f32.mrf.mxu1  ;;  %v6654_v19 = vadd.f32 %v9727_v33, %v11839_v35  ;;  %v10496_v38 = vld [vmem:[%s12482_s5 + $0x18] sm:$0xff]   ;;  %9382 = vmatprep.subr.bf16.mxu1 %v10495_v31 }
 0x3a3   : > { %v7934_v47 = vadd.f32 %v7933_v17, %v7384_v20  ;;  %v6646_v63 = vadd.f32 %v6645_v54, %v11839_v35  ;;  %9383 = vmatpush3.bf16.msra.mxu1 %v10496_v38  ;;  %v10453_v54 = vld [vmem:[%s10697_s13 + $0x6d4] ss:$8 sps:$4 sm:$0xff]  }
 0x3a4   : > { %v2663_v43 = vpop.f32.mrf.mxu0  ;;  %2854 = vmatmul.mubr.bf16.gmra.mxu0 %v10440_v51  ;;  %v9730_v3 = vpop.f32.mrf.mxu1  ;;  %9825 = vmatmul.mubr.msk.bf16.gmra.mxu1 %vm4210_vm0, %v12574_v29  ;;  %v7388_v27 = vmax.f32 %v6654_v19, 0.0 }
 0x3a5   : > { %v7935_v56 = vadd.f32 %v7934_v47, %v7385_v4  ;;  %v7386_v48 = vmax.f32 %v6646_v63, 0.0  ;;  %v3218_v40 = vadd.f32 %v3217_v59, %v2663_v43  ;;  %9828 = vmatprep.mubr.msk.bf16.mxu1 %vm4210_vm0, %v11608_v9  ;;  %2861 = vmatprep.mubr.bf16.mxu0 %v10445_v34  ;;  %v6667_v14 = vadd.f32 %v9730_v3, %v11839_v35 }
 0x3a6   : > { %v2665_v28 = vpop.f32.mrf.mxu0  ;;  %v6658_v5 = vpop.f32.mrf.mxu1 }
 0x3a7   : > { %v7936_v15 = vadd.f32 %v7935_v56, %v7386_v48  ;;  %v6659_v2 = vadd.f32 %v6658_v5, %v11839_v35  ;;  %v7391_v26 = vmax.f32 %v6667_v14, 0.0 }
 0x3a8   : > { %v2666_v53 = vpop.f32.mrf.mxu0  ;;  %v9731_v41 = vpop.f32.mrf.mxu1 }
 0x3a9   : > { %v7937_v18 = vadd.f32 %v7936_v15, %v7387_v13  ;;  %v3219_v36 = vadd.f32 %v3218_v40, %v2666_v53  ;;  %v7389_v60 = vmax.f32 %v6659_v2, 0.0  ;;  %v6670_v39 = vadd.f32 %v9731_v41, %v11839_v35 }
 0x3aa   : > { %v2668_v50 = vpop.f32.mrf.mxu0  ;;  %v6661_v10 = vpop.f32.mrf.mxu1 }
 0x3ab   : > { %v7938_v9 = vadd.f32 %v7937_v18, %v7388_v27  ;;  %v6662_v45 = vadd.f32 %v6661_v10, %v11839_v35  ;;  %v7392_v59 = vmax.f32 %v6670_v39, 0.0  ;;  %v10451_v27 = vld [vmem:[%s10697_s13 + $0x6d0] ss:$8 sps:$4 sm:$0xff]  }
 0x3ac   : > { %v2671_v32 = vpop.f32.mrf.mxu0  ;;  %2862 = vmatmul.mubr.bf16.gmra.mxu0 %v10443_v37  ;;  %v9734_v21 = vpop.f32.mrf.mxu1  ;;  %9829 = vmatmul.mubr.msk.bf16.gmra.mxu1 %vm4210_vm0, %v12575_v44 }
 0x3ad   : > { %v7939_v30 = vadd.f32 %v7938_v9, %v7389_v60  ;;  %v7390_v57 = vmax.f32 %v6662_v45, 0.0  ;;  %v3220_v55 = vadd.f32 %v3219_v36, %v2671_v32  ;;  %9832 = vmatprep.mubr.msk.bf16.mxu1 %vm4210_vm0, %v11622_v49  ;;  %2869 = vmatprep.mubr.bf16.mxu0 %v10450_v16  ;;  %v10448_v49 = vld [vmem:[%s10697_s13 + $0x6c0] ss:$8 sps:$4 sm:$0xff]   ;;  %v6683_v47 = vadd.f32 %v9734_v21, %v11839_v35  ;;  %v10456_v16 = vld [vmem:[%s10697_s13 + $0x6e4] ss:$8 sps:$4 sm:$0xff]  }
 0x3ae   : > { %v2673_v23 = vpop.f32.mrf.mxu0  ;;  %v6674_v11 = vpop.f32.mrf.mxu1 }
 0x3af   : > { %v7940_v33 = vadd.f32 %v7939_v30, %v7390_v57  ;;  %v6675_v51 = vadd.f32 %v6674_v11, %v11839_v35  ;;  %v7395_v15 = vmax.f32 %v6683_v47, 0.0 }
 0x3b0   : > { %v2674_v20 = vpop.f32.mrf.mxu0  ;;  %v9735_v17 = vpop.f32.mrf.mxu1 }
 0x3b1   : > { %v7941_v34 = vadd.f32 %v7940_v33, %v7391_v26  ;;  %v3221_v12 = vadd.f32 %v3220_v55, %v2674_v20  ;;  %v7393_v63 = vmax.f32 %v6675_v51, 0.0  ;;  %v6686_v48 = vadd.f32 %v9735_v17, %v11839_v35 }
 0x3b2   : > { %v2676_v61 = vpop.f32.mrf.mxu0  ;;  %v6677_v4 = vpop.f32.mrf.mxu1 }
 0x3b3   : > { %v7942_v43 = vadd.f32 %v7941_v34, %v7392_v59  ;;  %v6678_v3 = vadd.f32 %v6677_v4, %v11839_v35 }
 0x3b4   : > { %v2679_v29 = vpop.f32.mrf.mxu0  ;;  %2870 = vmatmul.mubr.bf16.gmra.mxu0 %v10448_v49  ;;  %v9738_v56 = vpop.f32.mrf.mxu1  ;;  %9833 = vmatmul.mubr.msk.bf16.gmra.mxu1 %vm4210_vm0, %v11617_v1  ;;  %v7396_v1 = vmax.f32 %v6686_v48, 0.0 }
 0x3b5   : > { %v7943_v19 = vadd.f32 %v7942_v43, %v7393_v63  ;;  %v7394_v40 = vmax.f32 %v6678_v3, 0.0  ;;  %v3222_v28 = vadd.f32 %v3221_v12, %v2679_v29  ;;  %9836 = vmatprep.mubr.msk.bf16.mxu1 %vm4210_vm0, %v11640_v22  ;;  %2877 = vmatprep.mubr.bf16.mxu0 %v10453_v54  ;;  %v6699_v14 = vadd.f32 %v9738_v56, %v11839_v35  ;;  %v10459_v12 = vld [vmem:[%s10697_s13 + $0x6f4] ss:$8 sps:$4 sm:$0xff]  }
 0x3b6   : > { %v2681_v5 = vpop.f32.mrf.mxu0  ;;  %v6690_v13 = vpop.f32.mrf.mxu1 }
 0x3b7   : > { %v7944_v2 = vadd.f32 %v7943_v19, %v7394_v40  ;;  %v6691_v53 = vadd.f32 %v6690_v13, %v11839_v35  ;;  %v7399_v31 = vmax.f32 %v6699_v14, 0.0 }
 0x3b8   : > { %v2682_v41 = vpop.f32.mrf.mxu0  ;;  %v9739_v37 = vpop.f32.mrf.mxu1 }
 0x3b9   : > { %v7945_v18 = vadd.f32 %v7944_v2, %v7395_v15  ;;  %v3223_v36 = vadd.f32 %v3222_v28, %v2682_v41  ;;  %v7397_v60 = vmax.f32 %v6691_v53, 0.0  ;;  %v6702_v45 = vadd.f32 %v9739_v37, %v11839_v35  ;;  %v10457_v15 = vld [vmem:[%s10697_s13 + $0x6f0] ss:$8 sps:$4 sm:$0xff]  }
 0x3ba   : > { %v2684_v50 = vpop.f32.mrf.mxu0  ;;  %v6693_v10 = vpop.f32.mrf.mxu1 }
 0x3bb   : > { %v7946_v22 = vadd.f32 %v7945_v18, %v7396_v1  ;;  %v6694_v9 = vadd.f32 %v6693_v10, %v11839_v35  ;;  %v7400_v26 = vmax.f32 %v6702_v45, 0.0 }
 0x3bc   : > { %v2687_v32 = vpop.f32.mrf.mxu0  ;;  %2878 = vmatmul.mubr.bf16.gmra.mxu0 %v10451_v27  ;;  %v9742_v21 = vpop.f32.mrf.mxu1  ;;  %9837 = vmatmul.mubr.msk.bf16.gmra.mxu1 %vm4210_vm0, %v11635_v8  ;;  %v10454_v8 = vld [vmem:[%s10697_s13 + $0x6e0] ss:$8 sps:$4 sm:$0xff]  }
 0x3bd   : > { %v7947_v44 = vadd.f32 %v7946_v22, %v7397_v60  ;;  %v7398_v30 = vmax.f32 %v6694_v9, 0.0  ;;  %v3224_v39 = vadd.f32 %v3223_v36, %v2687_v32  ;;  %9840 = vmatprep.mubr.msk.bf16.mxu1 %vm4210_vm0, %v11654_v46  ;;  %2885 = vmatprep.mubr.bf16.mxu0 %v10456_v16  ;;  %v6715_v23 = vadd.f32 %v9742_v21, %v11839_v35 }
 0x3be   : > { %v2689_v57 = vpop.f32.mrf.mxu0  ;;  %v6706_v55 = vpop.f32.mrf.mxu1 }
 0x3bf   : > { %v7948_v38 = vadd.f32 %v7947_v44, %v7398_v30  ;;  %v6707_v11 = vadd.f32 %v6706_v55, %v11839_v35  ;;  %v7403_v54 = vmax.f32 %v6715_v23, 0.0 }
 0x3c0   : > { %v2690_v33 = vpop.f32.mrf.mxu0  ;;  %v9743_v51 = vpop.f32.mrf.mxu1 }
 0x3c1   : > { %v7949_v20 = vadd.f32 %v7948_v38, %v7399_v31  ;;  %v7401_v17 = vmax.f32 %v6707_v11, 0.0  ;;  %v3225_v49 = vadd.f32 %v3224_v39, %v2690_v33  ;;  %v6718_v59 = vadd.f32 %v9743_v51, %v11839_v35  ;;  %v10465_v11 = vld [vmem:[%s10697_s13 + $0x714] ss:$8 sps:$4 sm:$0xff]  }
 0x3c2   : > { %v2692_v46 = vpop.f32.mrf.mxu0  ;;  %v6709_v34 = vpop.f32.mrf.mxu1 }
 0x3c3   : > { %v7702_v61 = vsel %vm7612_vm4, %v7401_v17, 0.0  ;;  %v7950_v4 = vadd.f32 %v7949_v20, %v7400_v26  ;;  %v7404_v47 = vmax.f32 %v6718_v59, 0.0 }
 0x3c4   : > { %v2695_v63 = vpop.f32.mrf.mxu0  ;;  %2886 = vmatmul.mubr.bf16.gmra.mxu0 %v10454_v8  ;;  %v9746_v43 = vpop.f32.mrf.mxu1  ;;  %9841 = vmatmul.mubr.msk.bf16.gmra.mxu1 %vm4210_vm0, %v11649_v42  ;;  %v10462_v42 = vld [vmem:[%s10697_s13 + $0x704] ss:$8 sps:$4 sm:$0xff]  }
 0x3c5   : > { %v7951_v3 = vadd.f32 %v7950_v4, %v7702_v61  ;;  %v7959_v29 = vadd.f32 %v7404_v47, %v7403_v54  ;;  %v3226_v56 = vadd.f32 %v3225_v49, %v2695_v63  ;;  %9844 = vmatprep.mubr.msk.bf16.mxu1 %vm4210_vm0, %v11668_v7  ;;  %2893 = vmatprep.mubr.bf16.mxu0 %v10459_v12  ;;  %v12576_v4 = vld [vmem:[#allocation42_spill] sm:$0xff] }
 0x3c6   : > { %v2697_v19 = vpop.f32.mrf.mxu0  ;;  %v6722_v48 = vpop.f32.mrf.mxu1  ;;  %v6731_v18 = vadd.f32 %v9746_v43, %v11839_v35 }
 0x3c7   : > { %v7953_v40 = vrot.slane %v7951_v3, 4  ;;  %v6723_v28 = vadd.f32 %v6722_v48, %v11839_v35  ;;  %v10463_v19 = vld [vmem:[%s10697_s13 + $0x710] ss:$8 sps:$4 sm:$0xff]  }
 0x3c8   : > { %v2698_v5 = vpop.f32.mrf.mxu0  ;;  %v9747_v13 = vpop.f32.mrf.mxu1  ;;  %v7407_v21 = vmax.f32 %v6731_v18, 0.0 }
 0x3c9   : > { %v7954_v2 = vadd.f32 %v7953_v40, %v7951_v3  ;;  %v7405_v53 = vmax.f32 %v6723_v28, 0.0  ;;  %v3227_v41 = vadd.f32 %v3226_v56, %v2698_v5  ;;  %v6734_v14 = vadd.f32 %v9747_v13, %v11839_v35  ;;  %v10468_v28 = vld [vmem:[%s10697_s13 + $0x724] ss:$8 sps:$4 sm:$0xff]  }
 0x3ca   : > { %v2700_v37 = vpop.f32.mrf.mxu0  ;;  %v6725_v27 = vpop.f32.mrf.mxu1 }
 0x3cb   : > { %v7955_v1 = vrot.slane %v7954_v2, 2  ;;  %v7960_v36 = vadd.f32 %v7959_v29, %v7405_v53  ;;  %v6726_v7 = vadd.f32 %v6725_v27, %v11839_v35  ;;  %v7408_v31 = vmax.f32 %v6734_v14, 0.0  ;;  %v12577_v27 = vld [vmem:[#allocation41_spill] sm:$0xff] }
 0x3cc   : > { %v2703_v16 = vpop.f32.mrf.mxu0  ;;  %2894 = vmatmul.mubr.bf16.gmra.mxu0 %v10457_v15  ;;  %v9750_v50 = vpop.f32.mrf.mxu1  ;;  %9845 = vmatmul.mubr.msk.bf16.gmra.mxu1 %vm4210_vm0, %v11663_v62  ;;  %v10460_v62 = vld [vmem:[%s10697_s13 + $0x700] ss:$8 sps:$4 sm:$0xff]  }
 0x3cd   : > { %v7956_v10 = vadd.f32 %v7955_v1, %v7954_v2  ;;  %v7406_v60 = vmax.f32 %v6726_v7, 0.0  ;;  %v3228_v22 = vadd.f32 %v3227_v41, %v2703_v16  ;;  %9848 = vmatprep.mubr.msk.bf16.mxu1 %vm4210_vm0, %v11688_v25  ;;  %2901 = vmatprep.mubr.bf16.mxu0 %v10462_v42  ;;  %v6747_v26 = vadd.f32 %v9750_v50, %v11839_v35  ;;  %v12578_v16 = vld [vmem:[#allocation44_spill] sm:$0xff] }
 0x3ce   : > { %v2705_v9 = vpop.f32.mrf.mxu0  ;;  %v6738_v45 = vpop.f32.mrf.mxu1 }
 0x3cf   : > { %v7957_v32 = vrot.slane %v7956_v10, 1  ;;  %v7961_v44 = vadd.f32 %v7960_v36, %v7406_v60  ;;  %v6739_v30 = vadd.f32 %v6738_v45, %v11839_v35  ;;  %v7411_v43 = vmax.f32 %v6747_v26, 0.0 }
 0x3d0   : > { %v2706_v39 = vpop.f32.mrf.mxu0  ;;  %v9751_v57 = vpop.f32.mrf.mxu1 }
 0x3d1   : > { %v7958_v55 = vadd.f32 %v7957_v32, %v7956_v10  ;;  %v7962_v38 = vadd.f32 %v7961_v44, %v7407_v21  ;;  %v3229_v23 = vadd.f32 %v3228_v22, %v2706_v39  ;;  %v7409_v8 = vmax.f32 %v6739_v30, 0.0  ;;  %v10466_v32 = vld [vmem:[%s10697_s13 + $0x720] ss:$8 sps:$4 sm:$0xff]   ;;  %v10471_v39 = vld [vmem:[%s10697_s13 + $0x734] ss:$8 sps:$4 sm:$0xff]  }
 0x3d2   : > { %v2708_v33 = vpop.f32.mrf.mxu0  ;;  %v6741_v25 = vpop.f32.mrf.mxu1  ;;  %v6750_v49 = vadd.f32 %v9751_v57, %v11839_v35 }
 0x3d3   : > { %v8136_v51 = vmul.f32 0.0044444446, %v7958_v55  ;;  %v7963_v20 = vadd.f32 %v7962_v38, %v7408_v31  ;;  %v6742_v17 = vadd.f32 %v6741_v25, %v11839_v35  ;;  %v12579_v33 = vld [vmem:[#allocation43_spill] sm:$0xff] }
 0x3d4   : > { %v2711_v59 = vpop.f32.mrf.mxu0  ;;  %2902 = vmatmul.mubr.bf16.gmra.mxu0 %v10460_v62  ;;  %v9754_v46 = vpop.f32.mrf.mxu1  ;;  %9849 = vmatmul.mubr.msk.bf16.gmra.mxu1 %vm4210_vm0, %v11677_v58  ;;  %v7412_v48 = vmax.f32 %v6750_v49, 0.0 }
 0x3d5   : > { %v12131_v34 = vsel %vm8152_vm2, %v8136_v51, %v12042_v24  ;;  %v7964_v12 = vadd.f32 %v7963_v20, %v7409_v8  ;;  %v7410_v54 = vmax.f32 %v6742_v17, 0.0  ;;  %v3230_v61 = vadd.f32 %v3229_v23, %v2711_v59  ;;  %9852 = vmatprep.mubr.msk.bf16.mxu1 %vm4210_vm0, %v12576_v4  ;;  %2909 = vmatprep.mubr.bf16.mxu0 %v10465_v11  ;;  %v12580_v17 = vld [vmem:[#allocation46_spill] sm:$0xff] }
 0x3d6   : > { %v2713_v47 = vpop.f32.mrf.mxu0  ;;  %v6754_v63 = vpop.f32.mrf.mxu1  ;;  %v6763_v15 = vadd.f32 %v9754_v46, %v11839_v35 }
 0x3d7   : > { %v7965_v3 = vadd.f32 %v7964_v12, %v7410_v54  ;;  %v6755_v29 = vadd.f32 %v6754_v63, %v11839_v35  ;;  %v10469_v47 = vld [vmem:[%s10697_s13 + $0x730] ss:$8 sps:$4 sm:$0xff]  }
 0x3d8   : > { %v2714_v56 = vpop.f32.mrf.mxu0  ;;  %v9755_v58 = vpop.f32.mrf.mxu1  ;;  %v7415_v14 = vmax.f32 %v6763_v15, 0.0 }
 0x3d9   : > { %v7966_v24 = vadd.f32 %v7965_v3, %v7411_v43  ;;  %v3231_v40 = vadd.f32 %v3230_v61, %v2714_v56  ;;  %v7413_v2 = vmax.f32 %v6755_v29, 0.0  ;;  %v6766_v18 = vadd.f32 %v9755_v58, %v11839_v35  ;;  %v10476_v29 = vld [vmem:[%s10697_s13 + $0x744] ss:$8 sps:$4 sm:$0xff]   ;;  %v10503_v56 = vld [vmem:[%s12482_s5 + $0x50] sm:$0xff]  }
 0x3da   : > { %v2716_v5 = vpop.f32.mrf.mxu0  ;;  %v6757_v13 = vpop.f32.mrf.mxu1  ;;  %9384 = vmatprep.subr.bf16.mxu1 %v10503_v56 }
 0x3db   : > { %v7967_v53 = vadd.f32 %v7966_v24, %v7412_v48  ;;  %v6758_v41 = vadd.f32 %v6757_v13, %v11839_v35  ;;  %v7416_v21 = vmax.f32 %v6766_v18, 0.0  ;;  %v10504_v48 = vld [vmem:[%s12482_s5 + $0x10] sm:$0xff]  }
 0x3dc   : > { %v2719_v42 = vpop.f32.mrf.mxu0  ;;  %2910 = vmatmul.mubr.bf16.gmra.mxu0 %v10463_v19  ;;  %v9758_v37 = vpop.f32.mrf.mxu1  ;;  %9853 = vmatmul.mubr.msk.bf16.gmra.mxu1 %vm4210_vm0, %v12577_v27  ;;  %v12582_v27 = vld [vmem:[#allocation14_spill] sm:$0xff] }
 0x3dd   : > { %v7968_v1 = vadd.f32 %v7967_v53, %v7413_v2  ;;  %v7414_v36 = vmax.f32 %v6758_v41, 0.0  ;;  %v3232_v7 = vadd.f32 %v3231_v40, %v2719_v42  ;;  %9856 = vmatprep.mubr.msk.bf16.mxu1 %vm4210_vm0, %v12578_v16  ;;  %2917 = vmatprep.mubr.bf16.mxu0 %v10468_v28  ;;  %v6779_v55 = vadd.f32 %v9758_v37, %v11839_v35  ;;  %v12581_v2 = vld [vmem:[#allocation45_spill] sm:$0xff] }
 0x3de   : > { %v2721_v50 = vpop.f32.mrf.mxu0  ;;  %v6770_v10 = vpop.f32.mrf.mxu1  ;;  %9385 = vmatpush3.bf16.msra.mxu1 %v10504_v48 }
 0x3df   : > { %v7969_v60 = vadd.f32 %v7968_v1, %v7414_v36  ;;  %v6771_v22 = vadd.f32 %v6770_v10, %v11839_v35  ;;  %v7419_v46 = vmax.f32 %v6779_v55, 0.0 }
 0x3e0   : > { %v2722_v9 = vpop.f32.mrf.mxu0  ;;  %v9759_v45 = vpop.f32.mrf.mxu1 }
 0x3e1   : > { %v7970_v44 = vadd.f32 %v7969_v60, %v7415_v14  ;;  %v3233_v30 = vadd.f32 %v3232_v7, %v2722_v9  ;;  %v7417_v31 = vmax.f32 %v6771_v22, 0.0  ;;  %v6782_v51 = vadd.f32 %v9759_v45, %v11839_v35  ;;  %v10474_v14 = vld [vmem:[%s10697_s13 + $0x740] ss:$8 sps:$4 sm:$0xff]   ;;  %v10479_v45 = vld [vmem:[%s10697_s13 + $0x754] ss:$8 sps:$4 sm:$0xff]  }
 0x3e2   : > { %v2724_v57 = vpop.f32.mrf.mxu0  ;;  %v6773_v62 = vpop.f32.mrf.mxu1 }
 0x3e3   : > { %v7971_v38 = vadd.f32 %v7970_v44, %v7416_v21  ;;  %v6774_v23 = vadd.f32 %v6773_v62, %v11839_v35  ;;  %v7420_v63 = vmax.f32 %v6782_v51, 0.0 }
 0x3e4   : > { %v2727_v11 = vpop.f32.mrf.mxu0  ;;  %2918 = vmatmul.mubr.bf16.gmra.mxu0 %v10466_v32  ;;  %v9762_v26 = vpop.f32.mrf.mxu1  ;;  %9857 = vmatmul.mubr.msk.bf16.gmra.mxu1 %vm4210_vm0, %v12579_v33  ;;  %v12584_v33 = vld [vmem:[#allocation16_spill] sm:$0xff] }
 0x3e5   : > { %v7972_v25 = vadd.f32 %v7971_v38, %v7417_v31  ;;  %v7418_v8 = vmax.f32 %v6774_v23, 0.0  ;;  %v3234_v20 = vadd.f32 %v3233_v30, %v2727_v11  ;;  %9860 = vmatprep.mubr.msk.bf16.mxu1 %vm4210_vm0, %v12580_v17  ;;  %2925 = vmatprep.mubr.bf16.mxu0 %v10471_v39  ;;  %v6795_v24 = vadd.f32 %v9762_v26, %v11839_v35  ;;  %v12583_v31 = vld [vmem:[#allocation12_spill] sm:$0xff] }
 0x3e6   : > { %v2729_v49 = vpop.f32.mrf.mxu0  ;;  %v6786_v59 = vpop.f32.mrf.mxu1 }
 0x3e7   : > { %v7973_v12 = vadd.f32 %v7972_v25, %v7418_v8  ;;  %v6787_v54 = vadd.f32 %v6786_v59, %v11839_v35  ;;  %v7423_v36 = vmax.f32 %v6795_v24, 0.0  ;;  %v12585_v24 = vld [vmem:[#allocation13_spill] sm:$0xff] }
 0x3e8   : > { %v2730_v61 = vpop.f32.mrf.mxu0  ;;  %v9763_v4 = vpop.f32.mrf.mxu1 }
 0x3e9   : > { %v7974_v43 = vadd.f32 %v7973_v12, %v7419_v46  ;;  %v3235_v3 = vadd.f32 %v3234_v20, %v2730_v61  ;;  %v7421_v40 = vmax.f32 %v6787_v54, 0.0  ;;  %v6798_v41 = vadd.f32 %v9763_v4, %v11839_v35  ;;  %v10477_v12 = vld [vmem:[%s10697_s13 + $0x750] ss:$8 sps:$4 sm:$0xff]  }
 0x3ea   : > { %v2732_v58 = vpop.f32.mrf.mxu0  ;;  %v6789_v19 = vpop.f32.mrf.mxu1 }
 0x3eb   : > { %v7975_v28 = vadd.f32 %v7974_v43, %v7420_v63  ;;  %v6790_v5 = vadd.f32 %v6789_v19, %v11839_v35  ;;  %v7424_v60 = vmax.f32 %v6798_v41, 0.0 }
 0x3ec   : > { %v2735_v13 = vpop.f32.mrf.mxu0  ;;  %2926 = vmatmul.mubr.bf16.gmra.mxu0 %v10469_v47  ;;  %v9766_v15 = vpop.f32.mrf.mxu1  ;;  %9861 = vmatmul.mubr.msk.bf16.gmra.mxu1 %vm4210_vm0, %v12581_v2  ;;  %v10482_v47 = vld [vmem:[%s10697_s13 + $0x764] ss:$8 sps:$4 sm:$0xff]  }
 0x3ed   : > { %v7976_v53 = vadd.f32 %v7975_v28, %v7421_v40  ;;  %v7422_v42 = vmax.f32 %v6790_v5, 0.0  ;;  %v3236_v37 = vadd.f32 %v3235_v3, %v2735_v13  ;;  %9864 = vmatprep.mubr.msk.bf16.mxu1 %vm4210_vm0, %v12582_v27  ;;  %2933 = vmatprep.mubr.bf16.mxu0 %v10476_v29  ;;  %v6811_v44 = vadd.f32 %v9766_v15, %v11839_v35  ;;  %v12586_v13 = vld [vmem:[#allocation18_spill] sm:$0xff] }
 0x3ee   : > { %v2737_v1 = vpop.f32.mrf.mxu0  ;;  %v6802_v18 = vpop.f32.mrf.mxu1 }
 0x3ef   : > { %v7977_v7 = vadd.f32 %v7976_v53, %v7422_v42  ;;  %v6803_v16 = vadd.f32 %v6802_v18, %v11839_v35  ;;  %v7427_v8 = vmax.f32 %v6811_v44, 0.0  ;;  %v10480_v1 = vld [vmem:[%s10697_s13 + $0x760] ss:$8 sps:$4 sm:$0xff]  }
 0x3f0   : > { %v2738_v50 = vpop.f32.mrf.mxu0  ;;  %v9767_v10 = vpop.f32.mrf.mxu1 }
 0x3f1   : > { %v7978_v22 = vadd.f32 %v7977_v7, %v7423_v36  ;;  %v3237_v9 = vadd.f32 %v3236_v37, %v2738_v50  ;;  %v7425_v30 = vmax.f32 %v6803_v16, 0.0  ;;  %v6814_v23 = vadd.f32 %v9767_v10, %v11839_v35  ;;  %v10485_v7 = vld [vmem:[%s10697_s13 + $0x774] ss:$8 sps:$4 sm:$0xff]  }
 0x3f2   : > { %v2740_v32 = vpop.f32.mrf.mxu0  ;;  %v6805_v21 = vpop.f32.mrf.mxu1 }
 0x3f3   : > { %v7979_v39 = vadd.f32 %v7978_v22, %v7424_v60  ;;  %v6806_v57 = vadd.f32 %v6805_v21, %v11839_v35  ;;  %v7428_v54 = vmax.f32 %v6814_v23, 0.0  ;;  %v12587_v32 = vld [vmem:[#allocation15_spill] sm:$0xff] }
 0x3f4   : > { %v2743_v62 = vpop.f32.mrf.mxu0  ;;  %2934 = vmatmul.mubr.bf16.gmra.mxu0 %v10474_v14  ;;  %v9770_v55 = vpop.f32.mrf.mxu1  ;;  %9865 = vmatmul.mubr.msk.bf16.gmra.mxu1 %vm4210_vm0, %v12583_v31 }
 0x3f5   : > { %v7980_v38 = vadd.f32 %v7979_v39, %v7425_v30  ;;  %v7426_v11 = vmax.f32 %v6806_v57, 0.0  ;;  %v3238_v26 = vadd.f32 %v3237_v9, %v2743_v62  ;;  %9868 = vmatprep.mubr.msk.bf16.mxu1 %vm4210_vm0, %v12584_v33  ;;  %2941 = vmatprep.mubr.bf16.mxu0 %v10479_v45  ;;  %v6827_v49 = vadd.f32 %v9770_v55, %v11839_v35  ;;  %v12588_v57 = vld [vmem:[#allocation20_spill] sm:$0xff] }
 0x3f6   : > { %v2745_v25 = vpop.f32.mrf.mxu0  ;;  %v6818_v51 = vpop.f32.mrf.mxu1 }
 0x3f7   : > { %v7981_v20 = vadd.f32 %v7980_v38, %v7426_v11  ;;  %v6819_v17 = vadd.f32 %v6818_v51, %v11839_v35  ;;  %v7431_v58 = vmax.f32 %v6827_v49, 0.0  ;;  %v10483_v25 = vld [vmem:[%s10697_s13 + $0x770] ss:$8 sps:$4 sm:$0xff]   ;;  %v10488_v49 = vld [vmem:[%s10697_s13 + $0x784] ss:$8 sps:$4 sm:$0xff]  }
 0x3f8   : > { %v2746_v59 = vpop.f32.mrf.mxu0  ;;  %v9771_v46 = vpop.f32.mrf.mxu1 }
 0x3f9   : > { %v7982_v61 = vadd.f32 %v7981_v20, %v7427_v8  ;;  %v3239_v4 = vadd.f32 %v3238_v26, %v2746_v59  ;;  %v7429_v3 = vmax.f32 %v6819_v17, 0.0  ;;  %v7732_v41 = vsel %vm7612_vm4, %v7431_v58, 0.0 }
 0x3fa   : > { %v2748_v63 = vpop.f32.mrf.mxu0  ;;  %v6821_v43 = vpop.f32.mrf.mxu1 }
 0x3fb   : > { %v7983_v29 = vadd.f32 %v7982_v61, %v7428_v54  ;;  %v6822_v56 = vadd.f32 %v6821_v43, %v11839_v35 }
 0x3fc   : > { %v2751_v19 = vpop.f32.mrf.mxu0  ;;  %2942 = vmatmul.mubr.bf16.gmra.mxu0 %v10477_v12  ;;  %v9774_v48 = vpop.f32.mrf.mxu1  ;;  %9869 = vmatmul.mubr.msk.bf16.gmra.mxu1 %vm4210_vm0, %v12585_v24  ;;  %v12590_v24 = vld [vmem:[#allocation22_spill] sm:$0xff] }
 0x3fd   : > { %v7984_v40 = vadd.f32 %v7983_v29, %v7429_v3  ;;  %v7430_v28 = vmax.f32 %v6822_v56, 0.0  ;;  %v3240_v5 = vadd.f32 %v3239_v4, %v2751_v19  ;;  %9872 = vmatprep.mubr.msk.bf16.mxu1 %vm4210_vm0, %v12586_v13  ;;  %2949 = vmatprep.mubr.bf16.mxu0 %v10482_v47  ;;  %v6843_v14 = vadd.f32 %v9774_v48, %v11839_v35  ;;  %v12589_v29 = vld [vmem:[#allocation17_spill] sm:$0xff] }
 0x3fe   : > { %v2753_v15 = vpop.f32.mrf.mxu0  ;;  %v6834_v2 = vpop.f32.mrf.mxu1 }
 0x3ff   : > { %v7985_v53 = vadd.f32 %v7984_v40, %v7430_v28  ;;  %v6835_v42 = vadd.f32 %v6834_v2, %v11839_v35  ;;  %v7435_v38 = vmax.f32 %v6843_v14, 0.0 }
 0x400   : > { %v2754_v37 = vpop.f32.mrf.mxu0  ;;  %v9775_v27 = vpop.f32.mrf.mxu1 }
 0x401   : > { %v7986_v18 = vadd.f32 %v7985_v53, %v7732_v41  ;;  %v3241_v36 = vadd.f32 %v3240_v5, %v2754_v37  ;;  %v7433_v22 = vmax.f32 %v6835_v42, 0.0  ;;  %v6846_v44 = vadd.f32 %v9775_v27, %v11839_v35  ;;  %v10486_v42 = vld [vmem:[%s10697_s13 + $0x780] ss:$8 sps:$4 sm:$0xff]  }
 0x402   : > { %v2756_v16 = vpop.f32.mrf.mxu0  ;;  %v6837_v50 = vpop.f32.mrf.mxu1 }
 0x403   : > { %v7988_v10 = vrot.slane %v7986_v18, 4  ;;  %v6838_v60 = vadd.f32 %v6837_v50, %v11839_v35  ;;  %v7436_v8 = vmax.f32 %v6846_v44, 0.0 }
 0x404   : > { %v2759_v9 = vpop.f32.mrf.mxu0  ;;  %2950 = vmatmul.mubr.bf16.gmra.mxu0 %v10480_v1  ;;  %v9778_v45 = vpop.f32.mrf.mxu1  ;;  %9873 = vmatmul.mubr.msk.bf16.gmra.mxu1 %vm4210_vm0, %v12587_v32  ;;  %v12591_v32 = vld [vmem:[#allocation19_spill] sm:$0xff] }
 0x405   : > { %v7989_v21 = vadd.f32 %v7988_v10, %v7986_v18  ;;  %v7434_v30 = vmax.f32 %v6838_v60, 0.0  ;;  %v3242_v39 = vadd.f32 %v3241_v36, %v2759_v9  ;;  %9876 = vmatprep.mubr.msk.bf16.mxu1 %vm4210_vm0, %v12588_v57  ;;  %2957 = vmatprep.mubr.bf16.mxu0 %v10485_v7  ;;  %v6859_v59 = vadd.f32 %v9778_v45, %v11839_v35  ;;  %v10491_v18 = vld [vmem:[%s10697_s13 + $0x794] ss:$8 sps:$4 sm:$0xff]   ;;  %v12592_v57 = vld [vmem:[#allocation24_spill] sm:$0xff] }
 0x406   : > { %v2761_v62 = vpop.f32.mrf.mxu0  ;;  %v6850_v55 = vpop.f32.mrf.mxu1 }
 0x407   : > { %v7990_v31 = vrot.slane %v7989_v21, 2  ;;  %v7994_v23 = vadd.f32 %v7434_v30, %v7433_v22  ;;  %v6851_v11 = vadd.f32 %v6850_v55, %v11839_v35  ;;  %v7439_v13 = vmax.f32 %v6859_v59, 0.0 }
 0x408   : > { %v2762_v26 = vpop.f32.mrf.mxu0  ;;  %v9779_v33 = vpop.f32.mrf.mxu1 }
 0x409   : > { %v7991_v51 = vadd.f32 %v7990_v31, %v7989_v21  ;;  %v7995_v20 = vadd.f32 %v7994_v23, %v7435_v38  ;;  %v3243_v17 = vadd.f32 %v3242_v39, %v2762_v26  ;;  %v7437_v61 = vmax.f32 %v6851_v11, 0.0 }
 0x40a   : > { %v2764_v46 = vpop.f32.mrf.mxu0  ;;  %v6853_v12 = vpop.f32.mrf.mxu1  ;;  %v6862_v63 = vadd.f32 %v9779_v33, %v11839_v35  ;;  %v10489_v33 = vld [vmem:[%s10697_s13 + $0x790] ss:$8 sps:$4 sm:$0xff]  }
 0x40b   : > { %v7992_v54 = vrot.slane %v7991_v51, 1  ;;  %v7996_v4 = vadd.f32 %v7995_v20, %v7436_v8  ;;  %v6854_v47 = vadd.f32 %v6853_v12, %v11839_v35 }
 0x40c   : > { %v2767_v43 = vpop.f32.mrf.mxu0  ;;  %2958 = vmatmul.mubr.bf16.gmra.mxu0 %v10483_v25  ;;  %v9782_v3 = vpop.f32.mrf.mxu1  ;;  %9877 = vmatmul.mubr.msk.bf16.gmra.mxu1 %vm4210_vm0, %v12589_v29  ;;  %v7440_v37 = vmax.f32 %v6862_v63, 0.0 }
 0x40d   : > { %v7993_v56 = vadd.f32 %v7992_v54, %v7991_v51  ;;  %v7997_v58 = vadd.f32 %v7996_v4, %v7437_v61  ;;  %v7438_v19 = vmax.f32 %v6854_v47, 0.0  ;;  %v3244_v48 = vadd.f32 %v3243_v17, %v2767_v43  ;;  %9880 = vmatprep.mubr.msk.bf16.mxu1 %vm4210_vm0, %v12590_v24  ;;  %2965 = vmatprep.mubr.bf16.mxu0 %v10488_v49  ;;  %v10494_v17 = vld [vmem:[%s10697_s13 + $0x7a4] ss:$8 sps:$4 sm:$0xff]  }
 0x40e   : > { %v2769_v40 = vpop.f32.mrf.mxu0  ;;  %v6866_v28 = vpop.f32.mrf.mxu1  ;;  %v6875_v36 = vadd.f32 %v9782_v3, %v11839_v35  ;;  %v12593_v3 = vld [vmem:[#allocation21_spill] sm:$0xff] }
 0x40f   : > { %v8137_v5 = vmul.f32 0.0044444446, %v7993_v56  ;;  %v7998_v15 = vadd.f32 %v7997_v58, %v7438_v19  ;;  %v6867_v2 = vadd.f32 %v6866_v28, %v11839_v35 }
 0x410   : > { %v2770_v53 = vpop.f32.mrf.mxu0  ;;  %v9783_v41 = vpop.f32.mrf.mxu1  ;;  %v7443_v55 = vmax.f32 %v6875_v36, 0.0 }
 0x411   : > { %v7999_v27 = vadd.f32 %v7998_v15, %v7439_v13  ;;  %v3245_v1 = vadd.f32 %v3244_v48, %v2770_v53  ;;  %v12218_v50 = vsel %vm8154_vm3, %v8137_v5, %v12131_v34  ;;  %v7441_v10 = vmax.f32 %v6867_v2, 0.0  ;;  %v12594_v48 = vld [vmem:[#allocation23_spill] sm:$0xff] }
 0x412   : > { %v2772_v7 = vpop.f32.mrf.mxu0  ;;  %v6869_v16 = vpop.f32.mrf.mxu1  ;;  %v6878_v30 = vadd.f32 %v9783_v41, %v11839_v35  ;;  %v10492_v41 = vld [vmem:[%s10697_s13 + $0x7a0] ss:$8 sps:$4 sm:$0xff]  }
 0x413   : > { %v8000_v14 = vadd.f32 %v7999_v27, %v7440_v37  ;;  %v3246_v60 = vrot.slane %v3245_v1, 4  ;;  %v6870_v22 = vadd.f32 %v6869_v16, %v11839_v35 }
 0x414   : > { %v2775_v9 = vpop.f32.mrf.mxu0  ;;  %2966 = vmatmul.mubr.bf16.gmra.mxu0 %v10486_v42  ;;  %v9786_v45 = vpop.f32.mrf.mxu1  ;;  %9881 = vmatmul.mubr.msk.bf16.gmra.mxu1 %vm4210_vm0, %v12591_v32  ;;  %v7444_v51 = vmax.f32 %v6878_v30, 0.0 }
 0x415   : > { %v8001_v21 = vadd.f32 %v8000_v14, %v7441_v10  ;;  %v3247_v44 = vadd.f32 %v3246_v60, %v3245_v1  ;;  %v7442_v39 = vmax.f32 %v6870_v22, 0.0  ;;  %9884 = vmatprep.mubr.msk.bf16.mxu1 %vm4210_vm0, %v12592_v57  ;;  %2973 = vmatprep.mubr.bf16.mxu0 %v10491_v18  ;;  %v6891_v49 = vadd.f32 %v9786_v45, %v11839_v35  ;;  %v10499_v1 = vld [vmem:[%s10697_s13 + $0x7b4] ss:$8 sps:$4 sm:$0xff]  }
 0x416   : > { %v2777_v34 = vpop.f32.mrf.mxu0  ;;  %v6882_v62 = vpop.f32.mrf.mxu1  ;;  %v12595_v45 = vld [vmem:[#allocation9_spill] sm:$0xff] }
 0x417   : > { %v3248_v31 = vrot.slane %v3247_v44, 2  ;;  %v8002_v38 = vadd.f32 %v8001_v21, %v7442_v39  ;;  %v6883_v23 = vadd.f32 %v6882_v62, %v11839_v35  ;;  %v7447_v5 = vmax.f32 %v6891_v49, 0.0  ;;  %v10506_v39 = vld [vmem:[%s12482_s5 + $0x8] sm:$0xff]  }
 0x418   : > { %v2778_v11 = vpop.f32.mrf.mxu0  ;;  %v9787_v26 = vpop.f32.mrf.mxu1 }
 0x419   : > { %v3249_v25 = vadd.f32 %v3248_v31, %v3247_v44  ;;  %v8003_v8 = vadd.f32 %v8002_v38, %v7443_v55  ;;  %v3252_v20 = vadd.f32 %v2778_v11, %v2775_v9  ;;  %v7445_v54 = vmax.f32 %v6883_v23, 0.0  ;;  %v10497_v11 = vld [vmem:[%s10697_s13 + $0x7b0] ss:$8 sps:$4 sm:$0xff]  }
 0x41a   : > { %v2780_v59 = vpop.f32.mrf.mxu0  ;;  %v6885_v46 = vpop.f32.mrf.mxu1  ;;  %v6894_v47 = vadd.f32 %v9787_v26, %v11839_v35 }
 0x41b   : > { %v3250_v12 = vrot.slane %v3249_v25, 1  ;;  %v8004_v61 = vadd.f32 %v8003_v8, %v7444_v51  ;;  %v6886_v4 = vadd.f32 %v6885_v46, %v11839_v35  ;;  %v10502_v51 = vld [vmem:[%s10697_s13 + $0x7c4] ss:$8 sps:$4 sm:$0xff]  }
 0x41c   : > { %v2783_v63 = vpop.f32.mrf.mxu0  ;;  %2974 = vmatmul.mubr.bf16.gmra.mxu0 %v10489_v33  ;;  %v9790_v43 = vpop.f32.mrf.mxu1  ;;  %9885 = vmatmul.mubr.msk.bf16.gmra.mxu1 %vm4210_vm0, %v12593_v3  ;;  %v7448_v42 = vmax.f32 %v6894_v47, 0.0 }
 0x41d   : > { %v3251_v29 = vadd.f32 %v3250_v12, %v3249_v25  ;;  %v8005_v56 = vadd.f32 %v8004_v61, %v7445_v54  ;;  %v7446_v58 = vmax.f32 %v6886_v4, 0.0  ;;  %v3253_v19 = vadd.f32 %v3252_v20, %v2783_v63  ;;  %9888 = vmatprep.mubr.msk.bf16.mxu1 %vm4210_vm0, %v12594_v48  ;;  %2981 = vmatprep.mubr.bf16.mxu0 %v10494_v17 }
 0x41e   : > { %v2785_v24 = vpop.f32.mrf.mxu0  ;;  %v6898_v40 = vpop.f32.mrf.mxu1  ;;  %v6907_v16 = vadd.f32 %v9790_v43, %v11839_v35 }
 0x41f   : > { %v3331_v28 = vmul.f32 0.00390625, %v3251_v29  ;;  %v8006_v13 = vadd.f32 %v8005_v56, %v7446_v58  ;;  %v6899_v15 = vadd.f32 %v6898_v40, %v11839_v35  ;;  %v10500_v24 = vld [vmem:[%s10697_s13 + $0x7c0] ss:$8 sps:$4 sm:$0xff]   ;;  %s8371_s13 = scalar_lea.sflag [#allocation3], %s290_s18 }
 0x420   : > { %v2786_v2 = vpop.f32.mrf.mxu0  ;;  %v9791_v53 = vpop.f32.mrf.mxu1  ;;  %v7451_v62 = vmax.f32 %v6907_v16, 0.0 }
 0x421   : > { %v8007_v37 = vadd.f32 %v8006_v13, %v7447_v5  ;;  %v3254_v27 = vadd.f32 %v3253_v19, %v2786_v2  ;;  %v12241_v7 = vsel %vm8158_vm6, %v3331_v28, %v12054_v0  ;;  %v7449_v10 = vmax.f32 %v6899_v15, 0.0  ;;  %v10505_v0 = vld [vmem:[%s12482_s5 + $0x48] sm:$0xff]  }
 0x422   : > { %v2788_v18 = vpop.f32.mrf.mxu0  ;;  %v6901_v36 = vpop.f32.mrf.mxu1  ;;  %v6910_v21 = vadd.f32 %v9791_v53, %v11839_v35  ;;  %9386 = vmatprep.subr.bf16.mxu1 %v10505_v0 }
 0x423   : > { %v8008_v14 = vadd.f32 %v8007_v37, %v7448_v42  ;;  %v6902_v60 = vadd.f32 %v6901_v36, %v11839_v35  ;;  %9387 = vmatpush3.bf16.msra.mxu1 %v10506_v39 }
 0x424   : > { %v2791_v22 = vpop.f32.mrf.mxu0  ;;  %2982 = vmatmul.mubr.bf16.gmra.mxu0 %v10492_v41  ;;  %v9794_v9 = vpop.f32.mrf.mxu1  ;;  %9889 = vmatmul.mubr.msk.bf16.gmra.mxu1 %vm4210_vm0, %v12595_v45  ;;  %v7452_v26 = vmax.f32 %v6910_v21, 0.0 }
 0x425   : > { %v8009_v32 = vadd.f32 %v8008_v14, %v7449_v10  ;;  %v7450_v44 = vmax.f32 %v6902_v60, 0.0  ;;  %v3255_v30 = vadd.f32 %v3254_v27, %v2791_v22  ;;  %2989 = vmatprep.mubr.bf16.mxu0 %v10499_v1  ;;  %v6923_v17 = vadd.f32 %v9794_v9, %v11839_v35 }
 0x426   : > { %v2793_v57 = vpop.f32.mrf.mxu0  ;;  %v6914_v34 = vpop.f32.mrf.mxu1 }
 0x427   : > { %v8010_v55 = vadd.f32 %v8009_v32, %v7450_v44  ;;  %v6915_v31 = vadd.f32 %v6914_v34, %v11839_v35  ;;  %v7455_v29 = vmax.f32 %v6923_v17, 0.0 }
 0x428   : > { %v2794_v38 = vpop.f32.mrf.mxu0  ;;  %v9795_v23 = vpop.f32.mrf.mxu1 }
 0x429   : > { %v8011_v33 = vadd.f32 %v8010_v55, %v7451_v62  ;;  %v3256_v25 = vadd.f32 %v3255_v30, %v2794_v38  ;;  %v7453_v49 = vmax.f32 %v6915_v31, 0.0  ;;  %v6926_v4 = vadd.f32 %v9795_v23, %v11839_v35 }
 0x42a   : > { %v2796_v8 = vpop.f32.mrf.mxu0  ;;  %v6917_v20 = vpop.f32.mrf.mxu1 }
 0x42b   : > { %v8012_v59 = vadd.f32 %v8011_v33, %v7452_v26  ;;  %v6918_v46 = vadd.f32 %v6917_v20, %v11839_v35  ;;  %v7456_v40 = vmax.f32 %v6926_v4, 0.0 }
 0x42c   : > { %v2799_v12 = vpop.f32.mrf.mxu0  ;;  %2990 = vmatmul.mubr.bf16.gmra.mxu0 %v10497_v11  ;;  %v9798_v54 = vpop.f32.mrf.mxu1 }
 0x42d   : > { %v8013_v61 = vadd.f32 %v8012_v59, %v7453_v49  ;;  %v7454_v47 = vmax.f32 %v6918_v46, 0.0  ;;  %v3257_v63 = vadd.f32 %v3256_v25, %v2799_v12  ;;  %2997 = vmatprep.mubr.bf16.mxu0 %v10502_v51  ;;  %v6939_v2 = vadd.f32 %v9798_v54, %v11839_v35 }
 0x42e   : > { %v2801_v43 = vpop.f32.mrf.mxu0  ;;  %v6930_v3 = vpop.f32.mrf.mxu1 }
 0x42f   : > { %v8014_v56 = vadd.f32 %v8013_v61, %v7454_v47  ;;  %v6931_v58 = vadd.f32 %v6930_v3, %v11839_v35  ;;  %v7459_v60 = vmax.f32 %v6939_v2, 0.0 }
 0x430   : > { %v2802_v19 = vpop.f32.mrf.mxu0  ;;  %v9799_v48 = vpop.f32.mrf.mxu1 }
 0x431   : > { %v8015_v28 = vadd.f32 %v8014_v56, %v7455_v29  ;;  %v3258_v5 = vadd.f32 %v3257_v63, %v2802_v19  ;;  %v7457_v53 = vmax.f32 %v6931_v58, 0.0  ;;  %v6942_v37 = vadd.f32 %v9799_v48, %v11839_v35 }
 0x432   : > { %v2804_v13 = vpop.f32.mrf.mxu0  ;;  %v6933_v15 = vpop.f32.mrf.mxu1 }
 0x433   : > { %v8016_v41 = vadd.f32 %v8015_v28, %v7456_v40  ;;  %v6934_v42 = vadd.f32 %v6933_v15, %v11839_v35  ;;  %v7460_v32 = vmax.f32 %v6942_v37, 0.0 }
 0x434   : > { %v2807_v27 = vpop.f32.mrf.mxu0  ;;  %2998 = vmatmul.mubr.bf16.gmra.mxu0 %v10500_v24  ;;  %v9802_v1 = vpop.f32.mrf.mxu1 }
 0x435   : > { %v8017_v18 = vadd.f32 %v8016_v41, %v7457_v53  ;;  %v7458_v36 = vmax.f32 %v6934_v42, 0.0  ;;  %v3259_v16 = vadd.f32 %v3258_v5, %v2807_v27  ;;  %v6955_v9 = vadd.f32 %v9802_v1, %v11839_v35 }
 0x436   : > { %v2809_v10 = vpop.f32.mrf.mxu0  ;;  %v6946_v14 = vpop.f32.mrf.mxu1 }
 0x437   : > { %v8018_v22 = vadd.f32 %v8017_v18, %v7458_v36  ;;  %v6947_v45 = vadd.f32 %v6946_v14, %v11839_v35  ;;  %v7463_v55 = vmax.f32 %v6955_v9, 0.0 }
 0x438   : > { %v2810_v21 = vpop.f32.mrf.mxu0  ;;  %v9803_v44 = vpop.f32.mrf.mxu1 }
 0x439   : > { %v8019_v30 = vadd.f32 %v8018_v22, %v7459_v60  ;;  %v7461_v0 = vmax.f32 %v6947_v45, 0.0  ;;  %v3260_v39 = vadd.f32 %v3259_v16, %v2810_v21  ;;  %v6958_v57 = vadd.f32 %v9803_v44, %v11839_v35 }
 0x43a   : > { %v2812_v34 = vpop.f32.mrf.mxu0  ;;  %v6949_v62 = vpop.f32.mrf.mxu1 }
 0x43b   : > { %v7762_v31 = vsel %vm7612_vm4, %v7461_v0, 0.0  ;;  %v8020_v38 = vadd.f32 %v8019_v30, %v7460_v32  ;;  %v7464_v23 = vmax.f32 %v6958_v57, 0.0 }
 0x43c   : > { %v2815_v11 = vpop.f32.mrf.mxu0  ;;  %v9806_v26 = vpop.f32.mrf.mxu1 }
 0x43d   : > { %v8021_v33 = vadd.f32 %v8020_v38, %v7762_v31  ;;  %v8029_v25 = vadd.f32 %v7464_v23, %v7463_v55  ;;  %v3261_v51 = vadd.f32 %v3260_v39, %v2815_v11  ;;  %v6971_v43 = vadd.f32 %v9806_v26, %v11839_v35 }
 0x43e   : > { %v2817_v8 = vpop.f32.mrf.mxu0  ;;  %v6962_v20 = vpop.f32.mrf.mxu1 }
 0x43f   : > { %v8023_v17 = vrot.slane %v8021_v33, 4  ;;  %v6963_v49 = vadd.f32 %v6962_v20, %v11839_v35  ;;  %v7467_v15 = vmax.f32 %v6971_v43, 0.0 }
 0x440   : > { %v2818_v59 = vpop.f32.mrf.mxu0  ;;  %v9807_v46 = vpop.f32.mrf.mxu1 }
 0x441   : > { %v8024_v12 = vadd.f32 %v8023_v17, %v8021_v33  ;;  %v7465_v54 = vmax.f32 %v6963_v49, 0.0  ;;  %v3262_v61 = vadd.f32 %v3261_v51, %v2818_v59  ;;  %v6974_v48 = vadd.f32 %v9807_v46, %v11839_v35 }
 0x442   : > { %v2820_v4 = vpop.f32.mrf.mxu0  ;;  %v6965_v47 = vpop.f32.mrf.mxu1 }
 0x443   : > { %v8025_v63 = vrot.slane %v8024_v12, 2  ;;  %v8030_v3 = vadd.f32 %v8029_v25, %v7465_v54  ;;  %v6966_v29 = vadd.f32 %v6965_v47, %v11839_v35  ;;  %v7468_v27 = vmax.f32 %v6974_v48, 0.0 }
 0x444   : > { %v2823_v56 = vpop.f32.mrf.mxu0  ;;  %v9810_v58 = vpop.f32.mrf.mxu1 }
 0x445   : > { %v8026_v19 = vadd.f32 %v8025_v63, %v8024_v12  ;;  %v7466_v24 = vmax.f32 %v6966_v29, 0.0  ;;  %v3263_v40 = vadd.f32 %v3262_v61, %v2823_v56  ;;  %v6987_v36 = vadd.f32 %v9810_v58, %v11839_v35 }
 0x446   : > { %v2825_v28 = vpop.f32.mrf.mxu0  ;;  %v6978_v5 = vpop.f32.mrf.mxu1 }
 0x447   : > { %v8027_v13 = vrot.slane %v8026_v19, 1  ;;  %v8031_v2 = vadd.f32 %v8030_v3, %v7466_v24  ;;  %v6979_v53 = vadd.f32 %v6978_v5, %v11839_v35  ;;  %v7471_v62 = vmax.f32 %v6987_v36, 0.0 }
 0x448   : > { %v2826_v41 = vpop.f32.mrf.mxu0  ;;  %v9811_v42 = vpop.f32.mrf.mxu1 }
 0x449   : > { %v8028_v37 = vadd.f32 %v8027_v13, %v8026_v19  ;;  %v8032_v1 = vadd.f32 %v8031_v2, %v7467_v15  ;;  %v3264_v18 = vadd.f32 %v3263_v40, %v2826_v41  ;;  %v7469_v60 = vmax.f32 %v6979_v53, 0.0 }
 0x44a   : > { %v2828_v16 = vpop.f32.mrf.mxu0  ;;  %v6981_v10 = vpop.f32.mrf.mxu1  ;;  %v6990_v44 = vadd.f32 %v9811_v42, %v11839_v35 }
 0x44b   : > { %v8138_v14 = vmul.f32 0.0044444446, %v8028_v37  ;;  %v8033_v22 = vadd.f32 %v8032_v1, %v7468_v27  ;;  %v6982_v9 = vadd.f32 %v6981_v10, %v11839_v35 }
 0x44c   : > { %v2831_v45 = vpop.f32.mrf.mxu0  ;;  %v9814_v32 = vpop.f32.mrf.mxu1  ;;  %v7472_v11 = vmax.f32 %v6990_v44, 0.0 }
 0x44d   : > { %v8034_v21 = vadd.f32 %v8033_v22, %v7469_v60  ;;  %v7470_v30 = vmax.f32 %v6982_v9, 0.0  ;;  %v3265_v0 = vadd.f32 %v3264_v18, %v2831_v45  ;;  %v12280_v34 = vsel %vm8156_vm5, %v8138_v14, %v12218_v50 }
 0x44e   : > { %v2833_v39 = vpop.f32.mrf.mxu0  ;;  %v6994_v57 = vpop.f32.mrf.mxu1  ;;  %v7003_v8 = vadd.f32 %v9814_v32, %v11839_v35  ;;  %v10507_v32 = vld [vmem:[%s12482_s5 + $0x40] sm:$0xff]  }
 0x44f   : > { %v8035_v55 = vadd.f32 %v8034_v21, %v7470_v30  ;;  %v6995_v31 = vadd.f32 %v6994_v57, %v11839_v35  ;;  %v10508_v21 = vld [vmem:[%s12482_s5] sm:$0xff]   ;;  %9388 = vmatprep.subr.bf16.mxu1 %v10507_v32 }
 0x450   : > { %v2834_v38 = vpop.f32.mrf.mxu0  ;;  %v9815_v23 = vpop.f32.mrf.mxu1  ;;  %v7475_v63 = vmax.f32 %v7003_v8, 0.0  ;;  %9389 = vmatpush3.bf16.msra.mxu1 %v10508_v21 }
 0x451   : > { %v8036_v26 = vadd.f32 %v8035_v55, %v7471_v62  ;;  %v3266_v33 = vadd.f32 %v3265_v0, %v2834_v38  ;;  %v7473_v20 = vmax.f32 %v6995_v31, 0.0  ;;  %v7006_v12 = vadd.f32 %v9815_v23, %v11839_v35 }
 0x452   : > { %v2836_v25 = vpop.f32.mrf.mxu0  ;;  %v6997_v51 = vpop.f32.mrf.mxu1 }
 0x453   : > { %v8037_v17 = vadd.f32 %v8036_v26, %v7472_v11  ;;  %v6998_v49 = vadd.f32 %v6997_v51, %v11839_v35  ;;  %v7476_v58 = vmax.f32 %v7006_v12, 0.0 }
 0x454   : > { %v2839_v59 = vpop.f32.mrf.mxu0  ;;  %v9818_v50 = vpop.f32.mrf.mxu1 }
 0x455   : > { %v8038_v46 = vadd.f32 %v8037_v17, %v7473_v20  ;;  %v7474_v54 = vmax.f32 %v6998_v49, 0.0  ;;  %v3267_v61 = vadd.f32 %v3266_v33, %v2839_v59  ;;  %v7019_v28 = vadd.f32 %v9818_v50, %v11839_v35 }
 0x456   : > { %v2841_v4 = vpop.f32.mrf.mxu0  ;;  %v7010_v47 = vpop.f32.mrf.mxu1 }
 0x457   : > { %v8039_v43 = vadd.f32 %v8038_v46, %v7474_v54  ;;  %v7011_v3 = vadd.f32 %v7010_v47, %v11839_v35  ;;  %v7479_v36 = vmax.f32 %v7019_v28, 0.0 }
 0x458   : > { %v2842_v29 = vpop.f32.mrf.mxu0  ;;  %v9819_v56 = vpop.f32.mrf.mxu1 }
 0x459   : > { %v8040_v19 = vadd.f32 %v8039_v43, %v7475_v63  ;;  %v3268_v48 = vadd.f32 %v3267_v61, %v2842_v29  ;;  %v7477_v5 = vmax.f32 %v7011_v3, 0.0  ;;  %v7022_v42 = vadd.f32 %v9819_v56, %v11839_v35 }
 0x45a   : > { %v2844_v24 = vpop.f32.mrf.mxu0  ;;  %v7013_v40 = vpop.f32.mrf.mxu1 }
 0x45b   : > { %v8041_v13 = vadd.f32 %v8040_v19, %v7476_v58  ;;  %v7014_v15 = vadd.f32 %v7013_v40, %v11839_v35  ;;  %v7480_v22 = vmax.f32 %v7022_v42, 0.0 }
 0x45c   : > { %v2847_v2 = vpop.f32.mrf.mxu0  ;;  %v9822_v53 = vpop.f32.mrf.mxu1 }
 0x45d   : > { %v8042_v41 = vadd.f32 %v8041_v13, %v7477_v5  ;;  %v7478_v37 = vmax.f32 %v7014_v15, 0.0  ;;  %v3269_v27 = vadd.f32 %v3268_v48, %v2847_v2  ;;  %v7035_v0 = vadd.f32 %v9822_v53, %v11839_v35 }
 0x45e   : > { %v2849_v1 = vpop.f32.mrf.mxu0  ;;  %v7026_v18 = vpop.f32.mrf.mxu1 }
 0x45f   : > { %v8043_v16 = vadd.f32 %v8042_v41, %v7478_v37  ;;  %v7027_v10 = vadd.f32 %v7026_v18, %v11839_v35  ;;  %v7483_v51 = vmax.f32 %v7035_v0, 0.0 }
 0x460   : > { %v2850_v14 = vpop.f32.mrf.mxu0  ;;  %v9823_v60 = vpop.f32.mrf.mxu1 }
 0x461   : > { %v8044_v9 = vadd.f32 %v8043_v16, %v7479_v36  ;;  %v3270_v45 = vadd.f32 %v3269_v27, %v2850_v14  ;;  %v7481_v39 = vmax.f32 %v7027_v10, 0.0  ;;  %v7038_v23 = vadd.f32 %v9823_v60, %v11839_v35 }
 0x462   : > { %v2852_v44 = vpop.f32.mrf.mxu0  ;;  %v7029_v30 = vpop.f32.mrf.mxu1 }
 0x463   : > { %v8045_v57 = vadd.f32 %v8044_v9, %v7480_v22  ;;  %v7030_v62 = vadd.f32 %v7029_v30, %v11839_v35  ;;  %v7484_v59 = vmax.f32 %v7038_v23, 0.0 }
 0x464   : > { %v2855_v55 = vpop.f32.mrf.mxu0  ;;  %v9826_v31 = vpop.f32.mrf.mxu1 }
 0x465   : > { %v8046_v38 = vadd.f32 %v8045_v57, %v7481_v39  ;;  %v7482_v11 = vmax.f32 %v7030_v62, 0.0  ;;  %v3271_v26 = vadd.f32 %v3270_v45, %v2855_v55  ;;  %v7051_v61 = vadd.f32 %v9826_v31, %v11839_v35 }
 0x466   : > { %v2857_v33 = vpop.f32.mrf.mxu0  ;;  %v7042_v25 = vpop.f32.mrf.mxu1 }
 0x467   : > { %v8047_v8 = vadd.f32 %v8046_v38, %v7482_v11  ;;  %v7043_v20 = vadd.f32 %v7042_v25, %v11839_v35  ;;  %v7487_v40 = vmax.f32 %v7051_v61, 0.0 }
 0x468   : > { %v2858_v17 = vpop.f32.mrf.mxu0  ;;  %v9827_v49 = vpop.f32.mrf.mxu1 }
 0x469   : > { %v8048_v50 = vadd.f32 %v8047_v8, %v7483_v51  ;;  %v3272_v46 = vadd.f32 %v3271_v26, %v2858_v17  ;;  %v7485_v4 = vmax.f32 %v7043_v20, 0.0  ;;  %v7054_v56 = vadd.f32 %v9827_v49, %v11839_v35 }
 0x46a   : > { %v2860_v12 = vpop.f32.mrf.mxu0  ;;  %v7045_v54 = vpop.f32.mrf.mxu1 }
 0x46b   : > { %v8049_v47 = vadd.f32 %v8048_v50, %v7484_v59  ;;  %v7046_v63 = vadd.f32 %v7045_v54, %v11839_v35  ;;  %v7488_v53 = vmax.f32 %v7054_v56, 0.0 }
 0x46c   : > { %v2863_v43 = vpop.f32.mrf.mxu0  ;;  %v9830_v3 = vpop.f32.mrf.mxu1 }
 0x46d   : > { %v8050_v29 = vadd.f32 %v8049_v47, %v7485_v4  ;;  %v7486_v58 = vmax.f32 %v7046_v63, 0.0  ;;  %v3273_v19 = vadd.f32 %v3272_v46, %v2863_v43  ;;  %v7067_v13 = vadd.f32 %v9830_v3, %v11839_v35 }
 0x46e   : > { %v2865_v48 = vpop.f32.mrf.mxu0  ;;  %v7058_v24 = vpop.f32.mrf.mxu1 }
 0x46f   : > { %v8051_v28 = vadd.f32 %v8050_v29, %v7486_v58  ;;  %v7059_v5 = vadd.f32 %v7058_v24, %v11839_v35  ;;  %v7491_v16 = vmax.f32 %v7067_v13, 0.0 }
 0x470   : > { %v2866_v15 = vpop.f32.mrf.mxu0  ;;  %v9831_v2 = vpop.f32.mrf.mxu1 }
 0x471   : > { %v8052_v41 = vadd.f32 %v8051_v28, %v7487_v40  ;;  %v3274_v42 = vadd.f32 %v3273_v19, %v2866_v15  ;;  %v7489_v1 = vmax.f32 %v7059_v5, 0.0  ;;  %v7792_v44 = vsel %vm7612_vm4, %v7491_v16, 0.0 }
 0x472   : > { %v2868_v37 = vpop.f32.mrf.mxu0  ;;  %v7061_v27 = vpop.f32.mrf.mxu1 }
 0x473   : > { %v8053_v18 = vadd.f32 %v8052_v41, %v7488_v53  ;;  %v7062_v36 = vadd.f32 %v7061_v27, %v11839_v35 }
 0x474   : > { %v2871_v10 = vpop.f32.mrf.mxu0  ;;  %v9834_v14 = vpop.f32.mrf.mxu1 }
 0x475   : > { %v8054_v60 = vadd.f32 %v8053_v18, %v7489_v1  ;;  %v7490_v22 = vmax.f32 %v7062_v36, 0.0  ;;  %v3275_v9 = vadd.f32 %v3274_v42, %v2871_v10  ;;  %v7083_v23 = vadd.f32 %v9834_v14, %v11839_v35 }
 0x476   : > { %v2873_v45 = vpop.f32.mrf.mxu0  ;;  %v7074_v32 = vpop.f32.mrf.mxu1 }
 0x477   : > { %v8055_v21 = vadd.f32 %v8054_v60, %v7490_v22  ;;  %v7075_v30 = vadd.f32 %v7074_v32, %v11839_v35  ;;  %v7495_v46 = vmax.f32 %v7083_v23, 0.0 }
 0x478   : > { %v2874_v0 = vpop.f32.mrf.mxu0  ;;  %v9835_v39 = vpop.f32.mrf.mxu1 }
 0x479   : > { %v8056_v57 = vadd.f32 %v8055_v21, %v7792_v44  ;;  %v3276_v62 = vadd.f32 %v3275_v9, %v2874_v0  ;;  %v7493_v26 = vmax.f32 %v7075_v30, 0.0  ;;  %v7086_v8 = vadd.f32 %v9835_v39, %v11839_v35 }
 0x47a   : > { %v2876_v55 = vpop.f32.mrf.mxu0  ;;  %v7077_v31 = vpop.f32.mrf.mxu1 }
 0x47b   : > { %v8058_v38 = vrot.slane %v8056_v57, 4  ;;  %v7078_v11 = vadd.f32 %v7077_v31, %v11839_v35  ;;  %v7496_v63 = vmax.f32 %v7086_v8, 0.0 }
 0x47c   : > { %v2879_v33 = vpop.f32.mrf.mxu0  ;;  %v9838_v25 = vpop.f32.mrf.mxu1 }
 0x47d   : > { %v8059_v51 = vadd.f32 %v8058_v38, %v8056_v57  ;;  %v7494_v20 = vmax.f32 %v7078_v11, 0.0  ;;  %v3277_v17 = vadd.f32 %v3276_v62, %v2879_v33  ;;  %v7099_v29 = vadd.f32 %v9838_v25, %v11839_v35 }
 0x47e   : > { %v2881_v49 = vpop.f32.mrf.mxu0  ;;  %v7090_v59 = vpop.f32.mrf.mxu1 }
 0x47f   : > { %v8060_v50 = vrot.slane %v8059_v51, 2  ;;  %v8064_v12 = vadd.f32 %v7494_v20, %v7493_v26  ;;  %v7091_v54 = vadd.f32 %v7090_v59, %v11839_v35  ;;  %v7499_v1 = vmax.f32 %v7099_v29, 0.0 }
 0x480   : > { %v2882_v61 = vpop.f32.mrf.mxu0  ;;  %v9839_v4 = vpop.f32.mrf.mxu1 }
 0x481   : > { %v8061_v47 = vadd.f32 %v8060_v50, %v8059_v51  ;;  %v8065_v43 = vadd.f32 %v8064_v12, %v7495_v46  ;;  %v3278_v3 = vadd.f32 %v3277_v17, %v2882_v61  ;;  %v7497_v48 = vmax.f32 %v7091_v54, 0.0 }
 0x482   : > { %v2884_v56 = vpop.f32.mrf.mxu0  ;;  %v7093_v58 = vpop.f32.mrf.mxu1  ;;  %v7102_v28 = vadd.f32 %v9839_v4, %v11839_v35 }
 0x483   : > { %v8062_v19 = vrot.slane %v8061_v47, 1  ;;  %v8066_v24 = vadd.f32 %v8065_v43, %v7496_v63  ;;  %v7094_v40 = vadd.f32 %v7093_v58, %v11839_v35 }
 0x484   : > { %v2887_v5 = vpop.f32.mrf.mxu0  ;;  %v9842_v13 = vpop.f32.mrf.mxu1  ;;  %v7500_v14 = vmax.f32 %v7102_v28, 0.0 }
 0x485   : > { %v8063_v15 = vadd.f32 %v8062_v19, %v8061_v47  ;;  %v8067_v2 = vadd.f32 %v8066_v24, %v7497_v48  ;;  %v7498_v53 = vmax.f32 %v7094_v40, 0.0  ;;  %v3279_v41 = vadd.f32 %v3278_v3, %v2887_v5 }
 0x486   : > { %v2889_v42 = vpop.f32.mrf.mxu0  ;;  %v7106_v37 = vpop.f32.mrf.mxu1  ;;  %v7115_v21 = vadd.f32 %v9842_v13, %v11839_v35 }
 0x487   : > { %v8139_v27 = vmul.f32 0.0044444446, %v8063_v15  ;;  %v8068_v18 = vadd.f32 %v8067_v2, %v7498_v53  ;;  %v7107_v36 = vadd.f32 %v7106_v37, %v11839_v35 }
 0x488   : > { %v2890_v16 = vpop.f32.mrf.mxu0  ;;  %v9843_v10 = vpop.f32.mrf.mxu1  ;;  %v7503_v26 = vmax.f32 %v7115_v21, 0.0 }
 0x489   : > { %v8069_v60 = vadd.f32 %v8068_v18, %v7499_v1  ;;  %v3280_v22 = vadd.f32 %v3279_v41, %v2890_v16  ;;  %v12320_v32 = vsel %vm8158_vm6, %v8139_v27, %v12280_v34  ;;  %v7501_v44 = vmax.f32 %v7107_v36, 0.0 }
 0x48a   : > { %v2892_v9 = vpop.f32.mrf.mxu0  ;;  %v7109_v45 = vpop.f32.mrf.mxu1  ;;  %v7118_v55 = vadd.f32 %v9843_v10, %v11839_v35 }
 0x48b   : > { %v8070_v30 = vadd.f32 %v8069_v60, %v7500_v14  ;;  %v7110_v0 = vadd.f32 %v7109_v45, %v11839_v35 }
 0x48c   : > { %v2895_v39 = vpop.f32.mrf.mxu0  ;;  %v9846_v57 = vpop.f32.mrf.mxu1  ;;  %v7504_v8 = vmax.f32 %v7118_v55, 0.0 }
 0x48d   : > { %v8071_v62 = vadd.f32 %v8070_v30, %v7501_v44  ;;  %v7502_v31 = vmax.f32 %v7110_v0, 0.0  ;;  %v3281_v38 = vadd.f32 %v3280_v22, %v2895_v39  ;;  %v7131_v49 = vadd.f32 %v9846_v57, %v11839_v35 }
 0x48e   : > { %v2897_v23 = vpop.f32.mrf.mxu0  ;;  %v7122_v11 = vpop.f32.mrf.mxu1 }
 0x48f   : > { %v8072_v33 = vadd.f32 %v8071_v62, %v7502_v31  ;;  %v7123_v34 = vadd.f32 %v7122_v11, %v11839_v35  ;;  %v7507_v19 = vmax.f32 %v7131_v49, 0.0 }
 0x490   : > { %v2898_v25 = vpop.f32.mrf.mxu0  ;;  %v9847_v51 = vpop.f32.mrf.mxu1 }
 0x491   : > { %v8073_v20 = vadd.f32 %v8072_v33, %v7503_v26  ;;  %v3282_v17 = vadd.f32 %v3281_v38, %v2898_v25  ;;  %v7505_v46 = vmax.f32 %v7123_v34, 0.0  ;;  %v7134_v3 = vadd.f32 %v9847_v51, %v11839_v35 }
 0x492   : > { %v2900_v59 = vpop.f32.mrf.mxu0  ;;  %v7125_v50 = vpop.f32.mrf.mxu1 }
 0x493   : > { %v8074_v12 = vadd.f32 %v8073_v20, %v7504_v8  ;;  %v3283_v54 = vrot.slane %v3282_v17, 4  ;;  %v7126_v61 = vadd.f32 %v7125_v50, %v11839_v35  ;;  %v7508_v15 = vmax.f32 %v7134_v3, 0.0 }
 0x494   : > { %v12328_v4 = vpop.f32.mrf.mxu0  ;;  %v9850_v47 = vpop.f32.mrf.mxu1 }
 0x495   : > { %v8075_v63 = vadd.f32 %v8074_v12, %v7505_v46  ;;  %v3284_v43 = vadd.f32 %v3283_v54, %v3282_v17  ;;  %v7506_v29 = vmax.f32 %v7126_v61, 0.0  ;;  %v7147_v53 = vadd.f32 %v9850_v47, %v11839_v35 }
 0x496   : > { %v2905_v56 = vpop.f32.mrf.mxu0  ;;  %v7138_v58 = vpop.f32.mrf.mxu1 }
 0x497   : > { %v3285_v48 = vrot.slane %v3284_v43, 2  ;;  %v8076_v24 = vadd.f32 %v8075_v63, %v7506_v29  ;;  %v7139_v40 = vadd.f32 %v7138_v58, %v11839_v35  ;;  %v7511_v44 = vmax.f32 %v7147_v53, 0.0 }
 0x498   : > { %v12332_v28 = vpop.f32.mrf.mxu0  ;;  %v9851_v5 = vpop.f32.mrf.mxu1 }
 0x499   : > { %v3286_v13 = vadd.f32 %v3285_v48, %v3284_v43  ;;  %v8077_v2 = vadd.f32 %v8076_v24, %v7507_v19  ;;  %v7509_v27 = vmax.f32 %v7139_v40, 0.0  ;;  %v7150_v60 = vadd.f32 %v9851_v5, %v11839_v35 }
 0x49a   : > { %v2908_v41 = vpop.f32.mrf.mxu0  ;;  %v7141_v42 = vpop.f32.mrf.mxu1 }
 0x49b   : > { %v3287_v37 = vrot.slane %v3286_v13, 1  ;;  %v8078_v1 = vadd.f32 %v8077_v2, %v7508_v15  ;;  %v7142_v18 = vadd.f32 %v7141_v42, %v11839_v35  ;;  %v7512_v62 = vmax.f32 %v7150_v60, 0.0 }
 0x49c   : > { %v12336_v36 = vpop.f32.mrf.mxu0  ;;  %v9854_v16 = vpop.f32.mrf.mxu1 }
 0x49d   : > { %v3288_v10 = vadd.f32 %v3287_v37, %v3286_v13  ;;  %v8079_v14 = vadd.f32 %v8078_v1, %v7509_v27  ;;  %v7510_v22 = vmax.f32 %v7142_v18, 0.0  ;;  %v7163_v11 = vadd.f32 %v9854_v16, %v11839_v35 }
 0x49e   : > { %v2913_v9 = vpop.f32.mrf.mxu0  ;;  %v7154_v45 = vpop.f32.mrf.mxu1 }
 0x49f   : > { %v3332_v21 = vmul.f32 0.00390625, %v3288_v10  ;;  %v8080_v30 = vadd.f32 %v8079_v14, %v7510_v22  ;;  %v7155_v0 = vadd.f32 %v7154_v45, %v11839_v35  ;;  %v7515_v50 = vmax.f32 %v7163_v11, 0.0 }
 0x4a0   : > { %v12340_v39 = vpop.f32.mrf.mxu0  ;;  %v9855_v57 = vpop.f32.mrf.mxu1 }
 0x4a1   : > { %v8081_v55 = vadd.f32 %v8080_v30, %v7511_v44  ;;  %v12344_v23 = vsel %vm8160_vm7, %v3332_v21, %v12241_v7  ;;  %v7513_v26 = vmax.f32 %v7155_v0, 0.0  ;;  %v7166_v20 = vadd.f32 %v9855_v57, %v11839_v35 }
 0x4a2   : > { %v2916_v31 = vpop.f32.mrf.mxu0  ;;  %v7157_v38 = vpop.f32.mrf.mxu1 }
 0x4a3   : > { %v8082_v33 = vadd.f32 %v8081_v55, %v7512_v62  ;;  %v7158_v34 = vadd.f32 %v7157_v38, %v11839_v35  ;;  %v7516_v61 = vmax.f32 %v7166_v20, 0.0 }
 0x4a4   : > { %v12348_v25 = vpop.f32.mrf.mxu0  ;;  %v9858_v51 = vpop.f32.mrf.mxu1 }
 0x4a5   : > { %v8083_v8 = vadd.f32 %v8082_v33, %v7513_v26  ;;  %v7514_v17 = vmax.f32 %v7158_v34, 0.0  ;;  %v7179_v3 = vadd.f32 %v9858_v51, %v11839_v35 }
 0x4a6   : > { %v2921_v49 = vpop.f32.mrf.mxu0  ;;  %v7170_v59 = vpop.f32.mrf.mxu1 }
 0x4a7   : > { %v8084_v46 = vadd.f32 %v8083_v8, %v7514_v17  ;;  %v7171_v7 = vadd.f32 %v7170_v59, %v11839_v35  ;;  %v7519_v2 = vmax.f32 %v7179_v3, 0.0 }
 0x4a8   : > { %v12352_v12 = vpop.f32.mrf.mxu0  ;;  %v9859_v54 = vpop.f32.mrf.mxu1 }
 0x4a9   : > { %v8085_v47 = vadd.f32 %v8084_v46, %v7515_v50  ;;  %v7517_v29 = vmax.f32 %v7171_v7, 0.0  ;;  %v7182_v40 = vadd.f32 %v9859_v54, %v11839_v35 }
 0x4aa   : > { %v2924_v63 = vpop.f32.mrf.mxu0  ;;  %v7173_v43 = vpop.f32.mrf.mxu1 }
 0x4ab   : > { %v8086_v56 = vadd.f32 %v8085_v47, %v7516_v61  ;;  %v7174_v58 = vadd.f32 %v7173_v43, %v11839_v35  ;;  %v7520_v27 = vmax.f32 %v7182_v40, 0.0 }
 0x4ac   : > { %v12356_v19 = vpop.f32.mrf.mxu0  ;;  %v9862_v48 = vpop.f32.mrf.mxu1 }
 0x4ad   : > { %v8087_v24 = vadd.f32 %v8086_v56, %v7517_v29  ;;  %v7518_v5 = vmax.f32 %v7174_v58, 0.0  ;;  %v7195_v21 = vadd.f32 %v9862_v48, %v11839_v35 }
 0x4ae   : > { %v2929_v13 = vpop.f32.mrf.mxu0  ;;  %v7186_v15 = vpop.f32.mrf.mxu1 }
 0x4af   : > { %v8088_v53 = vadd.f32 %v8087_v24, %v7518_v5  ;;  %v7187_v41 = vadd.f32 %v7186_v15, %v11839_v35  ;;  %v7523_v11 = vmax.f32 %v7195_v21, 0.0 }
 0x4b0   : > { %v12360_v42 = vpop.f32.mrf.mxu0  ;;  %v9863_v37 = vpop.f32.mrf.mxu1 }
 0x4b1   : > { %v8089_v1 = vadd.f32 %v8088_v53, %v7519_v2  ;;  %v7521_v18 = vmax.f32 %v7187_v41, 0.0  ;;  %v7198_v22 = vadd.f32 %v9863_v37, %v11839_v35 }
 0x4b2   : > { %v2932_v16 = vpop.f32.mrf.mxu0  ;;  %v7189_v10 = vpop.f32.mrf.mxu1 }
 0x4b3   : > { %v7822_v14 = vsel %vm7612_vm4, %v7521_v18, 0.0  ;;  %v8090_v60 = vadd.f32 %v8089_v1, %v7520_v27  ;;  %v7524_v62 = vmax.f32 %v7198_v22, 0.0 }
 0x4b4   : > { %v12365_v9 = vpop.f32.mrf.mxu0  ;;  %v9866_v45 = vpop.f32.mrf.mxu1 }
 0x4b5   : > { %v8091_v44 = vadd.f32 %v8090_v60, %v7822_v14  ;;  %v8099_v20 = vadd.f32 %v7524_v62, %v7523_v11  ;;  %v7211_v17 = vadd.f32 %v9866_v45, %v11839_v35 }
 0x4b6   : > { %v2937_v30 = vpop.f32.mrf.mxu0  ;;  %v7202_v0 = vpop.f32.mrf.mxu1 }
 0x4b7   : > { %v8093_v57 = vrot.slane %v8091_v44, 4  ;;  %v7203_v55 = vadd.f32 %v7202_v0, %v11839_v35  ;;  %v7527_v3 = vmax.f32 %v7211_v17, 0.0  ;;  %v3289_v0 = vadd.f32 %v12332_v28, %v12328_v4 }
 0x4b8   : > { %v12369_v31 = vpop.f32.mrf.mxu0  ;;  %v9867_v38 = vpop.f32.mrf.mxu1 }
 0x4b9   : > { %v8094_v26 = vadd.f32 %v8093_v57, %v8091_v44  ;;  %v7525_v33 = vmax.f32 %v7203_v55, 0.0  ;;  %v7214_v54 = vadd.f32 %v9867_v38, %v11839_v35  ;;  %v3290_v11 = vadd.f32 %v3289_v0, %v12336_v36 }
 0x4ba   : > { %v2940_v34 = vpop.f32.mrf.mxu0  ;;  %v7205_v51 = vpop.f32.mrf.mxu1 }
 0x4bb   : > { %v8095_v8 = vrot.slane %v8094_v26, 2  ;;  %v7206_v49 = vadd.f32 %v7205_v51, %v11839_v35  ;;  %v8100_v7 = vadd.f32 %v8099_v20, %v7525_v33  ;;  %v7528_v40 = vmax.f32 %v7214_v54, 0.0 }
 0x4bc   : > { %v12373_v59 = vpop.f32.mrf.mxu0  ;;  %v9870_v50 = vpop.f32.mrf.mxu1  ;;  %v3291_v20 = vadd.f32 %v3290_v11, %v12340_v39 }
 0x4bd   : > { %v8096_v46 = vadd.f32 %v8095_v8, %v8094_v26  ;;  %v7526_v61 = vmax.f32 %v7206_v49, 0.0  ;;  %v7227_v13 = vadd.f32 %v9870_v50, %v11839_v35 }
 0x4be   : > { %v2945_v47 = vpop.f32.mrf.mxu0  ;;  %v7218_v63 = vpop.f32.mrf.mxu1 }
 0x4bf   : > { %v8097_v43 = vrot.slane %v8096_v46, 1  ;;  %v8101_v29 = vadd.f32 %v8100_v7, %v7526_v61  ;;  %v7219_v56 = vadd.f32 %v7218_v63, %v11839_v35  ;;  %v7531_v21 = vmax.f32 %v7227_v13, 0.0 }
 0x4c0   : > { %v12377_v58 = vpop.f32.mrf.mxu0  ;;  %v9871_v48 = vpop.f32.mrf.mxu1 }
 0x4c1   : > { %v8098_v24 = vadd.f32 %v8097_v43, %v8096_v46  ;;  %v8102_v5 = vadd.f32 %v8101_v29, %v7527_v3  ;;  %v7529_v41 = vmax.f32 %v7219_v56, 0.0  ;;  %v7230_v10 = vadd.f32 %v9871_v48, %v11839_v35 }
 0x4c2   : > { %v2948_v15 = vpop.f32.mrf.mxu0  ;;  %v7221_v2 = vpop.f32.mrf.mxu1  ;;  %v3292_v46 = vadd.f32 %v3291_v20, %v12348_v25 }
 0x4c3   : > { %v8140_v53 = vmul.f32 0.0044444446, %v8098_v24  ;;  %v8103_v37 = vadd.f32 %v8102_v5, %v7528_v40  ;;  %v7222_v27 = vadd.f32 %v7221_v2, %v11839_v35  ;;  %v7532_v55 = vmax.f32 %v7230_v10, 0.0 }
 0x4c4   : > { %v12381_v1 = vpop.f32.mrf.mxu0  ;;  %v9874_v18 = vpop.f32.mrf.mxu1  ;;  %v3293_v63 = vadd.f32 %v3292_v46, %v12352_v12 }
 0x4c5   : > { %v8104_v16 = vadd.f32 %v8103_v37, %v7529_v41  ;;  %v7530_v14 = vmax.f32 %v7222_v27, 0.0  ;;  %v12386_v45 = vsel %vm8160_vm7, %v8140_v53, %v12320_v32  ;;  %v7243_v34 = vadd.f32 %v9874_v18, %v11839_v35 }
 0x4c6   : > { %v2953_v60 = vpop.f32.mrf.mxu0  ;;  %v7234_v22 = vpop.f32.mrf.mxu1  ;;  %v3294_v56 = vadd.f32 %v3293_v63, %v12356_v19 }
 0x4c7   : > { %v8105_v44 = vadd.f32 %v8104_v16, %v7530_v14  ;;  %v7235_v30 = vadd.f32 %v7234_v22, %v11839_v35  ;;  %v7535_v54 = vmax.f32 %v7243_v34, 0.0 }
 0x4c8   : > { %v12391_v57 = vpop.f32.mrf.mxu0  ;;  %v9875_v62 = vpop.f32.mrf.mxu1  ;;  %v3295_v15 = vadd.f32 %v3294_v56, %v12360_v42 }
 0x4c9   : > { %v8106_v38 = vadd.f32 %v8105_v44, %v7531_v21  ;;  %v7533_v32 = vmax.f32 %v7235_v30, 0.0  ;;  %v7246_v49 = vadd.f32 %v9875_v62, %v11839_v35 }
 0x4ca   : > { %v2956_v26 = vpop.f32.mrf.mxu0  ;;  %v7237_v33 = vpop.f32.mrf.mxu1  ;;  %v3296_v27 = vadd.f32 %v3295_v15, %v12365_v9 }
 0x4cb   : > { %v8107_v51 = vadd.f32 %v8106_v38, %v7532_v55  ;;  %v7238_v8 = vadd.f32 %v7237_v33, %v11839_v35  ;;  %v7536_v39 = vmax.f32 %v7246_v49, 0.0 }
 0x4cc   : > { %v12397_v17 = vpop.f32.mrf.mxu0  ;;  %v9878_v4 = vpop.f32.mrf.mxu1  ;;  %v3297_v60 = vadd.f32 %v3296_v27, %v12369_v31 }
 0x4cd   : > { %v8108_v28 = vadd.f32 %v8107_v51, %v7533_v32  ;;  %v7534_v50 = vmax.f32 %v7238_v8, 0.0  ;;  %v7259_v40 = vadd.f32 %v9878_v4, %v11839_v35 }
 0x4ce   : > { %v2961_v36 = vpop.f32.mrf.mxu0  ;;  %v7250_v7 = vpop.f32.mrf.mxu1  ;;  %v3298_v30 = vadd.f32 %v3297_v60, %v12373_v59 }
 0x4cf   : > { %v8109_v61 = vadd.f32 %v8108_v28, %v7534_v50  ;;  %v7251_v47 = vadd.f32 %v7250_v7, %v11839_v35  ;;  %v7539_v16 = vmax.f32 %v7259_v40, 0.0 }
 0x4d0   : > { %v2962_v43 = vpop.f32.mrf.mxu0  ;;  %v9879_v3 = vpop.f32.mrf.mxu1  ;;  %v3299_v26 = vadd.f32 %v3298_v30, %v12377_v58 }
 0x4d1   : > { %v8110_v29 = vadd.f32 %v8109_v61, %v7535_v54  ;;  %v7537_v5 = vmax.f32 %v7251_v47, 0.0  ;;  %v7262_v12 = vadd.f32 %v9879_v3, %v11839_v35 }
 0x4d2   : > { %v2964_v48 = vpop.f32.mrf.mxu0  ;;  %v7253_v24 = vpop.f32.mrf.mxu1  ;;  %v3300_v8 = vadd.f32 %v3299_v26, %v12381_v1 }
 0x4d3   : > { %v8111_v25 = vadd.f32 %v8110_v29, %v7536_v39  ;;  %v7254_v13 = vadd.f32 %v7253_v24, %v11839_v35  ;;  %v7540_v44 = vmax.f32 %v7262_v12, 0.0 }
 0x4d4   : > { %v2967_v2 = vpop.f32.mrf.mxu0  ;;  %v9882_v53 = vpop.f32.mrf.mxu1  ;;  %v3301_v50 = vadd.f32 %v3300_v8, %v12391_v57 }
 0x4d5   : > { %v8112_v41 = vadd.f32 %v8111_v25, %v7537_v5  ;;  %v7538_v37 = vmax.f32 %v7254_v13, 0.0  ;;  %v7275_v55 = vadd.f32 %v9882_v53, %v11839_v35 }
 0x4d6   : > { %v2969_v18 = vpop.f32.mrf.mxu0  ;;  %v7266_v19 = vpop.f32.mrf.mxu1  ;;  %v3302_v54 = vadd.f32 %v3301_v50, %v12397_v17 }
 0x4d7   : > { %v8113_v10 = vadd.f32 %v8112_v41, %v7538_v37  ;;  %v7267_v14 = vadd.f32 %v7266_v19, %v11839_v35  ;;  %v7543_v4 = vmax.f32 %v7275_v55, 0.0 }
 0x4d8   : > { %v2970_v22 = vpop.f32.mrf.mxu0  ;;  %v9883_v21 = vpop.f32.mrf.mxu1  ;;  %v3303_v48 = vadd.f32 %v3302_v54, %v2962_v43 }
 0x4d9   : > { %v8114_v42 = vadd.f32 %v8113_v10, %v7539_v16  ;;  %v7541_v38 = vmax.f32 %v7267_v14, 0.0  ;;  %v7278_v31 = vadd.f32 %v9883_v21, %v11839_v35 }
 0x4da   : > { %v2972_v0 = vpop.f32.mrf.mxu0  ;;  %v7269_v62 = vpop.f32.mrf.mxu1  ;;  %v3304_v13 = vadd.f32 %v3303_v48, %v2967_v2 }
 0x4db   : > { %v8115_v9 = vadd.f32 %v8114_v42, %v7540_v44  ;;  %v7270_v11 = vadd.f32 %v7269_v62, %v11839_v35  ;;  %v7544_v7 = vmax.f32 %v7278_v31, 0.0 }
 0x4dc   : > { %v2975_v33 = vpop.f32.mrf.mxu0  ;;  %v9886_v34 = vpop.f32.mrf.mxu1  ;;  %v3305_v27 = vadd.f32 %v3304_v13, %v2970_v22 }
 0x4dd   : > { %v8116_v32 = vadd.f32 %v8115_v9, %v7541_v38  ;;  %v7542_v51 = vmax.f32 %v7270_v11, 0.0  ;;  %v7291_v63 = vadd.f32 %v9886_v34, %v11839_v35 }
 0x4de   : > { %v2977_v20 = vpop.f32.mrf.mxu0  ;;  %v7282_v59 = vpop.f32.mrf.mxu1  ;;  %v3306_v10 = vadd.f32 %v3305_v27, %v2975_v33  ;;  %v12602_v27 = vlaneseq }
 0x4df   : > { %v8117_v28 = vadd.f32 %v8116_v32, %v7542_v51  ;;  %v7283_v49 = vadd.f32 %v7282_v59, %v11839_v35  ;;  %v7547_v15 = vmax.f32 %v7291_v63, 0.0 }
 0x4e0   : > { %v2978_v46 = vpop.f32.mrf.mxu0  ;;  %v9887_v36 = vpop.f32.mrf.mxu1 }
 0x4e1   : > { %v8118_v58 = vadd.f32 %v8117_v28, %v7543_v4  ;;  %v7545_v3 = vmax.f32 %v7283_v49, 0.0  ;;  %v7294_v57 = vadd.f32 %v9887_v36, %v11839_v35  ;;  %v3307_v42 = vadd.f32 %v3306_v10, %v2978_v46  ;;  %v12596_v36 = vld [vmem:[#allocation5_spill] sm:$0xff] }
 0x4e2   : > { %v2980_v61 = vpop.f32.mrf.mxu0  ;;  %v7285_v47 = vpop.f32.mrf.mxu1 }
 0x4e3   : > { %v8119_v1 = vadd.f32 %v8118_v58, %v7544_v7  ;;  %v7286_v39 = vadd.f32 %v7285_v47, %v11839_v35  ;;  %v7548_v18 = vmax.f32 %v7294_v57, 0.0  ;;  %v12597_v7 = vld [vmem:[#allocation6_spill] sm:$0xff]  ;;  %v12598_v61 = vld [vmem:[#allocation7_spill] sm:$0xff] }
 0x4e4   : > { %v2983_v29 = vpop.f32.mrf.mxu0  ;;  %v9890_v56 = vpop.f32.mrf.mxu1 }
 0x4e5   : > { %v8120_v24 = vadd.f32 %v8119_v1, %v7545_v3  ;;  %v7546_v40 = vmax.f32 %v7286_v39, 0.0  ;;  %v7307_v41 = vadd.f32 %v9890_v56, %v11839_v35  ;;  %v3308_v55 = vadd.f32 %v3307_v42, %v2983_v29  ;;  %v12599_v3 = vld [vmem:[#allocation8_spill] sm:$0xff]  ;;  %v12600_v56 = vld [vmem:[#allocation10_spill] sm:$0xff] }
 0x4e6   : > { %v2985_v5 = vpop.f32.mrf.mxu0  ;;  %v7298_v25 = vpop.f32.mrf.mxu1 }
 0x4e7   : > { %v8121_v17 = vadd.f32 %v8120_v24, %v7546_v40  ;;  %v7299_v53 = vadd.f32 %v7298_v25, %v11839_v35  ;;  %v7551_v44 = vmax.f32 %v7307_v41, 0.0  ;;  %v12601_v24 = vld [vmem:[#allocation11_spill] sm:$0xff] }
 0x4e8   : > { %v2986_v12 = vpop.f32.mrf.mxu0  ;;  %v9891_v37 = vpop.f32.mrf.mxu1 }
 0x4e9   : > { %v8122_v19 = vadd.f32 %v8121_v17, %v7547_v15  ;;  %v7549_v14 = vmax.f32 %v7299_v53, 0.0  ;;  %v7852_v22 = vsel %vm7612_vm4, %v7551_v44, 0.0  ;;  %v3309_v11 = vadd.f32 %v3308_v55, %v2986_v12 }
 0x4ea   : > { %v2988_v16 = vpop.f32.mrf.mxu0  ;;  %v7301_v43 = vpop.f32.mrf.mxu1 }
 0x4eb   : > { %v8123_v60 = vadd.f32 %v8122_v19, %v7548_v18  ;;  %v7302_v21 = vadd.f32 %v7301_v43, %v11839_v35  ;;  %v8356_v18 = vand.u32 127, %v12602_v27  ;;  %v10514_v19 = vld [vmem:[%s12483_s6] sm:$0x7] }
 0x4ec   : > { %v2991_v2 = vpop.f32.mrf.mxu0 }
 0x4ed   : > { %v8124_v30 = vadd.f32 %v8123_v60, %v7549_v14  ;;  %v7550_v0 = vmax.f32 %v7302_v21, 0.0  ;;  %v3310_v32 = vadd.f32 %v3309_v11, %v2991_v2  ;;  %vm8357_vm9 = vcmp.lt.s32.totalorder %v8356_v18, 10 }
 0x4ee   : > { %v2993_v62 = vpop.f32.mrf.mxu0 }
 0x4ef   : > { %v8125_v38 = vadd.f32 %v8124_v30, %v7550_v0 }
 0x4f0   : > { %v2994_v9 = vpop.f32.mrf.mxu0 }
 0x4f1   : > { %v8126_v26 = vadd.f32 %v8125_v38, %v7852_v22  ;;  %v3311_v35 = vadd.f32 %v3310_v32, %v2994_v9 }
 0x4f2   : > { %v2996_v34 = vpop.f32.mrf.mxu0 }
 0x4f3   : > { %v8128_v33 = vrot.slane %v8126_v26, 4 }
 0x4f4   : > { %v2999_v31 = vpop.f32.mrf.mxu0 }
 0x4f5   : > { %v8129_v51 = vadd.f32 %v8128_v33, %v8126_v26  ;;  %v3312_v59 = vadd.f32 %v3311_v35, %v2999_v31 }
 0x4f6   : > { %v3001_v8 = vpop.f32.mrf.mxu0 }
 0x4f7   : > { %v8130_v20 = vrot.slane %v8129_v51, 2 }
 0x4f8   : > { %v3002_v4 = vpop.f32.mrf.mxu0 }
 0x4f9   : > { %v8131_v28 = vadd.f32 %v8130_v20, %v8129_v51  ;;  %v3313_v49 = vadd.f32 %v3312_v59, %v3002_v4 }
 0x4fa   : > { %v3004_v50 = vpop.f32.mrf.mxu0 }
 0x4fb   : > { %v8132_v46 = vrot.slane %v8131_v28, 1  ;;  %v3314_v52 = vadd.f32 %v3313_v49, %v12596_v36 }
 0x4fd   : > { %v3315_v58 = vadd.f32 %v3314_v52, %v12597_v7  ;;  %v8133_v54 = vadd.f32 %v8132_v46, %v8131_v28 }
 0x4ff   : > { %v3316_v47 = vadd.f32 %v3315_v58, %v12598_v61  ;;  %v8141_v63 = vmul.f32 0.0044444446, %v8133_v54 }
 0x501   : > { %v3317_v1 = vadd.f32 %v3316_v47, %v12599_v3  ;;  %v8179_v39 = vsel %vm8162_vm8, %v8141_v63, %v12386_v45  ;;  %v8217_v45 = vsub.s32 2, %v12556_v6 }
 0x502   : > { %v8182_v29 = vpack.c.bf16 %v8179_v39, %v8179_v39 }
 0x503   : > { %v3318_v48 = vadd.f32 %v3317_v1, %v12600_v56  ;;  %v8218_v16 = vrot.slane %v10514_v19, %v8217_v45 }
 0x504   : > { %8347 = vmatprep.mubr.bf16.mxu1 %v8182_v29 }
 0x505   : > { %v3319_v57 = vadd.f32 %v3318_v48, %v12601_v24 }
 0x507   : > { %v3320_v40 = vrot.slane %v3319_v57, 4 }
 0x509   : > { %v3321_v5 = vadd.f32 %v3320_v40, %v3319_v57 }
 0x50b   : > { %v3322_v25 = vrot.slane %v3321_v5, 2 }
 0x50d   : > { %v3323_v13 = vadd.f32 %v3322_v25, %v3321_v5 }
 0x50f   : > { %v3324_v15 = vrot.slane %v3323_v13, 1 }
 0x511   : > { %v3325_v17 = vadd.f32 %v3324_v15, %v3323_v13 }
 0x513   : > { %v3333_v53 = vmul.f32 0.00390625, %v3325_v17 }
 0x515   : > { %v8163_v41 = vsel %vm8162_vm8, %v3333_v53, %v12344_v23 }
 0x516   : > { %v8181_v12 = vpack.c.bf16 %v8163_v41, %v8163_v41 }
 0x518   : > { %8348 = vmatmul.mubr.bf16.vlgmr.msra.gmra.mxu1 %v8181_v12 }
 0x5d8   : > { %v9390_v37 = vpop.f32.mrf.mxu1 }
 0x5da   : > { %v9391_v43 = vpop.f32.mrf.mxu1 }
 0x5db   : > { %v9392_v10 = vadd.f32 %v9391_v43, %v9390_v37 }
 0x5dc   : > { %v9393_v14 = vpop.f32.mrf.mxu1 }
 0x5dd   : > { %v8350_v60 = vadd.f32 %v9392_v10, %v8218_v16 }
 0x5de   : > { %v9394_v23 = vpop.f32.mrf.mxu1 }
 0x5df   : > { %v8358_v21 = vsel %vm8357_vm9, %v8350_v60, -1e+30 }
 0x5e0   : > { %8359 = vmax.xlane.f32.xlu0 %v8358_v21 }
 0x669   : > { %v8360_v44 = vpop.xlane.xlu0 %8359 }
 0x66a   : > { %v8361_v6 = vsub.f32 %v8358_v21, %v8360_v44 }
 0x66c   : > { %v8362_v2 = vmul.f32 1.442695, %v8361_v6 }
 0x66e   : > { %10509 = vpow2.f32 %v8362_v2 }
 0x67b   : > { %v10510_v42 = vpop.eup %10509 }
 0x67c   : > { %v8364_v30 = vsel %vm8357_vm9, %v10510_v42, 0.0 }
 0x67d   : > { %8365 = vadd.xlane.f32.xlu0 %v8364_v30 }
 0x706   : > { %v8366_v0 = vpop.xlane.xlu0 %8365 }
 0x707   : > { %10511 = vrcp.f32 %v8366_v0 }
 0x714   : > { %v10512_v62 = vpop.eup %10511 }
 0x715   : > { %v8368_v55 = vmul.f32 %v10512_v62, %v8364_v30 }
 0x717   : > { %8369 = vst [vmem:[%s292_s21] sm:$0xff] %v8368_v55 }
 0x718   : > { %10528 = shalt.err (!%p10525_p3)
}
 0x719   : > { %s10529_s16 = scalar_lea.hbm %s8382_s8, 128  ;;  %s10533_s19 = scalar_lea.hbm %s12484_s7, 256 }
 0x71a   : > { %p10530_p4 = scmp.ne.s32.totalorder %s8382_s8, %s10529_s16  ;;  %p10534_p9 = scmp.lt.s32.totalorder %s8382_s8, %s12484_s7 }
 0x71b   : > { %p10535_p10 = scmp.lt.s32.totalorder %s10533_s19, %s10529_s16 }
 0x71c   : > { %p10531_p7 = pnand %p10530_p4, %p10657_p5 }
 0x71d   : > { %p10536_p11 = por %p10535_p10, %p10534_p9 }
 0x71e   : > { %p10532_p8 = pneg %p10531_p7 }
 0x720   : > { %p10537_p12 = pnand %p10536_p11, %p10532_p8 }
 0x722   : > { %10540 = shalt.err (!%p10537_p12)
}
 0x723   : > { %9925 = dma.vmem_to_hbm [thread:$0]  (%p10657_p5), %s8385_s29, 128, %s8382_s8, %s8371_s13  }
 0x724 PF: > { %p9931_p13 = scmp.ge.s32.totalorder %s10575_s27, 2  ;;  %s8396_s22 = sand.u32 1, %s10563_s24  }
 0x725   : > { %s8397_s23 = scalar_lea.sflag [#allocation3], %s8396_s22 }
 0x726   : > { %p9928_p0 = pnand %p9931_p13, %p10661_p6 }
 0x728   : > { %p9929_p1 = pneg %p9928_p0 }
 0x72a   : > { %10558 = dma.done.wait (%p9929_p1), %s8397_s23, 128  }
 0x72b   : > { %10560 = vsyncadd (%p9929_p1), %s8397_s23, 4294967168  ;;  %p17_p2 = scmp.ge.s32.totalorder %s10644_s30, 4   ;;  %s12603_s24 = smov %s10567_s25 }
 0x72c   : > { %s12604_s25 = smov %s10571_s26  ;;  %s12605_s26 = smov %s10655_s10 }
 0x72d   : > { %s12606_s27 = smov %s10644_s30  ;;  %19 = sbr.rel (!%p17_p2) target bundleno = 3 (0x3), region = 86 }
 0x732   :  { %8402 = vsyncpa [#allocation3], 1 }
 0x733   :  { %8404 = vsyncpa [#allocation3 + $0x1], 1 }

</bundles_post_ra>
